<compile_context>
chip_gen: v5e
topology: v5e:2x2
jax: 0.10.0
libtpu: 0.0.40
codegen_flags: <defaults>
</compile_context>

<pallas_src>
import functools

import jax
import jax.numpy as jnp
from jax.experimental import pallas as pl
from jax.experimental.pallas import tpu as pltpu

EPS = 1e-5          # nn.BatchNorm2d default
LANES = 128         # TPU lane width; channel padding target


def _round_up(x, m):
    return ((x + m - 1) // m) * m


def _pick_tile(m, preferred=256):
    for t in (preferred, 128, 64, 32, 16, 8):
        if t <= m and m % t == 0:
            return t
    return m


# ----------------------------------------------------------------------------
# Pallas kernels
# ----------------------------------------------------------------------------
def _matmul_bnstats_kernel(a_ref, b_ref, y_ref, stats_ref):
    """One M-tile of Y = A @ B (bf16 x bf16 -> f32 MXU) with fused per-channel
    sum / sum-of-squares (BN batch stats) emitted as an (8, N) side block
    (row 0 = sum, row 1 = sum of squares)."""
    y = jnp.dot(a_ref[...], b_ref[...], preferred_element_type=jnp.float32)
    y_ref[...] = y
    n = y.shape[1]
    s = jnp.sum(y, axis=0, keepdims=True)            # (1, N)
    q = jnp.sum(y * y, axis=0, keepdims=True)        # (1, N)
    row = jax.lax.broadcasted_iota(jnp.int32, (8, n), 0)
    sb = jnp.broadcast_to(s, (8, n))
    qb = jnp.broadcast_to(q, (8, n))
    stats_ref[...] = jnp.where(row == 0, sb, jnp.where(row == 1, qb, 0.0))


def conv_matmul_bnstats(patches, w_packed):
    """patches: (M, K) bf16, w_packed: (K, N) bf16 (N a multiple of 128).
    Returns conv output (M, N) f32 plus BN batch mean/var, each (N,) f32."""
    M, K = patches.shape
    K2, N = w_packed.shape
    assert K == K2 and N % LANES == 0
    tm = _pick_tile(M)
    gm = M // tm
    y, stats = pl.pallas_call(
        _matmul_bnstats_kernel,
        out_shape=(jax.ShapeDtypeStruct((M, N), jnp.float32),
                   jax.ShapeDtypeStruct((gm * 8, N), jnp.float32)),
        grid=(gm,),
        in_specs=[pl.BlockSpec((tm, K), lambda i: (i, 0)),
                  pl.BlockSpec((K, N), lambda i: (0, 0))],
        out_specs=(pl.BlockSpec((tm, N), lambda i: (i, 0)),
                   pl.BlockSpec((8, N), lambda i: (i, 0))),
        compiler_params=pltpu.CompilerParams(
            dimension_semantics=("parallel",)),
    )(patches, w_packed)
    s = jnp.sum(stats[0::8, :], axis=0)
    q = jnp.sum(stats[1::8, :], axis=0)
    mean = s / M
    var = jnp.maximum(q / M - mean * mean, 0.0)      # biased var (training BN)
    return y, mean, var


def _bn_relu_kernel(y_ref, scale_ref, shift_ref, o_ref):
    y = y_ref[...] * scale_ref[...] + shift_ref[...]
    o_ref[...] = jnp.maximum(y, 0.0).astype(o_ref.dtype)


def _bn_add_relu_kernel(y_ref, res_ref, scale_ref, shift_ref, o_ref):
    y = y_ref[...] * scale_ref[...] + shift_ref[...] + res_ref[...]
    o_ref[...] = jnp.maximum(y, 0.0).astype(o_ref.dtype)


def _bn_scale_shift(mean, var, gamma, beta, n):
    inv = jax.lax.rsqrt(var + EPS)
    scale = gamma * inv
    shift = beta - mean * scale
    return (scale.reshape(1, n).astype(jnp.float32),
            shift.reshape(1, n).astype(jnp.float32))


def bn_relu(y, mean, var, gamma, beta, out_dtype=jnp.float32):
    """Fused BatchNorm-normalize (training stats) + ReLU over (M, N) f32."""
    M, N = y.shape
    scale, shift = _bn_scale_shift(mean, var, gamma, beta, N)
    tm = _pick_tile(M)
    return pl.pallas_call(
        _bn_relu_kernel,
        out_shape=jax.ShapeDtypeStruct((M, N), out_dtype),
        grid=(M // tm,),
        in_specs=[pl.BlockSpec((tm, N), lambda i: (i, 0)),
                  pl.BlockSpec((1, N), lambda i: (0, 0)),
                  pl.BlockSpec((1, N), lambda i: (0, 0))],
        out_specs=pl.BlockSpec((tm, N), lambda i: (i, 0)),
        compiler_params=pltpu.CompilerParams(
            dimension_semantics=("parallel",)),
    )(y, scale, shift)


def bn_add_relu(y, res, mean, var, gamma, beta):
    """Fused BatchNorm-normalize + residual add + ReLU over (M, N) f32."""
    M, N = y.shape
    scale, shift = _bn_scale_shift(mean, var, gamma, beta, N)
    tm = _pick_tile(M)
    return pl.pallas_call(
        _bn_add_relu_kernel,
        out_shape=jax.ShapeDtypeStruct((M, N), jnp.float32),
        grid=(M // tm,),
        in_specs=[pl.BlockSpec((tm, N), lambda i: (i, 0)),
                  pl.BlockSpec((tm, N), lambda i: (i, 0)),
                  pl.BlockSpec((1, N), lambda i: (0, 0)),
                  pl.BlockSpec((1, N), lambda i: (0, 0))],
        out_specs=pl.BlockSpec((tm, N), lambda i: (i, 0)),
        compiler_params=pltpu.CompilerParams(
            dimension_semantics=("parallel",)),
    )(y, res, scale, shift)


# ----------------------------------------------------------------------------
# Plain-JAX glue (im2col) + weight pre-packing
# ----------------------------------------------------------------------------
def im2col_3x3(x_nhwc):
    """stride-1, pad-1 3x3 im2col.  x: (N, H, W, C) -> (N*H*W, 9*C)."""
    Nb, H, W, C = x_nhwc.shape
    xp = jnp.pad(x_nhwc, ((0, 0), (1, 1), (1, 1), (0, 0)))
    cols = [xp[:, di:di + H, dj:dj + W, :] for di in range(3) for dj in range(3)]
    # TODO(synk): at deployment spatial sizes, fold these 9 taps into the
    # matmul K grid axis instead of materializing the stacked patch tensor.
    patches = jnp.stack(cols, axis=3)                      # (N, H, W, 9, C)
    return patches.reshape(Nb * H * W, 9 * C)


def pack_conv3x3_weight(w_oihw, cin_pad, cout_pad):
    """PyTorch (Cout, Cin, 3, 3) f32 -> (9*cin_pad, cout_pad) bf16 matmul operand."""
    cout, cin, kh, kw = w_oihw.shape
    w = jnp.transpose(w_oihw, (2, 3, 1, 0))                # (kh, kw, Cin, Cout)
    w = jnp.pad(w, ((0, 0), (0, 0), (0, cin_pad - cin), (0, cout_pad - cout)))
    return w.reshape(kh * kw * cin_pad, cout_pad).astype(jnp.bfloat16)


def _pad_vec(v, n, value):
    return jnp.pad(v, (0, n - v.shape[0]), constant_values=value)


def init_basic_block_params(key, in_planes, planes):
    """Returns (pre-packed params for the Pallas forward, raw params for the ref)."""
    k1, k2 = jax.random.split(key)
    w1 = jax.random.normal(k1, (planes, in_planes, 3, 3), jnp.float32) * (
        (2.0 / (in_planes * 9)) ** 0.5)
    w2 = jax.random.normal(k2, (planes, planes, 3, 3), jnp.float32) * (
        (2.0 / (planes * 9)) ** 0.5)
    g1 = jnp.ones((planes,), jnp.float32)      # nn.BatchNorm2d default init
    b1 = jnp.zeros((planes,), jnp.float32)
    g2 = jnp.ones((planes,), jnp.float32)
    b2 = jnp.zeros((planes,), jnp.float32)

    cin_pad = _round_up(in_planes, LANES)
    cout_pad = _round_up(planes, LANES)
    packed = {
        "w1": pack_conv3x3_weight(w1, cin_pad, cout_pad),
        "w2": pack_conv3x3_weight(w2, cout_pad, cout_pad),
        "g1": _pad_vec(g1, cout_pad, 1.0), "b1": _pad_vec(b1, cout_pad, 0.0),
        "g2": _pad_vec(g2, cout_pad, 1.0), "b2": _pad_vec(b2, cout_pad, 0.0),
    }
    raw = {"w1": w1, "w2": w2, "g1": g1, "b1": b1, "g2": g2, "b2": b2}
    return packed, raw


# ----------------------------------------------------------------------------
# Forward pass (matches BasicBlock.forward with stride=1, downsample=None)
# ----------------------------------------------------------------------------
def basic_block_forward(params, x_nchw, *, planes):
    x = jnp.transpose(x_nchw, (0, 2, 3, 1)).astype(jnp.float32)  # NCHW -> NHWC
    Nb, H, W, Cin = x.shape
    cpad = params["w1"].shape[1]            # lane-padded channel count (static)

    # Pad channels once to the lane width; reused by conv1 im2col and residual.
    x_p = jnp.pad(x, ((0, 0), (0, 0), (0, 0), (0, cpad - Cin)))

    # conv1 (bf16 MXU) + fused BN batch stats, then fused BN-normalize + ReLU.
    a1 = im2col_3x3(x_p.astype(jnp.bfloat16))
    y1, m1, v1 = conv_matmul_bnstats(a1, params["w1"])
    h1 = bn_relu(y1, m1, v1, params["g1"], params["b1"], out_dtype=jnp.bfloat16)

    # conv2 + fused BN stats, then fused BN-normalize + residual add + ReLU.
    a2 = im2col_3x3(h1.reshape(Nb, H, W, cpad))
    y2, m2, v2 = conv_matmul_bnstats(a2, params["w2"])
    res = x_p.reshape(Nb * H * W, cpad)
    out = bn_add_relu(y2, res, m2, v2, params["g2"], params["b2"])

    out = out.reshape(Nb, H, W, cpad)[..., :planes]
    return jnp.transpose(out, (0, 3, 1, 2))                     # back to NCHW


# ----------------------------------------------------------------------------
# Pure-JAX reference (training-mode BN, bf16 conv operands to mirror the MXU)
# ----------------------------------------------------------------------------
def basic_block_reference(x_nchw, raw):
    def conv(x, w):
        return jax.lax.conv_general_dilated(
            x.astype(jnp.bfloat16), w.astype(jnp.bfloat16),
            window_strides=(1, 1), padding=((1, 1), (1, 1)),
            dimension_numbers=("NCHW", "OIHW", "NCHW"),
            preferred_element_type=jnp.float32)

    def bn(y, g, b):
        mean = jnp.mean(y, axis=(0, 2, 3), keepdims=True)
        var = jnp.maximum(
            jnp.mean(y * y, axis=(0, 2, 3), keepdims=True) - mean * mean, 0.0)
        return ((y - mean) * jax.lax.rsqrt(var + EPS)
                * g.reshape(1, -1, 1, 1) + b.reshape(1, -1, 1, 1))

    x = x_nchw.astype(jnp.float32)
    h = jnp.maximum(bn(conv(x, raw["w1"]), raw["g1"], raw["b1"]), 0.0)
    h = h.astype(jnp.bfloat16).astype(jnp.float32)   # kernel stores h1 in bf16
    y = bn(conv(h, raw["w2"]), raw["g2"], raw["b2"])
    return jnp.maximum(y + x, 0.0)


if __name__ == "__main__":
    IN_PLANES = PLANES = 64      # downsample=None requires in_planes == planes
    Nb, H, W = 2, 16, 16

    key = jax.random.PRNGKey(0)
    pkey, xkey = jax.random.split(key)
    params, raw = init_basic_block_params(pkey, IN_PLANES, PLANES)
    x = jax.random.normal(xkey, (Nb, IN_PLANES, H, W), dtype=jnp.float32)  # NCHW

    fwd = jax.jit(functools.partial(basic_block_forward, planes=PLANES))
    out = fwd(params, x)
    jax.block_until_ready(out)

    assert out.shape == (Nb, PLANES, H, W), out.shape
    assert bool(jnp.all(jnp.isfinite(out)))
    assert bool(jnp.all(out >= 0.0))                 # post-ReLU

    ref = basic_block_reference(x, raw)
    max_err = float(jnp.max(jnp.abs(out - ref)))
    assert max_err < 5e-2, f"max abs err vs reference: {max_err}"
    print("KERNEL_OK")
</pallas_src>

<mosaic_0001>
module attributes {stable_mosaic.version = 11 : i64} {
  func.func @_matmul_bnstats_kernel(%arg0: i32, %arg1: memref<256x1152xbf16, #tpu.memory_space<vmem>>, %arg2: memref<1152x128xbf16, #tpu.memory_space<vmem>>, %arg3: memref<256x128xf32, #tpu.memory_space<vmem>>, %arg4: memref<8x128xf32, #tpu.memory_space<vmem>>) attributes {dimension_semantics = [#tpu.dimension_semantics<parallel>], iteration_bounds = array<i64: 2>, scalar_prefetch = 0 : i64, scratch_operands = 0 : i64, tpu.core_type = #tpu.core_type<tc>, window_params = [{transform_indices = @transform_0, window_bounds = array<i64: 256, 1152>}, {pipeline_mode = #tpu.pipeline_mode<synchronous>, transform_indices = @transform_1, window_bounds = array<i64: 1152, 128>}, {transform_indices = @transform_2, window_bounds = array<i64: 256, 128>}, {transform_indices = @transform_3, window_bounds = array<i64: 8, 128>}]} {
    %c0 = arith.constant 0 : index
    %c0_0 = arith.constant 0 : index
    %0 = vector.load %arg1[%c0, %c0_0] : memref<256x1152xbf16, #tpu.memory_space<vmem>>, vector<256x1152xbf16>
    %c0_1 = arith.constant 0 : index
    %c0_2 = arith.constant 0 : index
    %1 = vector.load %arg2[%c0_1, %c0_2] : memref<1152x128xbf16, #tpu.memory_space<vmem>>, vector<1152x128xbf16>
    %cst = arith.constant dense<0.000000e+00> : vector<256x128xf32>
    %2 = tpu.matmul %0, %1, %cst {dimension_numbers = #tpu.dot_dimension_numbers<[1], [0], [0], [1], [0, 0, 1, 1], [], []>} : vector<256x1152xbf16>, vector<1152x128xbf16>, vector<256x128xf32> -> vector<256x128xf32>
    %c0_3 = arith.constant 0 : index
    %c0_4 = arith.constant 0 : index
    %3 = vector.load %arg3[%c0_3, %c0_4] : memref<256x128xf32, #tpu.memory_space<vmem>>, vector<256x128xf32>
    tpu.vector_store %arg3[%c0_3, %c0_4], %2 {strides = array<i32>} : memref<256x128xf32, #tpu.memory_space<vmem>>, vector<256x128xf32>,
    %cst_5 = arith.constant dense<0.000000e+00> : vector<128xf32>
    %4 = vector.multi_reduction <add>, %2, %cst_5 [0] : vector<256x128xf32> to vector<128xf32>
    %5 = vector.shape_cast %4 : vector<128xf32> to vector<1x128xf32>
    %6 = arith.mulf %2, %2 : vector<256x128xf32>
    %cst_6 = arith.constant dense<0.000000e+00> : vector<128xf32>
    %7 = vector.multi_reduction <add>, %6, %cst_6 [0] : vector<256x128xf32> to vector<128xf32>
    %8 = vector.shape_cast %7 : vector<128xf32> to vector<1x128xf32>
    %9 = tpu.iota {dimensions = array<i32: 0>} : vector<8x128xi32>
    %10 = vector.shape_cast %5 : vector<1x128xf32> to vector<1x128xf32>
    %11 = vector.broadcast %10 : vector<1x128xf32> to vector<8x128xf32>
    %12 = vector.shape_cast %8 : vector<1x128xf32> to vector<1x128xf32>
    %13 = vector.broadcast %12 : vector<1x128xf32> to vector<8x128xf32>
    %c0_i32 = arith.constant 0 : i32
    %14 = vector.broadcast %c0_i32 : i32 to vector<8x128xi32>
    %15 = arith.cmpi eq, %9, %14 : vector<8x128xi32>
    %c1_i32 = arith.constant 1 : i32
    %16 = vector.broadcast %c1_i32 : i32 to vector<8x128xi32>
    %17 = arith.cmpi eq, %9, %16 : vector<8x128xi32>
    %cst_7 = arith.constant 0.000000e+00 : f32
    %18 = vector.broadcast %cst_7 : f32 to vector<8x128xf32>
    %19 = arith.select %17, %13, %18 : vector<8x128xi1>, vector<8x128xf32>
    %20 = arith.select %15, %11, %19 : vector<8x128xi1>, vector<8x128xf32>
    %c0_8 = arith.constant 0 : index
    %c0_9 = arith.constant 0 : index
    %21 = vector.load %arg4[%c0_8, %c0_9] : memref<8x128xf32, #tpu.memory_space<vmem>>, vector<8x128xf32>
    tpu.vector_store %arg4[%c0_8, %c0_9], %20 {strides = array<i32>} : memref<8x128xf32, #tpu.memory_space<vmem>>, vector<8x128xf32>,
    return
  }
  func.func @transform_0(%arg0: i32) -> (i32, i32) {
    %c0_i32 = arith.constant 0 : i32
    %c0_i32_0 = arith.constant 0 : i32
    return %arg0, %c0_i32 : i32, i32
  }
  func.func @transform_1(%arg0: i32) -> (i32, i32) {
    %c0_i32 = arith.constant 0 : i32
    %c0_i32_0 = arith.constant 0 : i32
    %c0_i32_1 = arith.constant 0 : i32
    return %c0_i32, %c0_i32_0 : i32, i32
  }
  func.func @transform_2(%arg0: i32) -> (i32, i32) {
    %c0_i32 = arith.constant 0 : i32
    %c0_i32_0 = arith.constant 0 : i32
    return %arg0, %c0_i32 : i32, i32
  }
  func.func @transform_3(%arg0: i32) -> (i32, i32) {
    %c0_i32 = arith.constant 0 : i32
    %c0_i32_0 = arith.constant 0 : i32
    return %arg0, %c0_i32 : i32, i32
  }
}

module attributes {stable_mosaic.version = 11 : i64} {
  func.func @_bn_relu_kernel(%arg0: i32, %arg1: memref<256x128xf32, #tpu.memory_space<vmem>>, %arg2: memref<1x128xf32, #tpu.memory_space<vmem>>, %arg3: memref<1x128xf32, #tpu.memory_space<vmem>>, %arg4: memref<256x128xbf16, #tpu.memory_space<vmem>>) attributes {dimension_semantics = [#tpu.dimension_semantics<parallel>], iteration_bounds = array<i64: 2>, scalar_prefetch = 0 : i64, scratch_operands = 0 : i64, tpu.core_type = #tpu.core_type<tc>, window_params = [{transform_indices = @transform_0, window_bounds = array<i64: 256, 128>}, {pipeline_mode = #tpu.pipeline_mode<synchronous>, transform_indices = @transform_1, window_bounds = array<i64: 1, 128>}, {pipeline_mode = #tpu.pipeline_mode<synchronous>, transform_indices = @transform_2, window_bounds = array<i64: 1, 128>}, {transform_indices = @transform_3, window_bounds = array<i64: 256, 128>}]} {
    %c0 = arith.constant 0 : index
    %c0_0 = arith.constant 0 : index
    %0 = vector.load %arg1[%c0, %c0_0] : memref<256x128xf32, #tpu.memory_space<vmem>>, vector<256x128xf32>
    %c0_1 = arith.constant 0 : index
    %c0_2 = arith.constant 0 : index
    %1 = vector.load %arg2[%c0_1, %c0_2] : memref<1x128xf32, #tpu.memory_space<vmem>>, vector<1x128xf32>
    %2 = vector.broadcast %1 : vector<1x128xf32> to vector<256x128xf32>
    %3 = arith.mulf %0, %2 : vector<256x128xf32>
    %c0_3 = arith.constant 0 : index
    %c0_4 = arith.constant 0 : index
    %4 = vector.load %arg3[%c0_3, %c0_4] : memref<1x128xf32, #tpu.memory_space<vmem>>, vector<1x128xf32>
    %5 = vector.broadcast %4 : vector<1x128xf32> to vector<256x128xf32>
    %6 = arith.addf %3, %5 : vector<256x128xf32>
    %cst = arith.constant 0.000000e+00 : f32
    %7 = vector.broadcast %cst : f32 to vector<256x128xf32>
    %8 = arith.maximumf %6, %7 : vector<256x128xf32>
    %9 = arith.truncf %8 : vector<256x128xf32> to vector<256x128xbf16>
    %c0_5 = arith.constant 0 : index
    %c0_6 = arith.constant 0 : index
    %10 = vector.load %arg4[%c0_5, %c0_6] : memref<256x128xbf16, #tpu.memory_space<vmem>>, vector<256x128xbf16>
    tpu.vector_store %arg4[%c0_5, %c0_6], %9 {strides = array<i32>} : memref<256x128xbf16, #tpu.memory_space<vmem>>, vector<256x128xbf16>,
    return
  }
  func.func @transform_0(%arg0: i32) -> (i32, i32) {
    %c0_i32 = arith.constant 0 : i32
    %c0_i32_0 = arith.constant 0 : i32
    return %arg0, %c0_i32 : i32, i32
  }
  func.func @transform_1(%arg0: i32) -> (i32, i32) {
    %c0_i32 = arith.constant 0 : i32
    %c0_i32_0 = arith.constant 0 : i32
    %c0_i32_1 = arith.constant 0 : i32
    return %c0_i32, %c0_i32_0 : i32, i32
  }
  func.func @transform_2(%arg0: i32) -> (i32, i32) {
    %c0_i32 = arith.constant 0 : i32
    %c0_i32_0 = arith.constant 0 : i32
    %c0_i32_1 = arith.constant 0 : i32
    return %c0_i32, %c0_i32_0 : i32, i32
  }
  func.func @transform_3(%arg0: i32) -> (i32, i32) {
    %c0_i32 = arith.constant 0 : i32
    %c0_i32_0 = arith.constant 0 : i32
    return %arg0, %c0_i32 : i32, i32
  }
}

module attributes {stable_mosaic.version = 11 : i64} {
  func.func @_bn_add_relu_kernel(%arg0: i32, %arg1: memref<256x128xf32, #tpu.memory_space<vmem>>, %arg2: memref<256x128xf32, #tpu.memory_space<vmem>>, %arg3: memref<1x128xf32, #tpu.memory_space<vmem>>, %arg4: memref<1x128xf32, #tpu.memory_space<vmem>>, %arg5: memref<256x128xf32, #tpu.memory_space<vmem>>) attributes {dimension_semantics = [#tpu.dimension_semantics<parallel>], iteration_bounds = array<i64: 2>, scalar_prefetch = 0 : i64, scratch_operands = 0 : i64, tpu.core_type = #tpu.core_type<tc>, window_params = [{transform_indices = @transform_0, window_bounds = array<i64: 256, 128>}, {transform_indices = @transform_1, window_bounds = array<i64: 256, 128>}, {pipeline_mode = #tpu.pipeline_mode<synchronous>, transform_indices = @transform_2, window_bounds = array<i64: 1, 128>}, {pipeline_mode = #tpu.pipeline_mode<synchronous>, transform_indices = @transform_3, window_bounds = array<i64: 1, 128>}, {transform_indices = @transform_4, window_bounds = array<i64: 256, 128>}]} {
    %c0 = arith.constant 0 : index
    %c0_0 = arith.constant 0 : index
    %0 = vector.load %arg1[%c0, %c0_0] : memref<256x128xf32, #tpu.memory_space<vmem>>, vector<256x128xf32>
    %c0_1 = arith.constant 0 : index
    %c0_2 = arith.constant 0 : index
    %1 = vector.load %arg3[%c0_1, %c0_2] : memref<1x128xf32, #tpu.memory_space<vmem>>, vector<1x128xf32>
    %2 = vector.broadcast %1 : vector<1x128xf32> to vector<256x128xf32>
    %3 = arith.mulf %0, %2 : vector<256x128xf32>
    %c0_3 = arith.constant 0 : index
    %c0_4 = arith.constant 0 : index
    %4 = vector.load %arg4[%c0_3, %c0_4] : memref<1x128xf32, #tpu.memory_space<vmem>>, vector<1x128xf32>
    %5 = vector.broadcast %4 : vector<1x128xf32> to vector<256x128xf32>
    %6 = arith.addf %3, %5 : vector<256x128xf32>
    %c0_5 = arith.constant 0 : index
    %c0_6 = arith.constant 0 : index
    %7 = vector.load %arg2[%c0_5, %c0_6] : memref<256x128xf32, #tpu.memory_space<vmem>>, vector<256x128xf32>
    %8 = arith.addf %6, %7 : vector<256x128xf32>
    %cst = arith.constant 0.000000e+00 : f32
    %9 = vector.broadcast %cst : f32 to vector<256x128xf32>
    %10 = arith.maximumf %8, %9 : vector<256x128xf32>
    %c0_7 = arith.constant 0 : index
    %c0_8 = arith.constant 0 : index
    %11 = vector.load %arg5[%c0_7, %c0_8] : memref<256x128xf32, #tpu.memory_space<vmem>>, vector<256x128xf32>
    tpu.vector_store %arg5[%c0_7, %c0_8], %10 {strides = array<i32>} : memref<256x128xf32, #tpu.memory_space<vmem>>, vector<256x128xf32>,
    return
  }
  func.func @transform_0(%arg0: i32) -> (i32, i32) {
    %c0_i32 = arith.constant 0 : i32
    %c0_i32_0 = arith.constant 0 : i32
    return %arg0, %c0_i32 : i32, i32
  }
  func.func @transform_1(%arg0: i32) -> (i32, i32) {
    %c0_i32 = arith.constant 0 : i32
    %c0_i32_0 = arith.constant 0 : i32
    return %arg0, %c0_i32 : i32, i32
  }
  func.func @transform_2(%arg0: i32) -> (i32, i32) {
    %c0_i32 = arith.constant 0 : i32
    %c0_i32_0 = arith.constant 0 : i32
    %c0_i32_1 = arith.constant 0 : i32
    return %c0_i32, %c0_i32_0 : i32, i32
  }
  func.func @transform_3(%arg0: i32) -> (i32, i32) {
    %c0_i32 = arith.constant 0 : i32
    %c0_i32_0 = arith.constant 0 : i32
    %c0_i32_1 = arith.constant 0 : i32
    return %c0_i32, %c0_i32_0 : i32, i32
  }
  func.func @transform_4(%arg0: i32) -> (i32, i32) {
    %c0_i32 = arith.constant 0 : i32
    %c0_i32_0 = arith.constant 0 : i32
    return %arg0, %c0_i32 : i32, i32
  }
}

</mosaic_0001>

<bundles_post_ra>
// kernel: basic_block_forward.5
= control target key start
LH: loop header
LB: loop body
LE: loop exit
PB: predicated region body
PF: predicated region fallthrough
CT: control target
= control target key end

     0   :  { %s574_s12 = smov 0   ;;  %s721_s0 = inlined_call_operand.vmem [shape: f32[512,128], index: 0, kind: input, shape index: {}]   ;;  %s722_s1 = inlined_call_operand.vmem [shape: f32[1,128], index: 1, kind: input, shape index: {}]   ;;  %s723_s2 = inlined_call_operand.vmem [shape: f32[1,128], index: 2, kind: input, shape index: {}]   ;;  %s724_s3 = inlined_call_operand.vmem [shape: bf16[512,128], index: 3, kind: output, shape index: {}]  }
   0x1 LB: > { %s430_s13 = sadd.s32 4294967295, %s552_s12   ;;  %p434_p0 = scmp.ge.s32.totalorder %s552_s12, 1  ;;  %s552_s12 = sphi %s574_s12, %s13_s12  }
   0x2   : > { %p138_p1 = scmp.lt.s32.totalorder %s552_s12, 3 }
   0x4   : > { %p139_p2 = pnand %p434_p0, %p138_p1 }
   0x5   : > { %s435_s14 = sshll.u32 (!%p139_p2), %s430_s13, 5 }
   0x6   : > { %142 = sbr.rel (%p139_p2) target bundleno = 49 (0x31), region = 32  ;;  %p163_p3 = scmp.lt.s32.totalorder (!%p139_p2), %s435_s14, 63 }
   0xb   : > { %s726_s14 = smov (!%p163_p3, %s435_s14), 63  ;;  %v587_v0 = vld [vmem:[%s722_s1] ss:$0 sm:$0xff] }
   0xc   : > { %s436_s17 = sshll.u32 %s726_s14, 3  ;;  %v598_v1 = vld [vmem:[%s723_s2] ss:$0 sm:$0xff]  ;;  %s438_s23 = sshll.u32 %s726_s14, 2 }
   0xd   : > { %s593_s20 = scalar_lea.vmem %s721_s0, %s436_s17  ;;  %s630_s26 = scalar_lea.vmem %s724_s3, %s438_s23 }
   0xe   : > { %v174_v2 = vld [vmem:[%s593_s20] sm:$0xff]  ;;  %v175_v3 = vld [vmem:[%s593_s20 + $0x8] sm:$0xff]  ;;  %v176_v4 = vld [vmem:[%s593_s20 + $0x10] sm:$0xff] }
   0xf   : > { %v210_v5 = vmul.f32 %v587_v0, %v174_v2  ;;  %v211_v6 = vmul.f32 %v587_v0, %v175_v3  ;;  %v177_v7 = vld [vmem:[%s593_s20 + $0x18] sm:$0xff]  ;;  %v212_v8 = vmul.f32 %v587_v0, %v176_v4  ;;  %v178_v9 = vld [vmem:[%s593_s20 + $0x20] sm:$0xff]  ;;  %v179_v10 = vld [vmem:[%s593_s20 + $0x28] sm:$0xff] }
  0x10   : > { %v213_v11 = vmul.f32 %v587_v0, %v177_v7  ;;  %v214_v12 = vmul.f32 %v587_v0, %v178_v9  ;;  %v215_v13 = vmul.f32 %v587_v0, %v179_v10  ;;  %v180_v14 = vld [vmem:[%s593_s20 + $0x30] sm:$0xff]  ;;  %v181_v15 = vld [vmem:[%s593_s20 + $0x38] sm:$0xff]  ;;  %v182_v24 = vld [vmem:[%s593_s20 + $0x40] sm:$0xff] }
  0x11   : > { %v246_v16 = vadd.f32 %v598_v1, %v210_v5  ;;  %v247_v17 = vadd.f32 %v598_v1, %v211_v6  ;;  %v248_v18 = vadd.f32 %v598_v1, %v212_v8  ;;  %v216_v19 = vmul.f32 %v587_v0, %v180_v14  ;;  %v183_v25 = vld [vmem:[%s593_s20 + $0x48] sm:$0xff]  ;;  %v184_v30 = vld [vmem:[%s593_s20 + $0x50] sm:$0xff]  ;;  %v185_v35 = vld [vmem:[%s593_s20 + $0x58] sm:$0xff] }
  0x12   : > { %v249_v20 = vadd.f32 %v598_v1, %v213_v11  ;;  %v250_v21 = vadd.f32 %v598_v1, %v214_v12  ;;  %v251_v22 = vadd.f32 %v598_v1, %v215_v13  ;;  %v217_v23 = vmul.f32 %v587_v0, %v181_v15  ;;  %v186_v36 = vld [vmem:[%s593_s20 + $0x60] sm:$0xff]  ;;  %v187_v41 = vld [vmem:[%s593_s20 + $0x68] sm:$0xff]  ;;  %v188_v42 = vld [vmem:[%s593_s20 + $0x70] sm:$0xff] }
  0x13   : > { %v278_v26 = vmax.f32 %v246_v16, 0.0  ;;  %v279_v27 = vmax.f32 %v247_v17, 0.0  ;;  %v280_v28 = vmax.f32 %v248_v18, 0.0  ;;  %v252_v29 = vadd.f32 %v598_v1, %v216_v19  ;;  %v189_v51 = vld [vmem:[%s593_s20 + $0x78] sm:$0xff]  ;;  %v190_v56 = vld [vmem:[%s593_s20 + $0x80] sm:$0xff]  ;;  %v191_v61 = vld [vmem:[%s593_s20 + $0x88] sm:$0xff] }
  0x14   : > { %v281_v31 = vmax.f32 %v249_v20, 0.0  ;;  %v282_v32 = vmax.f32 %v250_v21, 0.0  ;;  %v283_v33 = vmax.f32 %v251_v22, 0.0  ;;  %v253_v34 = vadd.f32 %v598_v1, %v217_v23  ;;  %v192_v4 = vld [vmem:[%s593_s20 + $0x90] sm:$0xff]  ;;  %v193_v5 = vld [vmem:[%s593_s20 + $0x98] sm:$0xff]  ;;  %v194_v10 = vld [vmem:[%s593_s20 + $0xa0] sm:$0xff] }
  0x15   : > { %v444_v37 = vpack.c.bf16 %v279_v27, %v278_v26  ;;  %v284_v38 = vmax.f32 %v252_v29, 0.0  ;;  %v218_v39 = vmul.f32 %v587_v0, %v182_v24  ;;  %v219_v40 = vmul.f32 %v587_v0, %v183_v25  ;;  %v195_v15 = vld [vmem:[%s593_s20 + $0xa8] sm:$0xff]  ;;  %v196_v20 = vld [vmem:[%s593_s20 + $0xb0] sm:$0xff]  ;;  %v197_v25 = vld [vmem:[%s593_s20 + $0xb8] sm:$0xff] }
  0x16   : > { %v449_v43 = vpack.c.bf16 %v281_v31, %v280_v28  ;;  %v454_v44 = vpack.c.bf16 %v283_v33, %v282_v32  ;;  %v285_v45 = vmax.f32 %v253_v34, 0.0  ;;  %v220_v46 = vmul.f32 %v587_v0, %v184_v30  ;;  %v198_v30 = vld [vmem:[%s593_s20 + $0xc0] sm:$0xff] }
  0x17   : > { %445 = vst [vmem:[%s630_s26] sm:$0xff] %v444_v37   ;;  %v254_v47 = vadd.f32 %v598_v1, %v218_v39  ;;  %v255_v48 = vadd.f32 %v598_v1, %v219_v40  ;;  %v221_v49 = vmul.f32 %v587_v0, %v185_v35  ;;  %v222_v50 = vmul.f32 %v587_v0, %v186_v36  ;;  %v199_v35 = vld [vmem:[%s593_s20 + $0xc8] sm:$0xff]  ;;  %v200_v40 = vld [vmem:[%s593_s20 + $0xd0] sm:$0xff] }
  0x18   : > { %521 = vst [vmem:[%s630_s26 + $0x8] sm:$0xff] %v449_v43   ;;  %v459_v52 = vpack.c.bf16 %v285_v45, %v284_v38  ;;  %v256_v53 = vadd.f32 %v598_v1, %v220_v46  ;;  %v223_v54 = vmul.f32 %v587_v0, %v187_v41  ;;  %v224_v55 = vmul.f32 %v587_v0, %v188_v42  ;;  %v201_v41 = vld [vmem:[%s593_s20 + $0xd8] sm:$0xff]  ;;  %v202_v46 = vld [vmem:[%s593_s20 + $0xe0] sm:$0xff] }
  0x19   : > { %522 = vst [vmem:[%s630_s26 + $0x10] sm:$0xff] %v454_v44   ;;  %v286_v57 = vmax.f32 %v254_v47, 0.0  ;;  %v287_v58 = vmax.f32 %v255_v48, 0.0  ;;  %v257_v59 = vadd.f32 %v598_v1, %v221_v49  ;;  %v258_v60 = vadd.f32 %v598_v1, %v222_v50 }
  0x1a   : > { %523 = vst [vmem:[%s630_s26 + $0x18] sm:$0xff] %v459_v52   ;;  %v288_v62 = vmax.f32 %v256_v53, 0.0  ;;  %v259_v63 = vadd.f32 %v598_v1, %v223_v54  ;;  %v225_v2 = vmul.f32 %v587_v0, %v189_v51  ;;  %v260_v3 = vadd.f32 %v598_v1, %v224_v55  ;;  %v203_v51 = vld [vmem:[%s593_s20 + $0xe8] sm:$0xff] }
  0x1b   : > { %v464_v6 = vpack.c.bf16 %v287_v58, %v286_v57  ;;  %v289_v7 = vmax.f32 %v257_v59, 0.0  ;;  %v290_v8 = vmax.f32 %v258_v60, 0.0  ;;  %v226_v9 = vmul.f32 %v587_v0, %v190_v56  ;;  %v204_v56 = vld [vmem:[%s593_s20 + $0xf0] sm:$0xff] }
  0x1c   : > { %v291_v11 = vmax.f32 %v259_v63, 0.0  ;;  %v261_v12 = vadd.f32 %v598_v1, %v225_v2  ;;  %v292_v13 = vmax.f32 %v260_v3, 0.0  ;;  %v227_v14 = vmul.f32 %v587_v0, %v191_v61  ;;  %v205_v61 = vld [vmem:[%s593_s20 + $0xf8] sm:$0xff] }
  0x1d   : > { %524 = vst [vmem:[%s630_s26 + $0x20] sm:$0xff] %v464_v6   ;;  %v469_v16 = vpack.c.bf16 %v289_v7, %v288_v62  ;;  %v262_v17 = vadd.f32 %v598_v1, %v226_v9  ;;  %v228_v18 = vmul.f32 %v587_v0, %v192_v4  ;;  %v229_v19 = vmul.f32 %v587_v0, %v193_v5 }
  0x1e   : > { %v474_v21 = vpack.c.bf16 %v291_v11, %v290_v8  ;;  %v293_v22 = vmax.f32 %v261_v12, 0.0  ;;  %v263_v23 = vadd.f32 %v598_v1, %v227_v14  ;;  %v230_v24 = vmul.f32 %v587_v0, %v194_v10 }
  0x1f   : > { %525 = vst [vmem:[%s630_s26 + $0x28] sm:$0xff] %v469_v16   ;;  %v294_v26 = vmax.f32 %v262_v17, 0.0  ;;  %v264_v27 = vadd.f32 %v598_v1, %v228_v18  ;;  %v265_v28 = vadd.f32 %v598_v1, %v229_v19  ;;  %v231_v29 = vmul.f32 %v587_v0, %v195_v15 }
  0x20   : > { %526 = vst [vmem:[%s630_s26 + $0x30] sm:$0xff] %v474_v21   ;;  %v479_v31 = vpack.c.bf16 %v293_v22, %v292_v13  ;;  %v295_v32 = vmax.f32 %v263_v23, 0.0  ;;  %v266_v33 = vadd.f32 %v598_v1, %v230_v24  ;;  %v232_v34 = vmul.f32 %v587_v0, %v196_v20 }
  0x21   : > { %v296_v36 = vmax.f32 %v264_v27, 0.0  ;;  %v297_v37 = vmax.f32 %v265_v28, 0.0  ;;  %v267_v38 = vadd.f32 %v598_v1, %v231_v29  ;;  %v233_v39 = vmul.f32 %v587_v0, %v197_v25 }
  0x22   : > { %527 = vst [vmem:[%s630_s26 + $0x38] sm:$0xff] %v479_v31   ;;  %v484_v42 = vpack.c.bf16 %v295_v32, %v294_v26  ;;  %v298_v43 = vmax.f32 %v266_v33, 0.0  ;;  %v268_v44 = vadd.f32 %v598_v1, %v232_v34  ;;  %v234_v45 = vmul.f32 %v587_v0, %v198_v30 }
  0x23   : > { %v489_v47 = vpack.c.bf16 %v297_v37, %v296_v36  ;;  %v299_v48 = vmax.f32 %v267_v38, 0.0  ;;  %v269_v49 = vadd.f32 %v598_v1, %v233_v39  ;;  %v235_v50 = vmul.f32 %v587_v0, %v199_v35 }
  0x24   : > { %528 = vst [vmem:[%s630_s26 + $0x40] sm:$0xff] %v484_v42   ;;  %v300_v52 = vmax.f32 %v268_v44, 0.0  ;;  %v270_v53 = vadd.f32 %v598_v1, %v234_v45  ;;  %v236_v54 = vmul.f32 %v587_v0, %v200_v40  ;;  %v237_v55 = vmul.f32 %v587_v0, %v201_v41 }
  0x25   : > { %529 = vst [vmem:[%s630_s26 + $0x48] sm:$0xff] %v489_v47   ;;  %v494_v57 = vpack.c.bf16 %v299_v48, %v298_v43  ;;  %v301_v58 = vmax.f32 %v269_v49, 0.0  ;;  %v271_v59 = vadd.f32 %v598_v1, %v235_v50  ;;  %v238_v60 = vmul.f32 %v587_v0, %v202_v46 }
  0x26   : > { %v302_v62 = vmax.f32 %v270_v53, 0.0  ;;  %v272_v63 = vadd.f32 %v598_v1, %v236_v54  ;;  %v273_v2 = vadd.f32 %v598_v1, %v237_v55  ;;  %v239_v3 = vmul.f32 %v587_v0, %v203_v51 }
  0x27   : > { %530 = vst [vmem:[%s630_s26 + $0x50] sm:$0xff] %v494_v57   ;;  %v499_v4 = vpack.c.bf16 %v301_v58, %v300_v52  ;;  %v303_v5 = vmax.f32 %v271_v59, 0.0  ;;  %v274_v6 = vadd.f32 %v598_v1, %v238_v60  ;;  %v240_v7 = vmul.f32 %v587_v0, %v204_v56 }
  0x28   : > { %v304_v8 = vmax.f32 %v272_v63, 0.0  ;;  %v305_v9 = vmax.f32 %v273_v2, 0.0  ;;  %v275_v10 = vadd.f32 %v598_v1, %v239_v3  ;;  %v241_v11 = vmul.f32 %v587_v0, %v205_v61 }
  0x29   : > { %531 = vst [vmem:[%s630_s26 + $0x58] sm:$0xff] %v499_v4   ;;  %v504_v12 = vpack.c.bf16 %v303_v5, %v302_v62  ;;  %v306_v13 = vmax.f32 %v274_v6, 0.0  ;;  %v276_v14 = vadd.f32 %v598_v1, %v240_v7 }
  0x2a   : > { %v509_v15 = vpack.c.bf16 %v305_v9, %v304_v8  ;;  %v307_v16 = vmax.f32 %v275_v10, 0.0  ;;  %v277_v17 = vadd.f32 %v598_v1, %v241_v11 }
  0x2b   : > { %532 = vst [vmem:[%s630_s26 + $0x60] sm:$0xff] %v504_v12   ;;  %v308_v18 = vmax.f32 %v276_v14, 0.0 }
  0x2c   : > { %533 = vst [vmem:[%s630_s26 + $0x68] sm:$0xff] %v509_v15   ;;  %v514_v19 = vpack.c.bf16 %v307_v16, %v306_v13  ;;  %v309_v20 = vmax.f32 %v277_v17, 0.0 }
  0x2e   : > { %534 = vst [vmem:[%s630_s26 + $0x70] sm:$0xff] %v514_v19   ;;  %v519_v21 = vpack.c.bf16 %v309_v20, %v308_v18 }
  0x30   : > { %535 = vst [vmem:[%s630_s26 + $0x78] sm:$0xff] %v519_v21  }
  0x31 PF: > { %s13_s12 = sadd.s32 1, %s552_s12  }
  0x32   : > { %p10_p4 = scmp.ge.s32.totalorder %s13_s12, 4  }
  0x34   :  { %12 = sbr.rel (!%p10_p4) target bundleno = 1 (0x1), region = 62 }

// kernel: basic_block_forward.7
= control target key start
LH: loop header
LB: loop body
LE: loop exit
PB: predicated region body
PF: predicated region fallthrough
CT: control target
= control target key end

     0   :  { %s579_s15 = smov 0   ;;  %s780_s0 = inlined_call_operand.vmem [shape: f32[512,128], index: 0, kind: input, shape index: {}]   ;;  %s781_s1 = inlined_call_operand.vmem [shape: f32[512,128], index: 1, kind: input, shape index: {}]   ;;  %s782_s2 = inlined_call_operand.vmem [shape: f32[1,128], index: 2, kind: input, shape index: {}]   ;;  %s783_s3 = inlined_call_operand.vmem [shape: f32[1,128], index: 3, kind: input, shape index: {}]   ;;  %s784_s4 = inlined_call_operand.vmem [shape: f32[512,128], index: 4, kind: output, shape index: {}]  }
   0x1 LB: > { %s523_s16 = sadd.s32 4294967295, %s552_s15   ;;  %p527_p0 = scmp.ge.s32.totalorder %s552_s15, 1  ;;  %s552_s15 = sphi %s579_s15, %s14_s15  }
   0x2   : > { %p174_p1 = scmp.lt.s32.totalorder %s552_s15, 3 }
   0x4   : > { %p175_p2 = pnand %p527_p0, %p174_p1 }
   0x5   : > { %s528_s17 = sshll.u32 (!%p175_p2), %s523_s16, 5 }
   0x6   : > { %178 = sbr.rel (%p175_p2) target bundleno = 55 (0x37), region = 36  ;;  %p206_p3 = scmp.lt.s32.totalorder (!%p175_p2), %s528_s17, 63 }
   0xb   : > { %s786_s17 = smov (!%p206_p3, %s528_s17), 63  ;;  %v590_v0 = vld [vmem:[%s782_s2] ss:$0 sm:$0xff] }
   0xc   : > { %s592_s20 = sshll.u32 %s786_s17, 3  ;;  %v609_v1 = vld [vmem:[%s783_s3] ss:$0 sm:$0xff] }
   0xd   : > { %s598_s23 = scalar_lea.vmem %s780_s0, %s592_s20  ;;  %s604_s26 = scalar_lea.vmem %s781_s1, %s592_s20 }
   0xe   : > { %v223_v2 = vld [vmem:[%s598_s23] sm:$0xff]  ;;  %v224_v3 = vld [vmem:[%s598_s23 + $0x8] sm:$0xff]  ;;  %v225_v7 = vld [vmem:[%s598_s23 + $0x10] sm:$0xff]  ;;  %s640_s5 = scalar_lea.vmem %s784_s4, %s592_s20 }
   0xf   : > { %v259_v4 = vmul.f32 %v590_v0, %v223_v2  ;;  %v327_v5 = vld [vmem:[%s604_s26] sm:$0xff]  ;;  %v260_v6 = vmul.f32 %v590_v0, %v224_v3  ;;  %v328_v8 = vld [vmem:[%s604_s26 + $0x8] sm:$0xff]  ;;  %v261_v9 = vmul.f32 %v590_v0, %v225_v7  ;;  %v226_v10 = vld [vmem:[%s598_s23 + $0x18] sm:$0xff] }
  0x10   : > { %v227_v11 = vld [vmem:[%s598_s23 + $0x20] sm:$0xff]  ;;  %v329_v14 = vld [vmem:[%s604_s26 + $0x10] sm:$0xff]  ;;  %v262_v15 = vmul.f32 %v590_v0, %v226_v10  ;;  %v330_v16 = vld [vmem:[%s604_s26 + $0x18] sm:$0xff] }
  0x11   : > { %v295_v12 = vadd.f32 %v609_v1, %v259_v4  ;;  %v296_v13 = vadd.f32 %v609_v1, %v260_v6  ;;  %v263_v17 = vmul.f32 %v590_v0, %v227_v11  ;;  %v228_v18 = vld [vmem:[%s598_s23 + $0x28] sm:$0xff]  ;;  %v297_v19 = vadd.f32 %v609_v1, %v261_v9  ;;  %v331_v20 = vld [vmem:[%s604_s26 + $0x20] sm:$0xff]  ;;  %v229_v22 = vld [vmem:[%s598_s23 + $0x30] sm:$0xff] }
  0x12   : > { %v264_v21 = vmul.f32 %v590_v0, %v228_v18  ;;  %v230_v23 = vld [vmem:[%s598_s23 + $0x38] sm:$0xff]  ;;  %v298_v26 = vadd.f32 %v609_v1, %v262_v15  ;;  %v332_v28 = vld [vmem:[%s604_s26 + $0x28] sm:$0xff]  ;;  %v265_v31 = vmul.f32 %v590_v0, %v229_v22  ;;  %v231_v33 = vld [vmem:[%s598_s23 + $0x40] sm:$0xff] }
  0x13   : > { %v359_v24 = vadd.f32 %v327_v5, %v295_v12  ;;  %v360_v25 = vadd.f32 %v328_v8, %v296_v13  ;;  %v299_v27 = vadd.f32 %v609_v1, %v263_v17  ;;  %v361_v29 = vadd.f32 %v329_v14, %v297_v19  ;;  %v232_v34 = vld [vmem:[%s598_s23 + $0x48] sm:$0xff]  ;;  %v333_v39 = vld [vmem:[%s604_s26 + $0x30] sm:$0xff]  ;;  %v334_v40 = vld [vmem:[%s604_s26 + $0x38] sm:$0xff] }
  0x14   : > { %v300_v30 = vadd.f32 %v609_v1, %v264_v21  ;;  %v266_v32 = vmul.f32 %v590_v0, %v230_v23  ;;  %v362_v37 = vadd.f32 %v330_v16, %v298_v26  ;;  %v233_v41 = vld [vmem:[%s598_s23 + $0x50] sm:$0xff]  ;;  %v301_v44 = vadd.f32 %v609_v1, %v265_v31  ;;  %v234_v46 = vld [vmem:[%s598_s23 + $0x58] sm:$0xff]  ;;  %v235_v47 = vld [vmem:[%s598_s23 + $0x60] sm:$0xff] }
  0x15   : > { %v391_v35 = vmax.f32 %v359_v24, 0.0  ;;  %v392_v36 = vmax.f32 %v360_v25, 0.0  ;;  %v363_v38 = vadd.f32 %v331_v20, %v299_v27  ;;  %v393_v42 = vmax.f32 %v361_v29, 0.0  ;;  %v236_v52 = vld [vmem:[%s598_s23 + $0x68] sm:$0xff]  ;;  %v335_v56 = vld [vmem:[%s604_s26 + $0x40] sm:$0xff]  ;;  %v337_v61 = vld [vmem:[%s604_s26 + $0x50] sm:$0xff] }
  0x16   : > { %v364_v43 = vadd.f32 %v332_v28, %v300_v30  ;;  %v302_v45 = vadd.f32 %v609_v1, %v266_v32  ;;  %v394_v48 = vmax.f32 %v362_v37, 0.0  ;;  %v267_v50 = vmul.f32 %v590_v0, %v231_v33  ;;  %v336_v57 = vld [vmem:[%s604_s26 + $0x48] sm:$0xff]  ;;  %v237_v2 = vld [vmem:[%s598_s23 + $0x70] sm:$0xff]  ;;  %v238_v3 = vld [vmem:[%s598_s23 + $0x78] sm:$0xff] }
  0x17   : > { %423 = vst [vmem:[%s640_s5] sm:$0xff] %v391_v35  ;;  %v395_v49 = vmax.f32 %v363_v38, 0.0  ;;  %v268_v51 = vmul.f32 %v590_v0, %v232_v34  ;;  %v365_v54 = vadd.f32 %v333_v39, %v301_v44  ;;  %v269_v58 = vmul.f32 %v590_v0, %v233_v41  ;;  %v338_v7 = vld [vmem:[%s604_s26 + $0x58] sm:$0xff]  ;;  %v339_v8 = vld [vmem:[%s604_s26 + $0x60] sm:$0xff]  ;;  %v340_v14 = vld [vmem:[%s604_s26 + $0x68] sm:$0xff] }
  0x18   : > { %424 = vst [vmem:[%s640_s5 + $0x8] sm:$0xff] %v392_v36  ;;  %v396_v53 = vmax.f32 %v364_v43, 0.0  ;;  %v366_v55 = vadd.f32 %v334_v40, %v302_v45  ;;  %v303_v59 = vadd.f32 %v609_v1, %v267_v50  ;;  %v270_v62 = vmul.f32 %v590_v0, %v234_v46  ;;  %v239_v19 = vld [vmem:[%s598_s23 + $0x80] sm:$0xff]  ;;  %v240_v20 = vld [vmem:[%s598_s23 + $0x88] sm:$0xff]  ;;  %v341_v25 = vld [vmem:[%s604_s26 + $0x70] sm:$0xff] }
  0x19   : > { %425 = vst [vmem:[%s640_s5 + $0x10] sm:$0xff] %v393_v42  ;;  %v304_v60 = vadd.f32 %v609_v1, %v268_v51  ;;  %v271_v63 = vmul.f32 %v590_v0, %v235_v47  ;;  %v397_v4 = vmax.f32 %v365_v54, 0.0  ;;  %v305_v6 = vadd.f32 %v609_v1, %v269_v58  ;;  %v342_v26 = vld [vmem:[%s604_s26 + $0x78] sm:$0xff]  ;;  %v241_v27 = vld [vmem:[%s598_s23 + $0x90] sm:$0xff]  ;;  %v243_v33 = vld [vmem:[%s598_s23 + $0xa0] sm:$0xff] }
  0x1a   : > { %426 = vst [vmem:[%s640_s5 + $0x18] sm:$0xff] %v394_v48  ;;  %v398_v5 = vmax.f32 %v366_v55, 0.0  ;;  %v272_v9 = vmul.f32 %v590_v0, %v236_v52  ;;  %v367_v10 = vadd.f32 %v335_v56, %v303_v59  ;;  %v306_v12 = vadd.f32 %v609_v1, %v270_v62  ;;  %v242_v32 = vld [vmem:[%s598_s23 + $0x98] sm:$0xff]  ;;  %v244_v38 = vld [vmem:[%s598_s23 + $0xa8] sm:$0xff]  ;;  %v343_v42 = vld [vmem:[%s604_s26 + $0x80] sm:$0xff] }
  0x1b   : > { %427 = vst [vmem:[%s640_s5 + $0x20] sm:$0xff] %v395_v49  ;;  %v368_v11 = vadd.f32 %v336_v57, %v304_v60  ;;  %v307_v13 = vadd.f32 %v609_v1, %v271_v63  ;;  %v369_v15 = vadd.f32 %v337_v61, %v305_v6  ;;  %v273_v17 = vmul.f32 %v590_v0, %v237_v2  ;;  %v344_v43 = vld [vmem:[%s604_s26 + $0x88] sm:$0xff]  ;;  %v345_v47 = vld [vmem:[%s604_s26 + $0x90] sm:$0xff]  ;;  %v246_v51 = vld [vmem:[%s598_s23 + $0xb8] sm:$0xff] }
  0x1c   : > { %428 = vst [vmem:[%s640_s5 + $0x28] sm:$0xff] %v396_v53  ;;  %v308_v16 = vadd.f32 %v609_v1, %v272_v9  ;;  %v274_v18 = vmul.f32 %v590_v0, %v238_v3  ;;  %v399_v21 = vmax.f32 %v367_v10, 0.0  ;;  %v370_v23 = vadd.f32 %v338_v7, %v306_v12  ;;  %v245_v50 = vld [vmem:[%s598_s23 + $0xb0] sm:$0xff]  ;;  %v346_v55 = vld [vmem:[%s604_s26 + $0x98] sm:$0xff]  ;;  %v347_v56 = vld [vmem:[%s604_s26 + $0xa0] sm:$0xff] }
  0x1d   : > { %429 = vst [vmem:[%s640_s5 + $0x30] sm:$0xff] %v397_v4  ;;  %v400_v22 = vmax.f32 %v368_v11, 0.0  ;;  %v371_v24 = vadd.f32 %v339_v8, %v307_v13  ;;  %v401_v28 = vmax.f32 %v369_v15, 0.0  ;;  %v309_v30 = vadd.f32 %v609_v1, %v273_v17  ;;  %v348_v62 = vld [vmem:[%s604_s26 + $0xa8] sm:$0xff]  ;;  %v349_v11 = vld [vmem:[%s604_s26 + $0xb0] sm:$0xff]  ;;  %v350_v12 = vld [vmem:[%s604_s26 + $0xb8] sm:$0xff] }
  0x1e   : > { %430 = vst [vmem:[%s640_s5 + $0x38] sm:$0xff] %v398_v5  ;;  %v372_v29 = vadd.f32 %v340_v14, %v308_v16  ;;  %v310_v31 = vadd.f32 %v609_v1, %v274_v18  ;;  %v402_v34 = vmax.f32 %v370_v23, 0.0  ;;  %v275_v36 = vmul.f32 %v590_v0, %v239_v19  ;;  %v247_v5 = vld [vmem:[%s598_s23 + $0xc0] sm:$0xff]  ;;  %v248_v6 = vld [vmem:[%s598_s23 + $0xc8] sm:$0xff]  ;;  %v249_v13 = vld [vmem:[%s598_s23 + $0xd0] sm:$0xff] }
  0x1f   : > { %431 = vst [vmem:[%s640_s5 + $0x40] sm:$0xff] %v399_v21  ;;  %v403_v35 = vmax.f32 %v371_v24, 0.0  ;;  %v276_v37 = vmul.f32 %v590_v0, %v240_v20  ;;  %v373_v40 = vadd.f32 %v341_v25, %v309_v30  ;;  %v277_v44 = vmul.f32 %v590_v0, %v241_v27  ;;  %v250_v18 = vld [vmem:[%s598_s23 + $0xd8] sm:$0xff]  ;;  %v251_v19 = vld [vmem:[%s598_s23 + $0xe0] sm:$0xff]  ;;  %v252_v24 = vld [vmem:[%s598_s23 + $0xe8] sm:$0xff] }
  0x20   : > { %432 = vst [vmem:[%s640_s5 + $0x48] sm:$0xff] %v400_v22  ;;  %v404_v39 = vmax.f32 %v372_v29, 0.0  ;;  %v374_v41 = vadd.f32 %v342_v26, %v310_v31  ;;  %v311_v45 = vadd.f32 %v609_v1, %v275_v36  ;;  %v278_v48 = vmul.f32 %v590_v0, %v242_v32  ;;  %v352_v29 = vld [vmem:[%s604_s26 + $0xc8] sm:$0xff]  ;;  %v253_v36 = vld [vmem:[%s598_s23 + $0xf0] sm:$0xff] }
  0x21   : > { %433 = vst [vmem:[%s640_s5 + $0x50] sm:$0xff] %v401_v28  ;;  %v312_v46 = vadd.f32 %v609_v1, %v276_v37  ;;  %v279_v49 = vmul.f32 %v590_v0, %v243_v33  ;;  %v405_v52 = vmax.f32 %v373_v40, 0.0  ;;  %v313_v54 = vadd.f32 %v609_v1, %v277_v44  ;;  %v351_v28 = vld [vmem:[%s604_s26 + $0xc0] sm:$0xff]  ;;  %v353_v33 = vld [vmem:[%s604_s26 + $0xd0] sm:$0xff]  ;;  %v254_v37 = vld [vmem:[%s598_s23 + $0xf8] sm:$0xff] }
  0x22   : > { %434 = vst [vmem:[%s640_s5 + $0x58] sm:$0xff] %v402_v34  ;;  %v406_v53 = vmax.f32 %v374_v41, 0.0  ;;  %v280_v57 = vmul.f32 %v590_v0, %v244_v38  ;;  %v375_v58 = vadd.f32 %v343_v42, %v311_v45  ;;  %v314_v60 = vadd.f32 %v609_v1, %v278_v48  ;;  %v354_v41 = vld [vmem:[%s604_s26 + $0xd8] sm:$0xff]  ;;  %v355_v42 = vld [vmem:[%s604_s26 + $0xe0] sm:$0xff]  ;;  %v356_v48 = vld [vmem:[%s604_s26 + $0xe8] sm:$0xff] }
  0x23   : > { %435 = vst [vmem:[%s640_s5 + $0x60] sm:$0xff] %v403_v35  ;;  %v376_v59 = vadd.f32 %v344_v43, %v312_v46  ;;  %v315_v61 = vadd.f32 %v609_v1, %v279_v49  ;;  %v377_v63 = vadd.f32 %v345_v47, %v313_v54  ;;  %v281_v3 = vmul.f32 %v590_v0, %v245_v50 }
  0x24   : > { %436 = vst [vmem:[%s640_s5 + $0x68] sm:$0xff] %v404_v39  ;;  %v316_v2 = vadd.f32 %v609_v1, %v280_v57  ;;  %v282_v4 = vmul.f32 %v590_v0, %v246_v51  ;;  %v407_v7 = vmax.f32 %v375_v58, 0.0  ;;  %v378_v9 = vadd.f32 %v346_v55, %v314_v60  ;;  %v357_v57 = vld [vmem:[%s604_s26 + $0xf0] sm:$0xff]  ;;  %v358_v58 = vld [vmem:[%s604_s26 + $0xf8] sm:$0xff] }
  0x25   : > { %437 = vst [vmem:[%s640_s5 + $0x70] sm:$0xff] %v405_v52  ;;  %v408_v8 = vmax.f32 %v376_v59, 0.0  ;;  %v379_v10 = vadd.f32 %v347_v56, %v315_v61  ;;  %v409_v14 = vmax.f32 %v377_v63, 0.0  ;;  %v317_v16 = vadd.f32 %v609_v1, %v281_v3 }
  0x26   : > { %438 = vst [vmem:[%s640_s5 + $0x78] sm:$0xff] %v406_v53  ;;  %v380_v15 = vadd.f32 %v348_v62, %v316_v2  ;;  %v318_v17 = vadd.f32 %v609_v1, %v282_v4  ;;  %v410_v20 = vmax.f32 %v378_v9, 0.0  ;;  %v283_v22 = vmul.f32 %v590_v0, %v247_v5 }
  0x27   : > { %439 = vst [vmem:[%s640_s5 + $0x80] sm:$0xff] %v407_v7  ;;  %v411_v21 = vmax.f32 %v379_v10, 0.0  ;;  %v284_v23 = vmul.f32 %v590_v0, %v248_v6  ;;  %v381_v26 = vadd.f32 %v349_v11, %v317_v16  ;;  %v285_v30 = vmul.f32 %v590_v0, %v249_v13 }
  0x28   : > { %440 = vst [vmem:[%s640_s5 + $0x88] sm:$0xff] %v408_v8  ;;  %v412_v25 = vmax.f32 %v380_v15, 0.0  ;;  %v382_v27 = vadd.f32 %v350_v12, %v318_v17  ;;  %v319_v31 = vadd.f32 %v609_v1, %v283_v22  ;;  %v286_v34 = vmul.f32 %v590_v0, %v250_v18 }
  0x29   : > { %441 = vst [vmem:[%s640_s5 + $0x90] sm:$0xff] %v409_v14  ;;  %v320_v32 = vadd.f32 %v609_v1, %v284_v23  ;;  %v287_v35 = vmul.f32 %v590_v0, %v251_v19  ;;  %v413_v38 = vmax.f32 %v381_v26, 0.0  ;;  %v321_v40 = vadd.f32 %v609_v1, %v285_v30 }
  0x2a   : > { %442 = vst [vmem:[%s640_s5 + $0x98] sm:$0xff] %v410_v20  ;;  %v414_v39 = vmax.f32 %v382_v27, 0.0  ;;  %v288_v43 = vmul.f32 %v590_v0, %v252_v24  ;;  %v383_v44 = vadd.f32 %v351_v28, %v319_v31  ;;  %v322_v46 = vadd.f32 %v609_v1, %v286_v34 }
  0x2b   : > { %443 = vst [vmem:[%s640_s5 + $0xa0] sm:$0xff] %v411_v21  ;;  %v384_v45 = vadd.f32 %v352_v29, %v320_v32  ;;  %v323_v47 = vadd.f32 %v609_v1, %v287_v35  ;;  %v385_v49 = vadd.f32 %v353_v33, %v321_v40  ;;  %v289_v51 = vmul.f32 %v590_v0, %v253_v36 }
  0x2c   : > { %444 = vst [vmem:[%s640_s5 + $0xa8] sm:$0xff] %v412_v25  ;;  %v324_v50 = vadd.f32 %v609_v1, %v288_v43  ;;  %v290_v52 = vmul.f32 %v590_v0, %v254_v37  ;;  %v415_v53 = vmax.f32 %v383_v44, 0.0  ;;  %v386_v55 = vadd.f32 %v354_v41, %v322_v46 }
  0x2d   : > { %445 = vst [vmem:[%s640_s5 + $0xb0] sm:$0xff] %v413_v38  ;;  %v416_v54 = vmax.f32 %v384_v45, 0.0  ;;  %v387_v56 = vadd.f32 %v355_v42, %v323_v47  ;;  %v417_v59 = vmax.f32 %v385_v49, 0.0  ;;  %v325_v61 = vadd.f32 %v609_v1, %v289_v51 }
  0x2e   : > { %446 = vst [vmem:[%s640_s5 + $0xb8] sm:$0xff] %v414_v39  ;;  %v388_v60 = vadd.f32 %v356_v48, %v324_v50  ;;  %v326_v0 = vadd.f32 %v609_v1, %v290_v52  ;;  %v418_v62 = vmax.f32 %v386_v55, 0.0 }
  0x2f   : > { %447 = vst [vmem:[%s640_s5 + $0xc0] sm:$0xff] %v415_v53  ;;  %v419_v63 = vmax.f32 %v387_v56, 0.0  ;;  %v389_v3 = vadd.f32 %v357_v57, %v325_v61 }
  0x30   : > { %448 = vst [vmem:[%s640_s5 + $0xc8] sm:$0xff] %v416_v54  ;;  %v420_v2 = vmax.f32 %v388_v60, 0.0  ;;  %v390_v4 = vadd.f32 %v358_v58, %v326_v0 }
  0x31   : > { %449 = vst [vmem:[%s640_s5 + $0xd0] sm:$0xff] %v417_v59  ;;  %v421_v5 = vmax.f32 %v389_v3, 0.0 }
  0x32   : > { %450 = vst [vmem:[%s640_s5 + $0xd8] sm:$0xff] %v418_v62  ;;  %v422_v6 = vmax.f32 %v390_v4, 0.0 }
  0x33   : > { %451 = vst [vmem:[%s640_s5 + $0xe0] sm:$0xff] %v419_v63 }
  0x34   : > { %452 = vst [vmem:[%s640_s5 + $0xe8] sm:$0xff] %v420_v2 }
  0x35   : > { %453 = vst [vmem:[%s640_s5 + $0xf0] sm:$0xff] %v421_v5 }
  0x36   : > { %454 = vst [vmem:[%s640_s5 + $0xf8] sm:$0xff] %v422_v6 }
  0x37 PF: > { %s14_s15 = sadd.s32 1, %s552_s15  }
  0x38   : > { %p11_p4 = scmp.ge.s32.totalorder %s14_s15, 4  }
  0x3a   :  { %13 = sbr.rel (!%p11_p4) target bundleno = 1 (0x1), region = 69 }

// kernel: basic_block_forward.4
= control target key start
LH: loop header
LB: loop body
LE: loop exit
PB: predicated region body
PF: predicated region fallthrough
CT: control target
= control target key end

     0   :  { %s3846_s12 = smov 0   ;;  %s4607_s0 = inlined_call_operand.vmem [shape: bf16[512,1152], index: 0, kind: input, shape index: {}]   ;;  %s4608_s1 = inlined_call_operand.vmem [shape: bf16[1152,128], index: 1, kind: input, shape index: {}]   ;;  %s4609_s2 = inlined_call_operand.vmem [shape: f32[512,128], index: 2, kind: output, shape index: {0}]   ;;  %s4610_s3 = inlined_call_operand.vmem [shape: f32[16,128], index: 3, kind: output, shape index: {1}]  }
   0x1 LB: > { %s3852_s13 = sadd.s32 4294967295, %s3824_s12   ;;  %p2697_p0 = scmp.ge.s32.totalorder %s3824_s12, 1  ;;  %s3824_s12 = sphi %s3846_s12, %s14_s12  }
   0x2   : > { %p142_p1 = scmp.lt.s32.totalorder %s3824_s12, 3 }
   0x4   : > { %p143_p2 = pnand %p2697_p0, %p142_p1 }
   0x5   : > { %s2698_s20 = sshll.u32 (!%p143_p2), %s3852_s13, 5  ;;  %p184_p4 = scmp.lt.s32.totalorder (!%p143_p2), %s3852_s13, 1 }
   0x6   : > { %146 = sbr.rel (%p143_p2) target bundleno = 768 (0x300), region = 28  ;;  %p172_p3 = scmp.lt.s32.totalorder (!%p143_p2), %s2698_s20, 63 }
   0xb   : > { %v3720_v0 = vld [vmem:[%s4608_s1 + $0x38] sm:$0xff]  ;;  %v3719_v1 = vld [vmem:[%s4608_s1 + $0x30] sm:$0xff]  ;;  %v3718_v2 = vld [vmem:[%s4608_s1 + $0x28] sm:$0xff]  ;;  %s4612_s20 = smov (!%p172_p3, %s2698_s20), 63  ;;  %s4614_s13 = smov (!%p184_p4, %s3852_s13), 1 }
   0xc   : > { %3785 = vmatpush.bf16.msra.mxu1 %v3720_v0  ;;  %3786 = vmatpush.bf16.msra.mxu2 %v3720_v0  ;;  %v3717_v3 = vld [vmem:[%s4608_s1 + $0x20] sm:$0xff]  ;;  %v3716_v4 = vld [vmem:[%s4608_s1 + $0x18] sm:$0xff]  ;;  %v3715_v5 = vld [vmem:[%s4608_s1 + $0x10] sm:$0xff]  ;;  %s3809_s27 = smul.u32 36, %s4612_s20  ;;  %s2701_s24 = sshll.u32 %s4612_s20, 3 }
   0xd   : > { %3787 = vmatpush.bf16.msra.mxu3 %v3720_v0  ;;  %1660 = vmatpush.bf16.msra.mxu0 %v3720_v0  ;;  %v3714_v6 = vld [vmem:[%s4608_s1 + $0x8] sm:$0xff]  ;;  %v3713_v7 = vld [vmem:[%s4608_s1] sm:$0xff]  ;;  %v3736_v16 = vld [vmem:[%s4608_s1 + $0xb8] sm:$0xff]  ;;  %s2702_s20 = sshll.u32 %s4614_s13, 3 }
   0xe   : > { %s3884_s5 = scalar_lea.vmem %s4607_s0, %s3809_s27  ;;  %v3744_v17 = vld [vmem:[%s4608_s1 + $0xf8] sm:$0xff]  ;;  %v3735_v24 = vld [vmem:[%s4608_s1 + $0xb0] sm:$0xff]  ;;  %v3734_v28 = vld [vmem:[%s4608_s1 + $0xa8] sm:$0xff]  ;;  %s4478_s27 = scalar_lea.vmem %s4609_s2, %s2701_s24 }
   0xf   : > { %v2849_v8 = vld [vmem:[%s3884_s5 + $0x120] sm:$0xf]  ;;  %v3609_v9 = vld [vmem:[%s3884_s5 + $0x140] sm:$0xf0]  ;;  %v3728_v22 = vld [vmem:[%s4608_s1 + $0x78] sm:$0xff]  ;;  %s187_s29 = scalar_lea.vmem %s4610_s3, %s2702_s20 }
  0x10   : > { %3788 = vmatpush.bf16.msra.mxu1 %v3719_v1  ;;  %3789 = vmatpush.bf16.msra.mxu2 %v3719_v1  ;;  %v2993_v10 = vld [vmem:[%s3884_s5 + $0x240] sm:$0xf]  ;;  %v3645_v11 = vld [vmem:[%s3884_s5 + $0x260] sm:$0xf0]  ;;  %v2850_v18 = vor.u32 %v3609_v9, %v2849_v8  ;;  %v3752_v23 = vld [vmem:[%s4608_s1 + $0x138] sm:$0xff] }
  0x11   : > { %3790 = vmatpush.bf16.msra.mxu3 %v3719_v1  ;;  %1661 = vmatpush.bf16.msra.mxu0 %v3719_v1  ;;  %v3137_v12 = vld [vmem:[%s3884_s5 + $0x360] sm:$0xf]  ;;  %v3681_v13 = vld [vmem:[%s3884_s5 + $0x380] sm:$0xf0]  ;;  %v2994_v19 = vor.u32 %v3645_v11, %v2993_v10  ;;  %v3743_v25 = vld [vmem:[%s4608_s1 + $0xf0] sm:$0xff] }
  0x12   : > { %v2705_v14 = vld [vmem:[%s3884_s5] sm:$0xf]  ;;  %v3573_v15 = vld [vmem:[%s3884_s5 + $0x20] sm:$0xf0]  ;;  %v3138_v20 = vor.u32 %v3681_v13, %v3137_v12  ;;  %v3727_v26 = vld [vmem:[%s4608_s1 + $0x70] sm:$0xff] }
  0x13   : > { %v2706_v21 = vor.u32 %v3573_v15, %v2705_v14  ;;  %v3751_v27 = vld [vmem:[%s4608_s1 + $0x130] sm:$0xff]  ;;  %v3742_v29 = vld [vmem:[%s4608_s1 + $0xe8] sm:$0xff]  ;;  %v3733_v33 = vld [vmem:[%s4608_s1 + $0xa0] sm:$0xff] }
  0x14   : > { %3791 = vmatpush.bf16.msra.mxu1 %v3718_v2  ;;  %3792 = vmatpush.bf16.msra.mxu2 %v3718_v2  ;;  %v3726_v30 = vld [vmem:[%s4608_s1 + $0x68] sm:$0xff]  ;;  %v3741_v34 = vld [vmem:[%s4608_s1 + $0xe0] sm:$0xff]  ;;  %v3732_v44 = vld [vmem:[%s4608_s1 + $0x98] sm:$0xff] }
  0x15   : > { %3793 = vmatpush.bf16.msra.mxu3 %v3718_v2  ;;  %1662 = vmatpush.bf16.msra.mxu0 %v3718_v2  ;;  %v3750_v31 = vld [vmem:[%s4608_s1 + $0x128] sm:$0xff]  ;;  %v3725_v42 = vld [vmem:[%s4608_s1 + $0x60] sm:$0xff]  ;;  %v3740_v45 = vld [vmem:[%s4608_s1 + $0xd8] sm:$0xff] }
  0x16   : > { %v2885_v32 = vld [vmem:[%s3884_s5 + $0x168] sm:$0xf]  ;;  %v3618_v35 = vld [vmem:[%s3884_s5 + $0x188] sm:$0xf0]  ;;  %v3749_v43 = vld [vmem:[%s4608_s1 + $0x120] sm:$0xff] }
  0x17   : > { %v3029_v36 = vld [vmem:[%s3884_s5 + $0x288] sm:$0xf]  ;;  %v3654_v37 = vld [vmem:[%s3884_s5 + $0x2a8] sm:$0xf0]  ;;  %v2886_v46 = vor.u32 %v3618_v35, %v2885_v32  ;;  %v3724_v50 = vld [vmem:[%s4608_s1 + $0x58] sm:$0xff] }
  0x18   : > { %3794 = vmatpush.bf16.msra.mxu1 %v3717_v3  ;;  %3795 = vmatpush.bf16.msra.mxu2 %v3717_v3  ;;  %v3173_v38 = vld [vmem:[%s3884_s5 + $0x3a8] sm:$0xf]  ;;  %v3690_v39 = vld [vmem:[%s3884_s5 + $0x3c8] sm:$0xf0]  ;;  %v3030_v47 = vor.u32 %v3654_v37, %v3029_v36  ;;  %v3748_v51 = vld [vmem:[%s4608_s1 + $0x118] sm:$0xff] }
  0x19   : > { %3796 = vmatpush.bf16.msra.mxu3 %v3717_v3  ;;  %1663 = vmatpush.bf16.msra.mxu0 %v3717_v3  ;;  %v2741_v40 = vld [vmem:[%s3884_s5 + $0x48] sm:$0xf]  ;;  %v3582_v41 = vld [vmem:[%s3884_s5 + $0x68] sm:$0xf0]  ;;  %v3174_v48 = vor.u32 %v3690_v39, %v3173_v38  ;;  %v3731_v52 = vld [vmem:[%s4608_s1 + $0x90] sm:$0xff] }
  0x1a   : > { %v2742_v49 = vor.u32 %v3582_v41, %v2741_v40  ;;  %v3739_v53 = vld [vmem:[%s4608_s1 + $0xd0] sm:$0xff]  ;;  %v3730_v56 = vld [vmem:[%s4608_s1 + $0x88] sm:$0xff]  ;;  %v3729_v61 = vld [vmem:[%s4608_s1 + $0x80] sm:$0xff] }
  0x1b   : > { %v3723_v54 = vld [vmem:[%s4608_s1 + $0x50] sm:$0xff]  ;;  %v3738_v57 = vld [vmem:[%s4608_s1 + $0xc8] sm:$0xff]  ;;  %v3737_v62 = vld [vmem:[%s4608_s1 + $0xc0] sm:$0xff] }
  0x1c   : > { %3797 = vmatpush.bf16.msra.mxu1 %v3716_v4  ;;  %3798 = vmatpush.bf16.msra.mxu2 %v3716_v4  ;;  %v3747_v55 = vld [vmem:[%s4608_s1 + $0x110] sm:$0xff]  ;;  %v3722_v58 = vld [vmem:[%s4608_s1 + $0x48] sm:$0xff]  ;;  %v3768_v12 = vld [vmem:[%s4608_s1 + $0x1b8] sm:$0xff] }
  0x1d   : > { %3799 = vmatpush.bf16.msra.mxu3 %v3716_v4  ;;  %1664 = vmatpush.bf16.msra.mxu0 %v3716_v4  ;;  %v3746_v59 = vld [vmem:[%s4608_s1 + $0x108] sm:$0xff]  ;;  %v2921_v60 = vld [vmem:[%s3884_s5 + $0x1b0] sm:$0xf]  ;;  %v3627_v63 = vld [vmem:[%s3884_s5 + $0x1d0] sm:$0xf0] }
  0x1e   : > { %v3065_v0 = vld [vmem:[%s3884_s5 + $0x2d0] sm:$0xf]  ;;  %v3663_v1 = vld [vmem:[%s3884_s5 + $0x2f0] sm:$0xf0]  ;;  %v2922_v8 = vor.u32 %v3627_v63, %v2921_v60  ;;  %v3776_v13 = vld [vmem:[%s4608_s1 + $0x1f8] sm:$0xff] }
  0x1f   : > { %v3209_v2 = vld [vmem:[%s3884_s5 + $0x3f0] sm:$0xf]  ;;  %v3699_v3 = vld [vmem:[%s3884_s5 + $0x410] sm:$0xf0]  ;;  %v3066_v9 = vor.u32 %v3663_v1, %v3065_v0  ;;  %v3760_v14 = vld [vmem:[%s4608_s1 + $0x178] sm:$0xff] }
  0x20   : > { %3800 = vmatpush.bf16.msra.mxu1 %v3715_v5  ;;  %3801 = vmatpush.bf16.msra.mxu2 %v3715_v5  ;;  %v2777_v4 = vld [vmem:[%s3884_s5 + $0x90] sm:$0xf]  ;;  %v3210_v10 = vor.u32 %v3699_v3, %v3209_v2  ;;  %v3784_v15 = vld [vmem:[%s4608_s1 + $0x238] sm:$0xff]  ;;  %v3570_v32 = vld [vmem:[%s3884_s5 + $0xc] sm:$0xf] }
  0x21   : > { %3802 = vmatpush.bf16.msra.mxu3 %v3715_v5  ;;  %1665 = vmatpush.bf16.msra.mxu0 %v3715_v5  ;;  %v3591_v5 = vld [vmem:[%s3884_s5 + $0xb0] sm:$0xf0]  ;;  %v3588_v60 = vld [vmem:[%s3884_s5 + $0x9c] sm:$0xf]  ;;  %v3593_v63 = vld [vmem:[%s3884_s5 + $0xc0] sm:$0xf0] }
  0x22   : > { %v2778_v11 = vor.u32 %v3591_v5, %v2777_v4  ;;  %v3575_v35 = vld [vmem:[%s3884_s5 + $0x30] sm:$0xf0]  ;;  %v3766_v4 = vld [vmem:[%s4608_s1 + $0x1a8] sm:$0xff] }
  0x23   : > { %v3767_v40 = vld [vmem:[%s4608_s1 + $0x1b0] sm:$0xff]  ;;  %v3774_v5 = vld [vmem:[%s4608_s1 + $0x1e8] sm:$0xff] }
  0x24   : > { %3803 = vmatpush.bf16.msra.mxu1 %v3714_v6  ;;  %3804 = vmatpush.bf16.msra.mxu2 %v3714_v6  ;;  %v3775_v41 = vld [vmem:[%s4608_s1 + $0x1f0] sm:$0xff] }
  0x25   : > { %3805 = vmatpush.bf16.msra.mxu3 %v3714_v6  ;;  %1666 = vmatpush.bf16.msra.mxu0 %v3714_v6  ;;  %v3721_v6 = vld [vmem:[%s4608_s1 + $0x40] sm:$0xff] }
  0x28   : > { %3806 = vmatpush.bf16.msra.mxu1 %v3713_v7  ;;  %3807 = vmatpush.bf16.msra.mxu2 %v3713_v7 }
  0x29   : > { %3808 = vmatpush.bf16.msra.mxu3 %v3713_v7  ;;  %1667 = vmatpush.bf16.msra.mxu0 %v3713_v7  ;;  %v3745_v7 = vld [vmem:[%s4608_s1 + $0x100] sm:$0xff] }
  0x2b   : > { %1688 = vmatmul.bf16.vlgmr.msra.gmra.mxu1 %v2850_v18  ;;  %1708 = vmatmul.bf16.vlgmr.msra.gmra.mxu2 %v2994_v19  ;;  %v3101_v18 = vld [vmem:[%s3884_s5 + $0x318] sm:$0xf]  ;;  %v3672_v19 = vld [vmem:[%s3884_s5 + $0x338] sm:$0xf0] }
  0x2c   : > { %1838 = vmatpush.bf16.msrb.mxu2 %v3736_v16  ;;  %1728 = vmatmul.bf16.vlgmr.msra.gmra.mxu3 %v3138_v20  ;;  %v2957_v16 = vld [vmem:[%s3884_s5 + $0x1f8] sm:$0xf] }
  0x2d   : > { %1927 = vmatpush.bf16.msrb.mxu3 %v3744_v17  ;;  %1668 = vmatmul.bf16.vlgmr.msra.gmra.mxu0 %v2706_v21  ;;  %v3636_v17 = vld [vmem:[%s3884_s5 + $0x218] sm:$0xf0]  ;;  %v3245_v20 = vld [vmem:[%s3884_s5 + $0x438] sm:$0xf] }
  0x2e   : > { %1749 = vmatpush.bf16.msrb.mxu1 %v3728_v22  ;;  %2016 = vmatpush.bf16.msrb.mxu0 %v3752_v23  ;;  %v3708_v21 = vld [vmem:[%s3884_s5 + $0x458] sm:$0xf0]  ;;  %v2813_v22 = vld [vmem:[%s3884_s5 + $0xd8] sm:$0xf] }
  0x2f   : > { %v3600_v23 = vld [vmem:[%s3884_s5 + $0xf8] sm:$0xf0] }
  0x30   : > { %1839 = vmatpush.bf16.msrb.mxu2 %v3735_v24  ;;  %v2958_v24 = vor.u32 %v3636_v17, %v2957_v16 }
  0x31   : > { %1928 = vmatpush.bf16.msrb.mxu3 %v3743_v25  ;;  %v3102_v25 = vor.u32 %v3672_v19, %v3101_v18 }
  0x32   : > { %1750 = vmatpush.bf16.msrb.mxu1 %v3727_v26  ;;  %2017 = vmatpush.bf16.msrb.mxu0 %v3751_v27  ;;  %v3246_v26 = vor.u32 %v3708_v21, %v3245_v20  ;;  %v2814_v27 = vor.u32 %v3600_v23, %v2813_v22  ;;  %v3605_v20 = vld [vmem:[%s3884_s5 + $0x124] sm:$0xf]  ;;  %v2851_v21 = vld [vmem:[%s3884_s5 + $0x144] sm:$0xf0]  ;;  %v3610_v23 = vld [vmem:[%s3884_s5 + $0x148] sm:$0xf0] }
  0x33   : > { %v2857_v22 = vld [vmem:[%s3884_s5 + $0x128] sm:$0xf] }
  0x34   : > { %1840 = vmatpush.bf16.msrb.mxu2 %v3734_v28  ;;  %v3569_v28 = vld [vmem:[%s3884_s5 + $0x4] sm:$0xf] }
  0x35   : > { %1929 = vmatpush.bf16.msrb.mxu3 %v3742_v29  ;;  %v2707_v29 = vld [vmem:[%s3884_s5 + $0x24] sm:$0xf0] }
  0x36   : > { %1751 = vmatpush.bf16.msrb.mxu1 %v3726_v30  ;;  %2018 = vmatpush.bf16.msrb.mxu0 %v3750_v31  ;;  %v2713_v30 = vld [vmem:[%s3884_s5 + $0x8] sm:$0xf]  ;;  %v3574_v31 = vld [vmem:[%s3884_s5 + $0x28] sm:$0xf0]  ;;  %v2710_v36 = vor.u32 %v3569_v28, %v2707_v29  ;;  %v2854_v28 = vor.u32 %v3605_v20, %v2851_v21  ;;  %v2858_v29 = vor.u32 %v3610_v23, %v2857_v22  ;;  %v3756_v20 = vld [vmem:[%s4608_s1 + $0x158] sm:$0xff] }
  0x37   : > { %v2714_v37 = vor.u32 %v3574_v31, %v2713_v30  ;;  %v3780_v21 = vld [vmem:[%s4608_s1 + $0x218] sm:$0xff]  ;;  %v2959_v23 = vld [vmem:[%s3884_s5 + $0x21c] sm:$0xf0] }
  0x38   : > { %1841 = vmatpush.bf16.msrb.mxu2 %v3733_v33  ;;  %v2715_v33 = vld [vmem:[%s3884_s5 + $0x2c] sm:$0xf0]  ;;  %v3632_v22 = vld [vmem:[%s3884_s5 + $0x1fc] sm:$0xf] }
  0x39   : > { %1930 = vmatpush.bf16.msrb.mxu3 %v3741_v34  ;;  %v2721_v34 = vld [vmem:[%s3884_s5 + $0x10] sm:$0xf]  ;;  %v2718_v38 = vor.u32 %v3570_v32, %v2715_v33 }
  0x3a   : > { %1752 = vmatpush.bf16.msrb.mxu1 %v3725_v42  ;;  %2019 = vmatpush.bf16.msrb.mxu0 %v3749_v43  ;;  %v2722_v39 = vor.u32 %v3575_v35, %v2721_v34  ;;  %v3759_v42 = vld [vmem:[%s4608_s1 + $0x170] sm:$0xff]  ;;  %v3765_v34 = vld [vmem:[%s4608_s1 + $0x1a0] sm:$0xff] }
  0x3b   : > { %1693 = vmatmul.bf16.gmra.mxu1 %v2886_v46  ;;  %1713 = vmatmul.bf16.gmra.mxu2 %v3030_v47  ;;  %v3783_v43 = vld [vmem:[%s4608_s1 + $0x230] sm:$0xff]  ;;  %v3773_v35 = vld [vmem:[%s4608_s1 + $0x1e0] sm:$0xff] }
  0x3c   : > { %1842 = vmatpush.bf16.msrb.mxu2 %v3732_v44  ;;  %1733 = vmatmul.bf16.gmra.mxu3 %v3174_v48  ;;  %v3578_v44 = vld [vmem:[%s3884_s5 + $0x4c] sm:$0xf]  ;;  %v2749_v46 = vld [vmem:[%s3884_s5 + $0x50] sm:$0xf]  ;;  %v3583_v47 = vld [vmem:[%s3884_s5 + $0x70] sm:$0xf0] }
  0x3d   : > { %1931 = vmatpush.bf16.msrb.mxu3 %v3740_v45  ;;  %1673 = vmatmul.bf16.gmra.mxu0 %v2742_v49  ;;  %v2743_v45 = vld [vmem:[%s3884_s5 + $0x6c] sm:$0xf0]  ;;  %v3579_v48 = vld [vmem:[%s3884_s5 + $0x54] sm:$0xf]  ;;  %v2751_v49 = vld [vmem:[%s3884_s5 + $0x74] sm:$0xf0] }
  0x3e   : > { %1753 = vmatpush.bf16.msrb.mxu1 %v3724_v50  ;;  %2020 = vmatpush.bf16.msrb.mxu0 %v3748_v51  ;;  %v2757_v50 = vld [vmem:[%s3884_s5 + $0x58] sm:$0xf]  ;;  %v3584_v51 = vld [vmem:[%s3884_s5 + $0x78] sm:$0xf0] }
  0x40   : > { %1843 = vmatpush.bf16.msrb.mxu2 %v3731_v52  ;;  %v2746_v52 = vor.u32 %v3578_v44, %v2743_v45  ;;  %v2893_v44 = vld [vmem:[%s3884_s5 + $0x170] sm:$0xf]  ;;  %v3619_v45 = vld [vmem:[%s3884_s5 + $0x190] sm:$0xf0] }
  0x41   : > { %1932 = vmatpush.bf16.msrb.mxu3 %v3739_v53  ;;  %v2750_v53 = vor.u32 %v3583_v47, %v2749_v46  ;;  %v3615_v46 = vld [vmem:[%s3884_s5 + $0x174] sm:$0xf]  ;;  %v2895_v47 = vld [vmem:[%s3884_s5 + $0x194] sm:$0xf0] }
  0x42   : > { %1754 = vmatpush.bf16.msrb.mxu1 %v3723_v54  ;;  %2021 = vmatpush.bf16.msrb.mxu0 %v3747_v55  ;;  %v2754_v54 = vor.u32 %v3579_v48, %v2751_v49  ;;  %v2758_v55 = vor.u32 %v3584_v51, %v2757_v50  ;;  %v2901_v48 = vld [vmem:[%s3884_s5 + $0x178] sm:$0xf]  ;;  %v3620_v49 = vld [vmem:[%s3884_s5 + $0x198] sm:$0xf0] }
  0x44   : > { %1844 = vmatpush.bf16.msrb.mxu2 %v3730_v56  ;;  %v3587_v56 = vld [vmem:[%s3884_s5 + $0x94] sm:$0xf] }
  0x45   : > { %1933 = vmatpush.bf16.msrb.mxu3 %v3738_v57  ;;  %v2779_v57 = vld [vmem:[%s3884_s5 + $0xb4] sm:$0xf0] }
  0x46   : > { %1755 = vmatpush.bf16.msrb.mxu1 %v3722_v58  ;;  %2022 = vmatpush.bf16.msrb.mxu0 %v3746_v59  ;;  %v2785_v58 = vld [vmem:[%s3884_s5 + $0x98] sm:$0xf]  ;;  %v3592_v59 = vld [vmem:[%s3884_s5 + $0xb8] sm:$0xf0]  ;;  %v2782_v0 = vor.u32 %v3587_v56, %v2779_v57  ;;  %v2902_v56 = vor.u32 %v3620_v49, %v2901_v48  ;;  %v3641_v48 = vld [vmem:[%s3884_s5 + $0x244] sm:$0xf] }
  0x47   : > { %v2786_v1 = vor.u32 %v3592_v59, %v2785_v58  ;;  %v2995_v49 = vld [vmem:[%s3884_s5 + $0x264] sm:$0xf0] }
  0x48   : > { %1845 = vmatpush.bf16.msrb.mxu2 %v3729_v61  ;;  %v2787_v61 = vld [vmem:[%s3884_s5 + $0xbc] sm:$0xf0] }
  0x49   : > { %1934 = vmatpush.bf16.msrb.mxu3 %v3737_v62  ;;  %v2793_v62 = vld [vmem:[%s3884_s5 + $0xa0] sm:$0xf]  ;;  %v2790_v2 = vor.u32 %v3588_v60, %v2787_v61 }
  0x4a   : > { %1756 = vmatpush.bf16.msrb.mxu1 %v3721_v6  ;;  %2023 = vmatpush.bf16.msrb.mxu0 %v3745_v7  ;;  %v2794_v3 = vor.u32 %v3593_v63, %v2793_v62  ;;  %v3758_v6 = vld [vmem:[%s4608_s1 + $0x168] sm:$0xff]  ;;  %v3623_v62 = vld [vmem:[%s3884_s5 + $0x1b4] sm:$0xf]  ;;  %v2923_v63 = vld [vmem:[%s3884_s5 + $0x1d4] sm:$0xf0] }
  0x4b   : > { %1698 = vmatmul.bf16.gmra.mxu1 %v2922_v8  ;;  %1718 = vmatmul.bf16.gmra.mxu2 %v3066_v9  ;;  %v3782_v7 = vld [vmem:[%s4608_s1 + $0x228] sm:$0xff]  ;;  %v3596_v8 = vld [vmem:[%s3884_s5 + $0xdc] sm:$0xf]  ;;  %v2815_v9 = vld [vmem:[%s3884_s5 + $0xfc] sm:$0xf0] }
  0x4c   : > { %1738 = vmatmul.bf16.gmra.mxu3 %v3210_v10  ;;  %2194 = vmatpush.bf16.msra.mxu2 %v3768_v12  ;;  %v2821_v10 = vld [vmem:[%s3884_s5 + $0xe0] sm:$0xf]  ;;  %v3597_v12 = vld [vmem:[%s3884_s5 + $0xe4] sm:$0xf]  ;;  %v2818_v16 = vor.u32 %v3596_v8, %v2815_v9  ;;  %v2926_v8 = vor.u32 %v3623_v62, %v2923_v63  ;;  %v3009_v62 = vld [vmem:[%s3884_s5 + $0x250] sm:$0xf] }
  0x4d   : > { %1678 = vmatmul.bf16.gmra.mxu0 %v2778_v11  ;;  %2283 = vmatpush.bf16.msra.mxu3 %v3776_v13  ;;  %v3601_v11 = vld [vmem:[%s3884_s5 + $0x100] sm:$0xf0]  ;;  %v2823_v13 = vld [vmem:[%s3884_s5 + $0x104] sm:$0xf0]  ;;  %v3647_v63 = vld [vmem:[%s3884_s5 + $0x270] sm:$0xf0] }
  0x4e   : > { %2105 = vmatpush.bf16.msra.mxu1 %v3760_v14  ;;  %2372 = vmatpush.bf16.msra.mxu0 %v3784_v15  ;;  %v2829_v14 = vld [vmem:[%s3884_s5 + $0xe8] sm:$0xf]  ;;  %v3602_v15 = vld [vmem:[%s3884_s5 + $0x108] sm:$0xf0]  ;;  %v2822_v17 = vor.u32 %v3601_v11, %v2821_v10  ;;  %v2826_v18 = vor.u32 %v3597_v12, %v2823_v13 }
  0x4f   : > { %v2830_v19 = vor.u32 %v3602_v15, %v2829_v14  ;;  %v3764_v14 = vld [vmem:[%s4608_s1 + $0x198] sm:$0xff] }
  0x50   : > { %2195 = vmatpush.bf16.msra.mxu2 %v3767_v40  ;;  %v3772_v15 = vld [vmem:[%s4608_s1 + $0x1d8] sm:$0xff] }
  0x51   : > { %2284 = vmatpush.bf16.msra.mxu3 %v3775_v41  ;;  %v3781_v41 = vld [vmem:[%s4608_s1 + $0x220] sm:$0xff] }
  0x52   : > { %2106 = vmatpush.bf16.msra.mxu1 %v3759_v42  ;;  %2373 = vmatpush.bf16.msra.mxu0 %v3783_v43  ;;  %v3614_v42 = vld [vmem:[%s3884_s5 + $0x16c] sm:$0xf]  ;;  %v2887_v43 = vld [vmem:[%s3884_s5 + $0x18c] sm:$0xf0] }
  0x54   : > { %2196 = vmatpush.bf16.msra.mxu2 %v3766_v4  ;;  %v2937_v4 = vld [vmem:[%s3884_s5 + $0x1c0] sm:$0xf] }
  0x55   : > { %2285 = vmatpush.bf16.msra.mxu3 %v3774_v5  ;;  %v3629_v5 = vld [vmem:[%s3884_s5 + $0x1e0] sm:$0xf0] }
  0x56   : > { %2107 = vmatpush.bf16.msra.mxu1 %v3758_v6  ;;  %2374 = vmatpush.bf16.msra.mxu0 %v3782_v7  ;;  %v2938_v12 = vor.u32 %v3629_v5, %v2937_v4 }
  0x58   : > { %2197 = vmatpush.bf16.msra.mxu2 %v3765_v34  ;;  %v2962_v34 = vor.u32 %v3632_v22, %v2959_v23 }
  0x59   : > { %2286 = vmatpush.bf16.msra.mxu3 %v3773_v35 }
  0x5a   : > { %2375 = vmatpush.bf16.msra.mxu0 %v3781_v41 }
  0x5b   : > { %1703 = vmatmul.bf16.gmra.mxu1 %v2958_v24  ;;  %1723 = vmatmul.bf16.gmra.mxu2 %v3102_v25  ;;  %v3606_v24 = vld [vmem:[%s3884_s5 + $0x12c] sm:$0xf]  ;;  %v2859_v25 = vld [vmem:[%s3884_s5 + $0x14c] sm:$0xf0] }
  0x5c   : > { %1743 = vmatmul.bf16.gmra.mxu3 %v3246_v26  ;;  %v2865_v26 = vld [vmem:[%s3884_s5 + $0x130] sm:$0xf]  ;;  %v2862_v31 = vor.u32 %v3606_v24, %v2859_v25  ;;  %2198 = vmatpush.bf16.msra.mxu2 %v3764_v14  ;;  %v2965_v24 = vld [vmem:[%s3884_s5 + $0x200] sm:$0xf]  ;;  %v3637_v25 = vld [vmem:[%s3884_s5 + $0x220] sm:$0xf0] }
  0x5d   : > { %1683 = vmatmul.bf16.gmra.mxu0 %v2814_v27  ;;  %v3611_v27 = vld [vmem:[%s3884_s5 + $0x150] sm:$0xf0]  ;;  %2287 = vmatpush.bf16.msra.mxu3 %v3772_v15  ;;  %v2966_v35 = vor.u32 %v3637_v25, %v2965_v24 }
  0x5e   : > { %v2866_v32 = vor.u32 %v3611_v27, %v2865_v26  ;;  %2376 = vmatpush.bf16.msra.mxu0 %v3780_v21  ;;  %v3633_v26 = vld [vmem:[%s3884_s5 + $0x204] sm:$0xf]  ;;  %v2967_v27 = vld [vmem:[%s3884_s5 + $0x224] sm:$0xf0]  ;;  %v3771_v14 = vld [vmem:[%s4608_s1 + $0x1d0] sm:$0xff] }
  0x5f   : > { %v2970_v41 = vor.u32 %v3633_v26, %v2967_v27  ;;  %v3755_v25 = vld [vmem:[%s4608_s1 + $0x150] sm:$0xff]  ;;  %v3650_v27 = vld [vmem:[%s3884_s5 + $0x28c] sm:$0xf] }
  0x60   : > { %v3779_v26 = vld [vmem:[%s4608_s1 + $0x210] sm:$0xff] }
  0x61   : > { %2288 = vmatpush.bf16.msra.mxu3 %v3771_v14 }
  0x62   : > { %2377 = vmatpush.bf16.msra.mxu0 %v3779_v26  ;;  %v3075_v26 = vld [vmem:[%s3884_s5 + $0x2fc] sm:$0xf0] }
  0x6b   : > { %1757 = vmatmul.bf16.vlgmr.msrb.gmra.mxu1 %v2710_v36  ;;  %1846 = vmatmul.bf16.vlgmr.msrb.gmra.mxu2 %v2714_v37 }
  0x6c   : > { %1935 = vmatmul.bf16.vlgmr.msrb.gmra.mxu3 %v2718_v38  ;;  %v3757_v38 = vld [vmem:[%s4608_s1 + $0x160] sm:$0xff] }
  0x6d   : > { %2024 = vmatmul.bf16.vlgmr.msrb.gmra.mxu0 %v2722_v39  ;;  %2108 = vmatpush.bf16.msra.mxu1 %v3757_v38 }
  0x71   : > { %2109 = vmatpush.bf16.msra.mxu1 %v3756_v20 }
  0x75   : > { %2110 = vmatpush.bf16.msra.mxu1 %v3755_v25  ;;  %v3660_v25 = vld [vmem:[%s3884_s5 + $0x2dc] sm:$0xf] }
  0x7b   : > { %1762 = vmatmul.bf16.gmra.mxu1 %v2746_v52  ;;  %1851 = vmatmul.bf16.gmra.mxu2 %v2750_v53  ;;  %v2890_v52 = vor.u32 %v3614_v42, %v2887_v43  ;;  %v2894_v53 = vor.u32 %v3619_v45, %v2893_v44 }
  0x7c   : > { %1940 = vmatmul.bf16.gmra.mxu3 %v2754_v54 }
  0x7d   : > { %2029 = vmatmul.bf16.gmra.mxu0 %v2758_v55  ;;  %v2898_v55 = vor.u32 %v3615_v46, %v2895_v47 }
  0x8b   : > { %1767 = vmatmul.bf16.gmra.mxu1 %v2782_v0  ;;  %1856 = vmatmul.bf16.gmra.mxu2 %v2786_v1  ;;  %v2929_v0 = vld [vmem:[%s3884_s5 + $0x1b8] sm:$0xf]  ;;  %v3628_v1 = vld [vmem:[%s3884_s5 + $0x1d8] sm:$0xf0] }
  0x8c   : > { %1945 = vmatmul.bf16.gmra.mxu3 %v2790_v2  ;;  %v3624_v2 = vld [vmem:[%s3884_s5 + $0x1bc] sm:$0xf]  ;;  %v2930_v9 = vor.u32 %v3628_v1, %v2929_v0 }
  0x8d   : > { %2034 = vmatmul.bf16.gmra.mxu0 %v2794_v3  ;;  %v2931_v3 = vld [vmem:[%s3884_s5 + $0x1dc] sm:$0xf0] }
  0x8e   : > { %v2934_v11 = vor.u32 %v3624_v2, %v2931_v3  ;;  %v2998_v2 = vor.u32 %v3641_v48, %v2995_v49  ;;  %v3656_v48 = vld [vmem:[%s3884_s5 + $0x2b8] sm:$0xf0] }
  0x9b   : > { %1772 = vmatmul.bf16.gmra.mxu1 %v2818_v16  ;;  %1861 = vmatmul.bf16.gmra.mxu2 %v2822_v17 }
  0x9c   : > { %1950 = vmatmul.bf16.gmra.mxu3 %v2826_v18 }
  0x9d   : > { %2039 = vmatmul.bf16.gmra.mxu0 %v2830_v19 }
  0xa8   : > { %v4093_v30 = vpop.f32.mrf.mxu1 }
  0xaa   : > { %v4095_v33 = vpop.f32.mrf.mxu0 }
  0xab   : > { %1777 = vmatmul.bf16.gmra.mxu1 %v2854_v28  ;;  %1866 = vmatmul.bf16.gmra.mxu2 %v2858_v29  ;;  %v2973_v28 = vld [vmem:[%s3884_s5 + $0x208] sm:$0xf]  ;;  %v3638_v29 = vld [vmem:[%s3884_s5 + $0x228] sm:$0xf0] }
  0xac   : > { %1955 = vmatmul.bf16.gmra.mxu3 %v2862_v31  ;;  %v2974_v42 = vor.u32 %v3638_v29, %v2973_v28  ;;  %v3031_v28 = vld [vmem:[%s3884_s5 + $0x2ac] sm:$0xf0] }
  0xad   : > { %2044 = vmatmul.bf16.gmra.mxu0 %v2866_v32 }
  0xae   : > { %v4103_v36 = vpop.f32.mrf.mxu2 }
  0xaf   : > { %v4105_v37 = vpop.f32.mrf.mxu3 }
  0xb0   : > { %v4110_v39 = vpop.f32.mrf.mxu1 }
  0xb2   : > { %v4112_v40 = vpop.f32.mrf.mxu0 }
  0xb6   : > { %v4125_v50 = vpop.f32.mrf.mxu2 }
  0xb7   : > { %v4127_v51 = vpop.f32.mrf.mxu3 }
  0xb8   : > { %v4129_v54 = vpop.f32.mrf.mxu1 }
  0xba   : > { %v4131_v57 = vpop.f32.mrf.mxu0 }
  0xbb   : > { %1782 = vmatmul.bf16.gmra.mxu1 %v2890_v52  ;;  %1871 = vmatmul.bf16.gmra.mxu2 %v2894_v53  ;;  %v3001_v52 = vld [vmem:[%s3884_s5 + $0x248] sm:$0xf]  ;;  %v3646_v53 = vld [vmem:[%s3884_s5 + $0x268] sm:$0xf0] }
  0xbc   : > { %1960 = vmatmul.bf16.gmra.mxu3 %v2898_v55  ;;  %v3642_v55 = vld [vmem:[%s3884_s5 + $0x24c] sm:$0xf]  ;;  %v3002_v3 = vor.u32 %v3646_v53, %v3001_v52 }
  0xbd   : > { %2049 = vmatmul.bf16.gmra.mxu0 %v2902_v56  ;;  %v3003_v56 = vld [vmem:[%s3884_s5 + $0x26c] sm:$0xf0] }
  0xbe   : > { %v4133_v58 = vpop.f32.mrf.mxu2  ;;  %v3006_v5 = vor.u32 %v3642_v55, %v3003_v56  ;;  %v3034_v55 = vor.u32 %v3650_v27, %v3031_v28  ;;  %v3081_v27 = vld [vmem:[%s3884_s5 + $0x2e0] sm:$0xf]  ;;  %v3665_v28 = vld [vmem:[%s3884_s5 + $0x300] sm:$0xf0] }
  0xbf   : > { %v4135_v59 = vpop.f32.mrf.mxu3 }
  0xc0   : > { %v4137_v60 = vpop.f32.mrf.mxu1 }
  0xc2   : > { %v4139_v61 = vpop.f32.mrf.mxu0 }
  0xc6   : > { %v4149_v6 = vpop.f32.mrf.mxu2 }
  0xc7   : > { %v4151_v7 = vpop.f32.mrf.mxu3 }
  0xc8   : > { %v4153_v10 = vpop.f32.mrf.mxu1 }
  0xca   : > { %v4155_v13 = vpop.f32.mrf.mxu0 }
  0xcb   : > { %1787 = vmatmul.bf16.gmra.mxu1 %v2926_v8  ;;  %1876 = vmatmul.bf16.gmra.mxu2 %v2930_v9  ;;  %v3010_v8 = vor.u32 %v3647_v63, %v3009_v62 }
  0xcc   : > { %1965 = vmatmul.bf16.gmra.mxu3 %v2934_v11 }
  0xcd   : > { %2054 = vmatmul.bf16.gmra.mxu0 %v2938_v12  ;;  %v3763_v12 = vld [vmem:[%s4608_s1 + $0x190] sm:$0xff] }
  0xce   : > { %v4163_v16 = vpop.f32.mrf.mxu2  ;;  %2199 = vmatpush.bf16.msra.mxu2 %v3763_v12 }
  0xcf   : > { %v4165_v17 = vpop.f32.mrf.mxu3 }
  0xd0   : > { %v4167_v18 = vpop.f32.mrf.mxu1 }
  0xd2   : > { %v4169_v19 = vpop.f32.mrf.mxu0 }
  0xd6   : > { %v4185_v31 = vpop.f32.mrf.mxu2 }
  0xd7   : > { %v4187_v32 = vpop.f32.mrf.mxu3 }
  0xd8   : > { %v4189_v38 = vpop.f32.mrf.mxu1 }
  0xda   : > { %v4191_v43 = vpop.f32.mrf.mxu0 }
  0xdb   : > { %1792 = vmatmul.bf16.gmra.mxu1 %v2962_v34  ;;  %1881 = vmatmul.bf16.gmra.mxu2 %v2966_v35  ;;  %v3037_v34 = vld [vmem:[%s3884_s5 + $0x290] sm:$0xf]  ;;  %v3655_v35 = vld [vmem:[%s3884_s5 + $0x2b0] sm:$0xf0] }
  0xdc   : > { %1970 = vmatmul.bf16.gmra.mxu3 %v2970_v41  ;;  %v3651_v41 = vld [vmem:[%s3884_s5 + $0x294] sm:$0xf]  ;;  %v3038_v56 = vor.u32 %v3655_v35, %v3037_v34 }
  0xdd   : > { %2059 = vmatmul.bf16.gmra.mxu0 %v2974_v42  ;;  %v3039_v42 = vld [vmem:[%s3884_s5 + $0x2b4] sm:$0xf0] }
  0xde   : > { %v4193_v44 = vpop.f32.mrf.mxu2  ;;  %v3042_v63 = vor.u32 %v3651_v41, %v3039_v42 }
  0xdf   : > { %v4195_v45 = vpop.f32.mrf.mxu3 }
  0xe0   : > { %v4197_v46 = vpop.f32.mrf.mxu1 }
  0xe2   : > { %v4199_v47 = vpop.f32.mrf.mxu0 }
  0xe6   : > { %v4209_v0 = vpop.f32.mrf.mxu2 }
  0xe7   : > { %v4211_v1 = vpop.f32.mrf.mxu3 }
  0xe8   : > { %v1758_v4 = vpop.f32.mrf.mxu1 }
  0xe9   : > { %v1759_v9 = vadd.f32 %v1758_v4, %v4095_v33 }
  0xea   : > { %v2025_v11 = vpop.f32.mrf.mxu0 }
  0xeb   : > { %1797 = vmatmul.bf16.gmra.mxu1 %v2998_v2  ;;  %1886 = vmatmul.bf16.gmra.mxu2 %v3002_v3 }
  0xec   : > { %1975 = vmatmul.bf16.gmra.mxu3 %v3006_v5 }
  0xed   : > { %2064 = vmatmul.bf16.gmra.mxu0 %v3010_v8 }
  0xee   : > { %v1847_v15 = vpop.f32.mrf.mxu2 }
  0xef   : > { %v1848_v33 = vadd.f32 %v1847_v15, %v1759_v9  ;;  %v1936_v20 = vpop.f32.mrf.mxu3 }
  0xf0   : > { %v1760_v21 = vpop.f32.mrf.mxu1 }
  0xf1   : > { %v1937_v22 = vadd.f32 %v1936_v20, %v1848_v33  ;;  %v1761_v23 = vadd.f32 %v1760_v21, %v4112_v40  ;;  %v3045_v40 = vld [vmem:[%s3884_s5 + $0x298] sm:$0xf]  ;;  %v3659_v20 = vld [vmem:[%s3884_s5 + $0x2d4] sm:$0xf] }
  0xf2   : > { %v2027_v24 = vpop.f32.mrf.mxu0  ;;  %v3046_v2 = vor.u32 %v3656_v48, %v3045_v40  ;;  %v3067_v21 = vld [vmem:[%s3884_s5 + $0x2f4] sm:$0xf0] }
  0xf3   : > { %v4229_v29 = vadd.f32 %v2025_v11, %v1937_v22  ;;  %v3070_v42 = vor.u32 %v3659_v20, %v3067_v21  ;;  %v3109_v20 = vld [vmem:[%s3884_s5 + $0x320] sm:$0xf]  ;;  %v3673_v21 = vld [vmem:[%s3884_s5 + $0x340] sm:$0xf0] }
  0xf6   : > { %v1849_v49 = vpop.f32.mrf.mxu2 }
  0xf7   : > { %v1850_v52 = vadd.f32 %v1849_v49, %v1761_v23  ;;  %v1938_v53 = vpop.f32.mrf.mxu3  ;;  %v3073_v23 = vld [vmem:[%s3884_s5 + $0x2d8] sm:$0xf]  ;;  %v3078_v49 = vor.u32 %v3660_v25, %v3075_v26  ;;  %v3674_v25 = vld [vmem:[%s3884_s5 + $0x348] sm:$0xf0] }
  0xf8   : > { %v1763_v62 = vpop.f32.mrf.mxu1 }
  0xf9   : > { %v1939_v3 = vadd.f32 %v1938_v53, %v1850_v52  ;;  %v1764_v4 = vadd.f32 %v1763_v62, %v4131_v57  ;;  %v3082_v52 = vor.u32 %v3665_v28, %v3081_v27  ;;  %v3762_v62 = vld [vmem:[%s4608_s1 + $0x188] sm:$0xff] }
  0xfa   : > { %v2030_v5 = vpop.f32.mrf.mxu0  ;;  %2200 = vmatpush.bf16.msra.mxu2 %v3762_v62 }
  0xfb   : > { %1802 = vmatmul.bf16.gmra.mxu1 %v3034_v55  ;;  %1891 = vmatmul.bf16.gmra.mxu2 %v3038_v56  ;;  %v4238_v8 = vadd.f32 %v2027_v24, %v1939_v3  ;;  %v3664_v24 = vld [vmem:[%s3884_s5 + $0x2f8] sm:$0xf0] }
  0xfc   : > { %1980 = vmatmul.bf16.gmra.mxu3 %v3042_v63  ;;  %v3074_v40 = vor.u32 %v3664_v24, %v3073_v23  ;;  %v3770_v63 = vld [vmem:[%s4608_s1 + $0x1c8] sm:$0xff]  ;;  %v3669_v23 = vld [vmem:[%s3884_s5 + $0x324] sm:$0xf] }
  0xfd   : > { %2069 = vmatmul.bf16.gmra.mxu0 %v3046_v2  ;;  %2289 = vmatpush.bf16.msra.mxu3 %v3770_v63  ;;  %v3111_v24 = vld [vmem:[%s3884_s5 + $0x344] sm:$0xf0] }
  0xfe   : > { %v1852_v9 = vpop.f32.mrf.mxu2 }
  0xff   : > { %v1853_v11 = vadd.f32 %v1852_v9, %v1764_v4  ;;  %v1941_v12 = vpop.f32.mrf.mxu3 }
 0x100   : > { %v1765_v14 = vpop.f32.mrf.mxu1 }
 0x101   : > { %v1942_v15 = vadd.f32 %v1941_v12, %v1853_v11  ;;  %v1766_v57 = vadd.f32 %v1765_v14, %v4139_v61  ;;  %v3754_v12 = vld [vmem:[%s4608_s1 + $0x148] sm:$0xff] }
 0x102   : > { %v2032_v33 = vpop.f32.mrf.mxu0  ;;  %v3778_v14 = vld [vmem:[%s4608_s1 + $0x208] sm:$0xff]  ;;  %2111 = vmatpush.bf16.msra.mxu1 %v3754_v12 }
 0x103   : > { %v4243_v22 = vadd.f32 %v2030_v5, %v1942_v15  ;;  %v3668_v15 = vld [vmem:[%s3884_s5 + $0x31c] sm:$0xf]  ;;  %2378 = vmatpush.bf16.msra.mxu0 %v3778_v14  ;;  %v3678_v12 = vld [vmem:[%s3884_s5 + $0x36c] sm:$0xf]  ;;  %v3147_v14 = vld [vmem:[%s3884_s5 + $0x38c] sm:$0xf0] }
 0x106   : > { %v1854_v34 = vpop.f32.mrf.mxu2 }
 0x107   : > { %v1855_v35 = vadd.f32 %v1854_v34, %v1766_v57  ;;  %v1943_v41 = vpop.f32.mrf.mxu3  ;;  %v3103_v57 = vld [vmem:[%s3884_s5 + $0x33c] sm:$0xf0] }
 0x108   : > { %v1768_v48 = vpop.f32.mrf.mxu1  ;;  %v3106_v34 = vor.u32 %v3668_v15, %v3103_v57  ;;  %v3153_v15 = vld [vmem:[%s3884_s5 + $0x370] sm:$0xf]  ;;  %v3683_v57 = vld [vmem:[%s3884_s5 + $0x390] sm:$0xf0] }
 0x109   : > { %v1944_v61 = vadd.f32 %v1943_v41, %v1855_v35  ;;  %v1769_v53 = vadd.f32 %v1768_v48, %v4155_v13  ;;  %v3110_v35 = vor.u32 %v3673_v21, %v3109_v20 }
 0x10a   : > { %v2035_v55 = vpop.f32.mrf.mxu0 }
 0x10b   : > { %1807 = vmatmul.bf16.gmra.mxu1 %v3070_v42  ;;  %1896 = vmatmul.bf16.gmra.mxu2 %v3074_v40  ;;  %v4252_v56 = vadd.f32 %v2032_v33, %v1944_v61  ;;  %v3114_v42 = vor.u32 %v3669_v23, %v3111_v24 }
 0x10c   : > { %1985 = vmatmul.bf16.gmra.mxu3 %v3078_v49 }
 0x10d   : > { %2074 = vmatmul.bf16.gmra.mxu0 %v3082_v52 }
 0x10e   : > { %v1857_v2 = vpop.f32.mrf.mxu2 }
 0x10f   : > { %v1858_v13 = vadd.f32 %v1857_v2, %v1769_v53  ;;  %v1946_v3 = vpop.f32.mrf.mxu3 }
 0x110   : > { %v1770_v4 = vpop.f32.mrf.mxu1 }
 0x111   : > { %v1947_v5 = vadd.f32 %v1946_v3, %v1858_v13  ;;  %v1771_v9 = vadd.f32 %v1770_v4, %v4169_v19  ;;  %v3117_v19 = vld [vmem:[%s3884_s5 + $0x328] sm:$0xf]  ;;  %v3677_v3 = vld [vmem:[%s3884_s5 + $0x364] sm:$0xf] }
 0x112   : > { %v2037_v11 = vpop.f32.mrf.mxu0  ;;  %v3118_v40 = vor.u32 %v3674_v25, %v3117_v19  ;;  %v3139_v4 = vld [vmem:[%s3884_s5 + $0x384] sm:$0xf0] }
 0x113   : > { %v4269_v33 = vadd.f32 %v2035_v55, %v1947_v5  ;;  %v3142_v24 = vor.u32 %v3677_v3, %v3139_v4  ;;  %v3691_v3 = vld [vmem:[%s3884_s5 + $0x3d0] sm:$0xf0] }
 0x114   : > { %v3687_v4 = vld [vmem:[%s3884_s5 + $0x3b4] sm:$0xf] }
 0x116   : > { %v1859_v26 = vpop.f32.mrf.mxu2 }
 0x117   : > { %v1860_v27 = vadd.f32 %v1859_v26, %v1771_v9  ;;  %v1948_v28 = vpop.f32.mrf.mxu3  ;;  %v3145_v9 = vld [vmem:[%s3884_s5 + $0x368] sm:$0xf]  ;;  %v3150_v26 = vor.u32 %v3678_v12, %v3147_v14  ;;  %v3189_v12 = vld [vmem:[%s3884_s5 + $0x3b8] sm:$0xf]  ;;  %v3692_v14 = vld [vmem:[%s3884_s5 + $0x3d8] sm:$0xf0] }
 0x118   : > { %v1773_v41 = vpop.f32.mrf.mxu1 }
 0x119   : > { %v1949_v48 = vadd.f32 %v1948_v28, %v1860_v27  ;;  %v1774_v49 = vadd.f32 %v1773_v41, %v4191_v43  ;;  %v3154_v27 = vor.u32 %v3683_v57, %v3153_v15  ;;  %v3769_v41 = vld [vmem:[%s4608_s1 + $0x1c0] sm:$0xff] }
 0x11a   : > { %v2040_v52 = vpop.f32.mrf.mxu0  ;;  %2290 = vmatpush.bf16.msra.mxu3 %v3769_v41 }
 0x11b   : > { %1812 = vmatmul.bf16.gmra.mxu1 %v3106_v34  ;;  %1901 = vmatmul.bf16.gmra.mxu2 %v3110_v35  ;;  %v4278_v61 = vadd.f32 %v2037_v11, %v1949_v48  ;;  %v3682_v11 = vld [vmem:[%s3884_s5 + $0x388] sm:$0xf0]  ;;  %v3761_v35 = vld [vmem:[%s4608_s1 + $0x180] sm:$0xff] }
 0x11c   : > { %1990 = vmatmul.bf16.gmra.mxu3 %v3114_v42  ;;  %v3146_v19 = vor.u32 %v3682_v11, %v3145_v9  ;;  %2201 = vmatpush.bf16.msra.mxu2 %v3761_v35  ;;  %v3183_v11 = vld [vmem:[%s3884_s5 + $0x3d4] sm:$0xf0] }
 0x11d   : > { %2079 = vmatmul.bf16.gmra.mxu0 %v3118_v40 }
 0x11e   : > { %v1862_v53 = vpop.f32.mrf.mxu2 }
 0x11f   : > { %v1863_v55 = vadd.f32 %v1862_v53, %v1774_v49  ;;  %v1951_v62 = vpop.f32.mrf.mxu3 }
 0x120   : > { %v1775_v63 = vpop.f32.mrf.mxu1 }
 0x121   : > { %v1952_v2 = vadd.f32 %v1951_v62, %v1863_v55  ;;  %v1776_v43 = vadd.f32 %v1775_v63, %v4199_v47  ;;  %v3753_v62 = vld [vmem:[%s4608_s1 + $0x140] sm:$0xff]  ;;  %v3686_v63 = vld [vmem:[%s3884_s5 + $0x3ac] sm:$0xf] }
 0x122   : > { %v2042_v13 = vpop.f32.mrf.mxu0  ;;  %2112 = vmatpush.bf16.msra.mxu1 %v3753_v62  ;;  %v3217_v62 = vld [vmem:[%s3884_s5 + $0x3f8] sm:$0xf] }
 0x123   : > { %v4283_v5 = vadd.f32 %v2040_v52, %v1952_v2  ;;  %v3175_v2 = vld [vmem:[%s3884_s5 + $0x3cc] sm:$0xf0] }
 0x126   : > { %v1864_v20 = vpop.f32.mrf.mxu2 }
 0x127   : > { %v1865_v21 = vadd.f32 %v1864_v20, %v1776_v43  ;;  %v1953_v23 = vpop.f32.mrf.mxu3 }
 0x128   : > { %v1778_v25 = vpop.f32.mrf.mxu1 }
 0x129   : > { %v1954_v47 = vadd.f32 %v1953_v23, %v1865_v21  ;;  %v1779_v42 = vadd.f32 %v1778_v25, %v4093_v30  ;;  %v3777_v30 = vld [vmem:[%s4608_s1 + $0x200] sm:$0xff]  ;;  %v3178_v21 = vor.u32 %v3686_v63, %v3175_v2  ;;  %v3190_v25 = vor.u32 %v3692_v14, %v3189_v12 }
 0x12a   : > { %v2045_v28 = vpop.f32.mrf.mxu0  ;;  %2379 = vmatpush.bf16.msra.mxu0 %v3777_v30  ;;  %v3696_v30 = vld [vmem:[%s3884_s5 + $0x3fc] sm:$0xf]  ;;  %v3219_v2 = vld [vmem:[%s3884_s5 + $0x41c] sm:$0xf0] }
 0x12b   : > { %1817 = vmatmul.bf16.gmra.mxu1 %v3142_v24  ;;  %1906 = vmatmul.bf16.gmra.mxu2 %v3146_v19  ;;  %v4291_v34 = vadd.f32 %v2042_v13, %v1954_v47  ;;  %v3181_v13 = vld [vmem:[%s3884_s5 + $0x3b0] sm:$0xf]  ;;  %v3186_v19 = vor.u32 %v3687_v4, %v3183_v11 }
 0x12c   : > { %1995 = vmatmul.bf16.gmra.mxu3 %v3150_v26  ;;  %v3182_v23 = vor.u32 %v3691_v3, %v3181_v13  ;;  %v3225_v13 = vld [vmem:[%s3884_s5 + $0x400] sm:$0xf]  ;;  %v3701_v3 = vld [vmem:[%s3884_s5 + $0x420] sm:$0xf0] }
 0x12d   : > { %2084 = vmatmul.bf16.gmra.mxu0 %v3154_v27 }
 0x12e   : > { %v1867_v40 = vpop.f32.mrf.mxu2 }
 0x12f   : > { %v1868_v48 = vadd.f32 %v1867_v40, %v1779_v42  ;;  %v1956_v49 = vpop.f32.mrf.mxu3 }
 0x130   : > { %v1780_v52 = vpop.f32.mrf.mxu1 }
 0x131   : > { %v1957_v53 = vadd.f32 %v1956_v49, %v1868_v48  ;;  %v1781_v9 = vadd.f32 %v1780_v52, %v4110_v39  ;;  %v3695_v49 = vld [vmem:[%s3884_s5 + $0x3f4] sm:$0xf]  ;;  %v3211_v52 = vld [vmem:[%s3884_s5 + $0x414] sm:$0xf0] }
 0x132   : > { %v2047_v55 = vpop.f32.mrf.mxu0  ;;  %v3214_v11 = vor.u32 %v3695_v49, %v3211_v52  ;;  %v3255_v52 = vld [vmem:[%s3884_s5 + $0x464] sm:$0xf0] }
 0x133   : > { %v4308_v43 = vadd.f32 %v2045_v28, %v1957_v53 }
 0x136   : > { %v1869_v15 = vpop.f32.mrf.mxu2 }
 0x137   : > { %v1870_v57 = vadd.f32 %v1869_v15, %v1781_v9  ;;  %v1958_v20 = vpop.f32.mrf.mxu3  ;;  %v3222_v15 = vor.u32 %v3696_v30, %v3219_v2 }
 0x138   : > { %v1783_v24 = vpop.f32.mrf.mxu1 }
 0x139   : > { %v1959_v26 = vadd.f32 %v1958_v20, %v1870_v57  ;;  %v1784_v47 = vadd.f32 %v1783_v24, %v4129_v54  ;;  %v3226_v57 = vor.u32 %v3701_v3, %v3225_v13 }
 0x13a   : > { %v2050_v27 = vpop.f32.mrf.mxu0 }
 0x13b   : > { %1822 = vmatmul.bf16.gmra.mxu1 %v3178_v21  ;;  %1911 = vmatmul.bf16.gmra.mxu2 %v3182_v23  ;;  %v4317_v39 = vadd.f32 %v2047_v55, %v1959_v26  ;;  %v3700_v55 = vld [vmem:[%s3884_s5 + $0x418] sm:$0xf0] }
 0x13c   : > { %2000 = vmatmul.bf16.gmra.mxu3 %v3186_v19  ;;  %v3218_v12 = vor.u32 %v3700_v55, %v3217_v62  ;;  %v3261_v62 = vld [vmem:[%s3884_s5 + $0x448] sm:$0xf]  ;;  %v3710_v55 = vld [vmem:[%s3884_s5 + $0x468] sm:$0xf0] }
 0x13d   : > { %2089 = vmatmul.bf16.gmra.mxu0 %v3190_v25 }
 0x13e   : > { %v1872_v28 = vpop.f32.mrf.mxu2 }
 0x13f   : > { %v1873_v35 = vadd.f32 %v1872_v28, %v1784_v47  ;;  %v1961_v41 = vpop.f32.mrf.mxu3  ;;  %v3704_v28 = vld [vmem:[%s3884_s5 + $0x43c] sm:$0xf] }
 0x140   : > { %v1785_v42 = vpop.f32.mrf.mxu1 }
 0x141   : > { %v1962_v40 = vadd.f32 %v1961_v41, %v1873_v35  ;;  %v1786_v63 = vadd.f32 %v1785_v42, %v4137_v60  ;;  %v3247_v35 = vld [vmem:[%s3884_s5 + $0x45c] sm:$0xf0] }
 0x142   : > { %v2052_v48 = vpop.f32.mrf.mxu0  ;;  %v3253_v42 = vld [vmem:[%s3884_s5 + $0x440] sm:$0xf]  ;;  %v3250_v2 = vor.u32 %v3704_v28, %v3247_v35 }
 0x143   : > { %v4322_v53 = vadd.f32 %v2050_v27, %v1962_v40  ;;  %v3709_v40 = vld [vmem:[%s3884_s5 + $0x460] sm:$0xf0]  ;;  %v2731_v35 = vld [vmem:[%s3884_s5 + $0x3c] sm:$0xf0] }
 0x144   : > { %v3254_v13 = vor.u32 %v3709_v40, %v3253_v42  ;;  %v2737_v42 = vld [vmem:[%s3884_s5 + $0x20] sm:$0xf]  ;;  %v3577_v40 = vld [vmem:[%s3884_s5 + $0x40] sm:$0xf0] }
 0x146   : > { %v1874_v54 = vpop.f32.mrf.mxu2 }
 0x147   : > { %v1875_v4 = vadd.f32 %v1874_v54, %v1786_v63  ;;  %v1963_v9 = vpop.f32.mrf.mxu3 }
 0x148   : > { %v1788_v14 = vpop.f32.mrf.mxu1 }
 0x149   : > { %v1964_v20 = vadd.f32 %v1963_v9, %v1875_v4  ;;  %v1789_v23 = vadd.f32 %v1788_v14, %v4153_v10  ;;  %v3262_v4 = vor.u32 %v3710_v55, %v3261_v62 }
 0x14a   : > { %v2055_v21 = vpop.f32.mrf.mxu0 }
 0x14b   : > { %1827 = vmatmul.bf16.gmra.mxu1 %v3214_v11  ;;  %1916 = vmatmul.bf16.gmra.mxu2 %v3218_v12  ;;  %v4331_v60 = vadd.f32 %v2052_v48, %v1964_v20  ;;  %v3705_v48 = vld [vmem:[%s3884_s5 + $0x444] sm:$0xf] }
 0x14c   : > { %2005 = vmatmul.bf16.gmra.mxu3 %v3222_v15  ;;  %v3258_v54 = vor.u32 %v3705_v48, %v3255_v52 }
 0x14d   : > { %2094 = vmatmul.bf16.gmra.mxu0 %v3226_v57 }
 0x14e   : > { %v1877_v24 = vpop.f32.mrf.mxu2 }
 0x14f   : > { %v1878_v19 = vadd.f32 %v1877_v24, %v1789_v23  ;;  %v1966_v25 = vpop.f32.mrf.mxu3  ;;  %v3571_v24 = vld [vmem:[%s3884_s5 + $0x14] sm:$0xf] }
 0x150   : > { %v1790_v26 = vpop.f32.mrf.mxu1 }
 0x151   : > { %v1967_v27 = vadd.f32 %v1966_v25, %v1878_v19  ;;  %v1791_v49 = vadd.f32 %v1790_v26, %v4167_v18  ;;  %v2723_v19 = vld [vmem:[%s3884_s5 + $0x34] sm:$0xf0] }
 0x152   : > { %v2057_v47 = vpop.f32.mrf.mxu0  ;;  %v2729_v26 = vld [vmem:[%s3884_s5 + $0x18] sm:$0xf]  ;;  %v2726_v52 = vor.u32 %v3571_v24, %v2723_v19  ;;  %v2767_v19 = vld [vmem:[%s3884_s5 + $0x84] sm:$0xf0] }
 0x153   : > { %v4336_v41 = vadd.f32 %v2055_v21, %v1967_v27  ;;  %v3576_v27 = vld [vmem:[%s3884_s5 + $0x38] sm:$0xf0] }
 0x154   : > { %v2730_v62 = vor.u32 %v3576_v27, %v2729_v26  ;;  %v2773_v26 = vld [vmem:[%s3884_s5 + $0x68] sm:$0xf]  ;;  %v3586_v27 = vld [vmem:[%s3884_s5 + $0x88] sm:$0xf0] }
 0x156   : > { %v1879_v10 = vpop.f32.mrf.mxu2 }
 0x157   : > { %v1880_v30 = vadd.f32 %v1879_v10, %v1791_v49  ;;  %v1968_v63 = vpop.f32.mrf.mxu3 }
 0x158   : > { %v1793_v3 = vpop.f32.mrf.mxu1 }
 0x159   : > { %v1969_v9 = vadd.f32 %v1968_v63, %v1880_v30  ;;  %v1794_v12 = vadd.f32 %v1793_v3, %v4189_v38  ;;  %v2738_v30 = vor.u32 %v3577_v40, %v2737_v42 }
 0x15a   : > { %v2060_v11 = vpop.f32.mrf.mxu0 }
 0x15b   : > { %1832 = vmatmul.bf16.gmra.mxu1 %v3250_v2  ;;  %1921 = vmatmul.bf16.gmra.mxu2 %v3254_v13  ;;  %v4345_v18 = vadd.f32 %v2057_v47, %v1969_v9  ;;  %v3572_v47 = vld [vmem:[%s3884_s5 + $0x1c] sm:$0xf] }
 0x15c   : > { %2010 = vmatmul.bf16.gmra.mxu3 %v3258_v54  ;;  %v2734_v10 = vor.u32 %v3572_v47, %v2731_v35 }
 0x15d   : > { %2099 = vmatmul.bf16.gmra.mxu0 %v3262_v4 }
 0x15e   : > { %v1882_v14 = vpop.f32.mrf.mxu2 }
 0x15f   : > { %v1883_v15 = vadd.f32 %v1882_v14, %v1794_v12  ;;  %v1971_v57 = vpop.f32.mrf.mxu3  ;;  %v3580_v14 = vld [vmem:[%s3884_s5 + $0x5c] sm:$0xf] }
 0x160   : > { %v1795_v20 = vpop.f32.mrf.mxu1 }
 0x161   : > { %v1972_v21 = vadd.f32 %v1971_v57, %v1883_v15  ;;  %v1796_v28 = vadd.f32 %v1795_v20, %v4197_v46  ;;  %v2759_v15 = vld [vmem:[%s3884_s5 + $0x7c] sm:$0xf0] }
 0x162   : > { %v2062_v23 = vpop.f32.mrf.mxu0  ;;  %v2765_v20 = vld [vmem:[%s3884_s5 + $0x60] sm:$0xf]  ;;  %v2762_v35 = vor.u32 %v3580_v14, %v2759_v15  ;;  %v2803_v15 = vld [vmem:[%s3884_s5 + $0xcc] sm:$0xf0] }
 0x163   : > { %v4350_v25 = vadd.f32 %v2060_v11, %v1972_v21  ;;  %v3585_v21 = vld [vmem:[%s3884_s5 + $0x80] sm:$0xf0] }
 0x164   : > { %v2766_v42 = vor.u32 %v3585_v21, %v2765_v20  ;;  %v2809_v20 = vld [vmem:[%s3884_s5 + $0xb0] sm:$0xf]  ;;  %v3595_v21 = vld [vmem:[%s3884_s5 + $0xd0] sm:$0xf0] }
 0x166   : > { %v1884_v38 = vpop.f32.mrf.mxu2 }
 0x167   : > { %v1885_v48 = vadd.f32 %v1884_v38, %v1796_v28  ;;  %v1973_v49 = vpop.f32.mrf.mxu3 }
 0x168   : > { %v1798_v55 = vpop.f32.mrf.mxu1 }
 0x169   : > { %v1974_v63 = vadd.f32 %v1973_v49, %v1885_v48  ;;  %v1799_v13 = vadd.f32 %v1798_v55, %v4103_v36  ;;  %v2774_v48 = vor.u32 %v3586_v27, %v2773_v26 }
 0x16a   : > { %v2065_v2 = vpop.f32.mrf.mxu0 }
 0x16b   : > { %2113 = vmatmul.bf16.vlgmr.msra.gmra.mxu1 %v2726_v52  ;;  %2202 = vmatmul.bf16.vlgmr.msra.gmra.mxu2 %v2730_v62  ;;  %v4359_v46 = vadd.f32 %v2062_v23, %v1974_v63  ;;  %v3581_v23 = vld [vmem:[%s3884_s5 + $0x64] sm:$0xf] }
 0x16c   : > { %2291 = vmatmul.bf16.vlgmr.msra.gmra.mxu3 %v2734_v10  ;;  %v2770_v38 = vor.u32 %v3581_v23, %v2767_v19 }
 0x16d   : > { %2380 = vmatmul.bf16.vlgmr.msra.gmra.mxu0 %v2738_v30 }
 0x16e   : > { %v1887_v3 = vpop.f32.mrf.mxu2 }
 0x16f   : > { %v1888_v54 = vadd.f32 %v1887_v3, %v1799_v13  ;;  %v1976_v4 = vpop.f32.mrf.mxu3  ;;  %v3589_v3 = vld [vmem:[%s3884_s5 + $0xa4] sm:$0xf] }
 0x170   : > { %v1800_v9 = vpop.f32.mrf.mxu1 }
 0x171   : > { %v1977_v11 = vadd.f32 %v1976_v4, %v1888_v54  ;;  %v1801_v24 = vadd.f32 %v1800_v9, %v4125_v50  ;;  %v2795_v54 = vld [vmem:[%s3884_s5 + $0xc4] sm:$0xf0] }
 0x172   : > { %v2067_v12 = vpop.f32.mrf.mxu0  ;;  %v2801_v9 = vld [vmem:[%s3884_s5 + $0xa8] sm:$0xf]  ;;  %v2798_v19 = vor.u32 %v3589_v3, %v2795_v54  ;;  %v2839_v54 = vld [vmem:[%s3884_s5 + $0x114] sm:$0xf0] }
 0x173   : > { %v4364_v57 = vadd.f32 %v2065_v2, %v1977_v11  ;;  %v3594_v11 = vld [vmem:[%s3884_s5 + $0xc8] sm:$0xf0] }
 0x174   : > { %v2802_v26 = vor.u32 %v3594_v11, %v2801_v9  ;;  %v2845_v9 = vld [vmem:[%s3884_s5 + $0xf8] sm:$0xf]  ;;  %v3604_v11 = vld [vmem:[%s3884_s5 + $0x118] sm:$0xf0] }
 0x176   : > { %v1889_v36 = vpop.f32.mrf.mxu2 }
 0x177   : > { %v1890_v47 = vadd.f32 %v1889_v36, %v1801_v24  ;;  %v1978_v28 = vpop.f32.mrf.mxu3 }
 0x178   : > { %v1803_v40 = vpop.f32.mrf.mxu1 }
 0x179   : > { %v1979_v49 = vadd.f32 %v1978_v28, %v1890_v47  ;;  %v1804_v62 = vadd.f32 %v1803_v40, %v4133_v58  ;;  %v2810_v47 = vor.u32 %v3595_v21, %v2809_v20 }
 0x17a   : > { %v2070_v52 = vpop.f32.mrf.mxu0 }
 0x17b   : > { %2118 = vmatmul.bf16.gmra.mxu1 %v2762_v35  ;;  %2207 = vmatmul.bf16.gmra.mxu2 %v2766_v42  ;;  %v4373_v50 = vadd.f32 %v2067_v12, %v1979_v49  ;;  %v3590_v12 = vld [vmem:[%s3884_s5 + $0xac] sm:$0xf] }
 0x17c   : > { %2296 = vmatmul.bf16.gmra.mxu3 %v2770_v38  ;;  %v2806_v36 = vor.u32 %v3590_v12, %v2803_v15 }
 0x17d   : > { %2385 = vmatmul.bf16.gmra.mxu0 %v2774_v48 }
 0x17e   : > { %v1892_v55 = vpop.f32.mrf.mxu2 }
 0x17f   : > { %v1893_v10 = vadd.f32 %v1892_v55, %v1804_v62  ;;  %v1981_v30 = vpop.f32.mrf.mxu3  ;;  %v3598_v55 = vld [vmem:[%s3884_s5 + $0xec] sm:$0xf] }
 0x180   : > { %v1805_v63 = vpop.f32.mrf.mxu1 }
 0x181   : > { %v1982_v2 = vadd.f32 %v1981_v30, %v1893_v10  ;;  %v1806_v14 = vadd.f32 %v1805_v63, %v4149_v6  ;;  %v2831_v10 = vld [vmem:[%s3884_s5 + $0x10c] sm:$0xf0] }
 0x182   : > { %v2072_v13 = vpop.f32.mrf.mxu0  ;;  %v2837_v63 = vld [vmem:[%s3884_s5 + $0xf0] sm:$0xf]  ;;  %v2834_v15 = vor.u32 %v3598_v55, %v2831_v10  ;;  %v2875_v10 = vld [vmem:[%s3884_s5 + $0x15c] sm:$0xf0] }
 0x183   : > { %v4378_v4 = vadd.f32 %v2070_v52, %v1982_v2  ;;  %v3603_v2 = vld [vmem:[%s3884_s5 + $0x110] sm:$0xf0] }
 0x184   : > { %v2838_v20 = vor.u32 %v3603_v2, %v2837_v63  ;;  %v2881_v63 = vld [vmem:[%s3884_s5 + $0x140] sm:$0xf]  ;;  %v3613_v2 = vld [vmem:[%s3884_s5 + $0x160] sm:$0xf0] }
 0x186   : > { %v1894_v58 = vpop.f32.mrf.mxu2 }
 0x187   : > { %v1895_v23 = vadd.f32 %v1894_v58, %v1806_v14  ;;  %v1983_v24 = vpop.f32.mrf.mxu3 }
 0x188   : > { %v1808_v27 = vpop.f32.mrf.mxu1 }
 0x189   : > { %v1984_v28 = vadd.f32 %v1983_v24, %v1895_v23  ;;  %v1809_v42 = vadd.f32 %v1808_v27, %v4163_v16  ;;  %v2846_v23 = vor.u32 %v3604_v11, %v2845_v9 }
 0x18a   : > { %v2075_v35 = vpop.f32.mrf.mxu0 }
 0x18b   : > { %2123 = vmatmul.bf16.gmra.mxu1 %v2798_v19  ;;  %2212 = vmatmul.bf16.gmra.mxu2 %v2802_v26  ;;  %v4387_v6 = vadd.f32 %v2072_v13, %v1984_v28  ;;  %v3599_v13 = vld [vmem:[%s3884_s5 + $0xf4] sm:$0xf] }
 0x18c   : > { %2301 = vmatmul.bf16.gmra.mxu3 %v2806_v36  ;;  %v2842_v58 = vor.u32 %v3599_v13, %v2839_v54 }
 0x18d   : > { %2390 = vmatmul.bf16.gmra.mxu0 %v2810_v47 }
 0x18e   : > { %v1897_v40 = vpop.f32.mrf.mxu2 }
 0x18f   : > { %v1898_v38 = vadd.f32 %v1897_v40, %v1809_v42  ;;  %v1986_v48 = vpop.f32.mrf.mxu3  ;;  %v3607_v40 = vld [vmem:[%s3884_s5 + $0x134] sm:$0xf] }
 0x190   : > { %v1810_v49 = vpop.f32.mrf.mxu1 }
 0x191   : > { %v1987_v52 = vadd.f32 %v1986_v48, %v1898_v38  ;;  %v1811_v3 = vadd.f32 %v1810_v49, %v4185_v31  ;;  %v2867_v38 = vld [vmem:[%s3884_s5 + $0x154] sm:$0xf0] }
 0x192   : > { %v2077_v62 = vpop.f32.mrf.mxu0  ;;  %v2873_v49 = vld [vmem:[%s3884_s5 + $0x138] sm:$0xf]  ;;  %v2870_v54 = vor.u32 %v3607_v40, %v2867_v38  ;;  %v2911_v38 = vld [vmem:[%s3884_s5 + $0x1a4] sm:$0xf0] }
 0x193   : > { %v4392_v30 = vadd.f32 %v2075_v35, %v1987_v52  ;;  %v3612_v52 = vld [vmem:[%s3884_s5 + $0x158] sm:$0xf0] }
 0x194   : > { %v2874_v9 = vor.u32 %v3612_v52, %v2873_v49  ;;  %v2917_v49 = vld [vmem:[%s3884_s5 + $0x188] sm:$0xf]  ;;  %v3622_v52 = vld [vmem:[%s3884_s5 + $0x1a8] sm:$0xf0] }
 0x196   : > { %v1899_v16 = vpop.f32.mrf.mxu2 }
 0x197   : > { %v1900_v12 = vadd.f32 %v1899_v16, %v1811_v3  ;;  %v1988_v14 = vpop.f32.mrf.mxu3 }
 0x198   : > { %v1813_v21 = vpop.f32.mrf.mxu1 }
 0x199   : > { %v1989_v24 = vadd.f32 %v1988_v14, %v1900_v12  ;;  %v1814_v26 = vadd.f32 %v1813_v21, %v4193_v44  ;;  %v2882_v12 = vor.u32 %v3613_v2, %v2881_v63 }
 0x19a   : > { %v2080_v19 = vpop.f32.mrf.mxu0 }
 0x19b   : > { %2128 = vmatmul.bf16.gmra.mxu1 %v2834_v15  ;;  %2217 = vmatmul.bf16.gmra.mxu2 %v2838_v20  ;;  %v4401_v31 = vadd.f32 %v2077_v62, %v1989_v24  ;;  %v3608_v62 = vld [vmem:[%s3884_s5 + $0x13c] sm:$0xf] }
 0x19c   : > { %2306 = vmatmul.bf16.gmra.mxu3 %v2842_v58  ;;  %v2878_v16 = vor.u32 %v3608_v62, %v2875_v10 }
 0x19d   : > { %2395 = vmatmul.bf16.gmra.mxu0 %v2846_v23 }
 0x19e   : > { %v1902_v27 = vpop.f32.mrf.mxu2 }
 0x19f   : > { %v1903_v36 = vadd.f32 %v1902_v27, %v1814_v26  ;;  %v1991_v47 = vpop.f32.mrf.mxu3  ;;  %v3616_v27 = vld [vmem:[%s3884_s5 + $0x17c] sm:$0xf] }
 0x1a0   : > { %v1815_v28 = vpop.f32.mrf.mxu1 }
 0x1a1   : > { %v1992_v35 = vadd.f32 %v1991_v47, %v1903_v36  ;;  %v1816_v55 = vadd.f32 %v1815_v28, %v4209_v0  ;;  %v2903_v36 = vld [vmem:[%s3884_s5 + $0x19c] sm:$0xf0] }
 0x1a2   : > { %v2082_v42 = vpop.f32.mrf.mxu0  ;;  %v2909_v28 = vld [vmem:[%s3884_s5 + $0x180] sm:$0xf]  ;;  %v2906_v10 = vor.u32 %v3616_v27, %v2903_v36  ;;  %v2947_v36 = vld [vmem:[%s3884_s5 + $0x1ec] sm:$0xf0] }
 0x1a3   : > { %v4406_v48 = vadd.f32 %v2080_v19, %v1992_v35  ;;  %v3621_v35 = vld [vmem:[%s3884_s5 + $0x1a0] sm:$0xf0] }
 0x1a4   : > { %v2910_v63 = vor.u32 %v3621_v35, %v2909_v28  ;;  %v2953_v28 = vld [vmem:[%s3884_s5 + $0x1d0] sm:$0xf]  ;;  %v3631_v35 = vld [vmem:[%s3884_s5 + $0x1f0] sm:$0xf0] }
 0x1a6   : > { %v1904_v44 = vpop.f32.mrf.mxu2 }
 0x1a7   : > { %v1905_v13 = vadd.f32 %v1904_v44, %v1816_v55  ;;  %v1993_v3 = vpop.f32.mrf.mxu3 }
 0x1a8   : > { %v1818_v11 = vpop.f32.mrf.mxu1 }
 0x1a9   : > { %v1994_v14 = vadd.f32 %v1993_v3, %v1905_v13  ;;  %v1819_v20 = vadd.f32 %v1818_v11, %v4105_v37  ;;  %v2918_v13 = vor.u32 %v3622_v52, %v2917_v49 }
 0x1aa   : > { %v2085_v15 = vpop.f32.mrf.mxu0 }
 0x1ab   : > { %2133 = vmatmul.bf16.gmra.mxu1 %v2870_v54  ;;  %2222 = vmatmul.bf16.gmra.mxu2 %v2874_v9  ;;  %v4415_v0 = vadd.f32 %v2082_v42, %v1994_v14  ;;  %v3617_v42 = vld [vmem:[%s3884_s5 + $0x184] sm:$0xf] }
 0x1ac   : > { %2311 = vmatmul.bf16.gmra.mxu3 %v2878_v16  ;;  %v2914_v44 = vor.u32 %v3617_v42, %v2911_v38 }
 0x1ad   : > { %2400 = vmatmul.bf16.gmra.mxu0 %v2882_v12 }
 0x1ae   : > { %v1907_v21 = vpop.f32.mrf.mxu2 }
 0x1af   : > { %v1908_v58 = vadd.f32 %v1907_v21, %v1819_v20  ;;  %v1996_v23 = vpop.f32.mrf.mxu3  ;;  %v3625_v21 = vld [vmem:[%s3884_s5 + $0x1c4] sm:$0xf] }
 0x1b0   : > { %v1820_v24 = vpop.f32.mrf.mxu1 }
 0x1b1   : > { %v1997_v19 = vadd.f32 %v1996_v23, %v1908_v58  ;;  %v1821_v40 = vadd.f32 %v1820_v24, %v4127_v51  ;;  %v2939_v58 = vld [vmem:[%s3884_s5 + $0x1e4] sm:$0xf0] }
 0x1b2   : > { %v2087_v26 = vpop.f32.mrf.mxu0  ;;  %v2945_v24 = vld [vmem:[%s3884_s5 + $0x1c8] sm:$0xf]  ;;  %v2942_v38 = vor.u32 %v3625_v21, %v2939_v58  ;;  %v2983_v58 = vld [vmem:[%s3884_s5 + $0x234] sm:$0xf0] }
 0x1b3   : > { %v4420_v47 = vadd.f32 %v2085_v15, %v1997_v19  ;;  %v3630_v19 = vld [vmem:[%s3884_s5 + $0x1e8] sm:$0xf0] }
 0x1b4   : > { %v2946_v49 = vor.u32 %v3630_v19, %v2945_v24  ;;  %v2989_v24 = vld [vmem:[%s3884_s5 + $0x218] sm:$0xf]  ;;  %v3640_v19 = vld [vmem:[%s3884_s5 + $0x238] sm:$0xf0] }
 0x1b6   : > { %v1909_v37 = vpop.f32.mrf.mxu2 }
 0x1b7   : > { %v1910_v62 = vadd.f32 %v1909_v37, %v1821_v40  ;;  %v1998_v55 = vpop.f32.mrf.mxu3 }
 0x1b8   : > { %v1823_v2 = vpop.f32.mrf.mxu1 }
 0x1b9   : > { %v1999_v3 = vadd.f32 %v1998_v55, %v1910_v62  ;;  %v1824_v9 = vadd.f32 %v1823_v2, %v4135_v59  ;;  %v2954_v62 = vor.u32 %v3631_v35, %v2953_v28 }
 0x1ba   : > { %v2090_v54 = vpop.f32.mrf.mxu0 }
 0x1bb   : > { %2138 = vmatmul.bf16.gmra.mxu1 %v2906_v10  ;;  %2227 = vmatmul.bf16.gmra.mxu2 %v2910_v63  ;;  %v4429_v51 = vadd.f32 %v2087_v26, %v1999_v3  ;;  %v3626_v26 = vld [vmem:[%s3884_s5 + $0x1cc] sm:$0xf] }
 0x1bc   : > { %2316 = vmatmul.bf16.gmra.mxu3 %v2914_v44  ;;  %v2950_v37 = vor.u32 %v3626_v26, %v2947_v36 }
 0x1bd   : > { %2405 = vmatmul.bf16.gmra.mxu0 %v2918_v13 }
 0x1be   : > { %v1912_v11 = vpop.f32.mrf.mxu2 }
 0x1bf   : > { %v1913_v16 = vadd.f32 %v1912_v11, %v1824_v9  ;;  %v2001_v12 = vpop.f32.mrf.mxu3  ;;  %v3634_v11 = vld [vmem:[%s3884_s5 + $0x20c] sm:$0xf] }
 0x1c0   : > { %v1825_v14 = vpop.f32.mrf.mxu1 }
 0x1c1   : > { %v2002_v15 = vadd.f32 %v2001_v12, %v1913_v16  ;;  %v1826_v27 = vadd.f32 %v1825_v14, %v4151_v7  ;;  %v2975_v16 = vld [vmem:[%s3884_s5 + $0x22c] sm:$0xf0] }
 0x1c2   : > { %v2092_v20 = vpop.f32.mrf.mxu0  ;;  %v2981_v14 = vld [vmem:[%s3884_s5 + $0x210] sm:$0xf]  ;;  %v2978_v36 = vor.u32 %v3634_v11, %v2975_v16  ;;  %v3019_v16 = vld [vmem:[%s3884_s5 + $0x27c] sm:$0xf0] }
 0x1c3   : > { %v4434_v23 = vadd.f32 %v2090_v54, %v2002_v15  ;;  %v3639_v15 = vld [vmem:[%s3884_s5 + $0x230] sm:$0xf0] }
 0x1c4   : > { %v2982_v28 = vor.u32 %v3639_v15, %v2981_v14  ;;  %v3025_v14 = vld [vmem:[%s3884_s5 + $0x260] sm:$0xf]  ;;  %v3649_v15 = vld [vmem:[%s3884_s5 + $0x280] sm:$0xf0] }
 0x1c6   : > { %v1914_v59 = vpop.f32.mrf.mxu2 }
 0x1c7   : > { %v1915_v42 = vadd.f32 %v1914_v59, %v1826_v27  ;;  %v2003_v40 = vpop.f32.mrf.mxu3 }
 0x1c8   : > { %v1828_v52 = vpop.f32.mrf.mxu1 }
 0x1c9   : > { %v2004_v55 = vadd.f32 %v2003_v40, %v1915_v42  ;;  %v1829_v63 = vadd.f32 %v1828_v52, %v4165_v17  ;;  %v2990_v42 = vor.u32 %v3640_v19, %v2989_v24 }
 0x1ca   : > { %v2095_v10 = vpop.f32.mrf.mxu0 }
 0x1cb   : > { %2143 = vmatmul.bf16.gmra.mxu1 %v2942_v38  ;;  %2232 = vmatmul.bf16.gmra.mxu2 %v2946_v49  ;;  %v4443_v7 = vadd.f32 %v2092_v20, %v2004_v55  ;;  %v3635_v20 = vld [vmem:[%s3884_s5 + $0x214] sm:$0xf] }
 0x1cc   : > { %2321 = vmatmul.bf16.gmra.mxu3 %v2950_v37  ;;  %v2986_v59 = vor.u32 %v3635_v20, %v2983_v58 }
 0x1cd   : > { %2410 = vmatmul.bf16.gmra.mxu0 %v2954_v62 }
 0x1ce   : > { %v1917_v2 = vpop.f32.mrf.mxu2 }
 0x1cf   : > { %v1918_v44 = vadd.f32 %v1917_v2, %v1829_v63  ;;  %v2006_v13 = vpop.f32.mrf.mxu3  ;;  %v3643_v2 = vld [vmem:[%s3884_s5 + $0x254] sm:$0xf] }
 0x1d0   : > { %v1830_v3 = vpop.f32.mrf.mxu1 }
 0x1d1   : > { %v2007_v54 = vadd.f32 %v2006_v13, %v1918_v44  ;;  %v1831_v21 = vadd.f32 %v1830_v3, %v4187_v32  ;;  %v3011_v44 = vld [vmem:[%s3884_s5 + $0x274] sm:$0xf0] }
 0x1d2   : > { %v2097_v9 = vpop.f32.mrf.mxu0  ;;  %v3017_v3 = vld [vmem:[%s3884_s5 + $0x258] sm:$0xf]  ;;  %v3014_v58 = vor.u32 %v3643_v2, %v3011_v44  ;;  %v3055_v2 = vld [vmem:[%s3884_s5 + $0x2c4] sm:$0xf0] }
 0x1d3   : > { %v4448_v12 = vadd.f32 %v2095_v10, %v2007_v54  ;;  %v3648_v54 = vld [vmem:[%s3884_s5 + $0x278] sm:$0xf0]  ;;  %v3061_v44 = vld [vmem:[%s3884_s5 + $0x2a8] sm:$0xf] }
 0x1d4   : > { %v3018_v24 = vor.u32 %v3648_v54, %v3017_v3  ;;  %v3658_v3 = vld [vmem:[%s3884_s5 + $0x2c8] sm:$0xf0] }
 0x1d6   : > { %v1919_v17 = vpop.f32.mrf.mxu2 }
 0x1d7   : > { %v1920_v26 = vadd.f32 %v1919_v17, %v1831_v21  ;;  %v2008_v27 = vpop.f32.mrf.mxu3 }
 0x1d8   : > { %v1833_v35 = vpop.f32.mrf.mxu1 }
 0x1d9   : > { %v2009_v40 = vadd.f32 %v2008_v27, %v1920_v26  ;;  %v1834_v49 = vadd.f32 %v1833_v35, %v4195_v45  ;;  %v3026_v26 = vor.u32 %v3649_v15, %v3025_v14 }
 0x1da   : > { %v2100_v38 = vpop.f32.mrf.mxu0 }
 0x1db   : > { %2148 = vmatmul.bf16.gmra.mxu1 %v2978_v36  ;;  %2237 = vmatmul.bf16.gmra.mxu2 %v2982_v28  ;;  %v4457_v32 = vadd.f32 %v2097_v9, %v2009_v40  ;;  %v3644_v9 = vld [vmem:[%s3884_s5 + $0x25c] sm:$0xf] }
 0x1dc   : > { %2326 = vmatmul.bf16.gmra.mxu3 %v2986_v59  ;;  %v3022_v17 = vor.u32 %v3644_v9, %v3019_v16 }
 0x1dd   : > { %2415 = vmatmul.bf16.gmra.mxu0 %v2990_v42 }
 0x1de   : > { %v1922_v52 = vpop.f32.mrf.mxu2 }
 0x1df   : > { %v1923_v37 = vadd.f32 %v1922_v52, %v1834_v49  ;;  %v2011_v62 = vpop.f32.mrf.mxu3 }
 0x1e0   : > { %v1835_v55 = vpop.f32.mrf.mxu1 }
 0x1e1   : > { %v2012_v10 = vadd.f32 %v2011_v62, %v1923_v37  ;;  %v1836_v11 = vadd.f32 %v1835_v55, %v4211_v1  ;;  %v3652_v37 = vld [vmem:[%s3884_s5 + $0x29c] sm:$0xf]  ;;  %v3047_v62 = vld [vmem:[%s3884_s5 + $0x2bc] sm:$0xf0]  ;;  %v3657_v55 = vld [vmem:[%s3884_s5 + $0x2c0] sm:$0xf0] }
 0x1e2   : > { %v2102_v63 = vpop.f32.mrf.mxu0  ;;  %v3050_v16 = vor.u32 %v3652_v37, %v3047_v62  ;;  %v3083_v37 = vld [vmem:[%s3884_s5 + $0x304] sm:$0xf0] }
 0x1e3   : > { %v4462_v13 = vadd.f32 %v2100_v38, %v2012_v10  ;;  %v3653_v10 = vld [vmem:[%s3884_s5 + $0x2a4] sm:$0xf]  ;;  %v3089_v62 = vld [vmem:[%s3884_s5 + $0x2e8] sm:$0xf] }
 0x1e6   : > { %v1924_v45 = vpop.f32.mrf.mxu2 }
 0x1e7   : > { %v1925_v20 = vadd.f32 %v1924_v45, %v1836_v11  ;;  %v2013_v21 = vpop.f32.mrf.mxu3  ;;  %v3058_v45 = vor.u32 %v3653_v10, %v3055_v2  ;;  %v3097_v2 = vld [vmem:[%s3884_s5 + $0x2f0] sm:$0xf] }
 0x1e8   : > { %v2114_v19 = vpop.f32.mrf.mxu1 }
 0x1e9   : > { %v2014_v27 = vadd.f32 %v2013_v21, %v1925_v20  ;;  %v2115_v28 = vadd.f32 %v2114_v19, %v4229_v29  ;;  %v3053_v29 = vld [vmem:[%s3884_s5 + $0x2a0] sm:$0xf]  ;;  %v3062_v20 = vor.u32 %v3658_v3, %v3061_v44  ;;  %v3667_v44 = vld [vmem:[%s3884_s5 + $0x310] sm:$0xf0] }
 0x1ea   : > { %v2381_v36 = vpop.f32.mrf.mxu0  ;;  %v3054_v14 = vor.u32 %v3657_v55, %v3053_v29  ;;  %v3666_v29 = vld [vmem:[%s3884_s5 + $0x308] sm:$0xf0]  ;;  %v3091_v55 = vld [vmem:[%s3884_s5 + $0x30c] sm:$0xf0] }
 0x1eb   : > { %2153 = vmatmul.bf16.gmra.mxu1 %v3014_v58  ;;  %2242 = vmatmul.bf16.gmra.mxu2 %v3018_v24  ;;  %v4471_v1 = vadd.f32 %v2102_v63, %v2014_v27 }
 0x1ec   : > { %2331 = vmatmul.bf16.gmra.mxu3 %v3022_v17 }
 0x1ed   : > { %2420 = vmatmul.bf16.gmra.mxu0 %v3026_v26 }
 0x1ee   : > { %v2203_v35 = vpop.f32.mrf.mxu2 }
 0x1ef   : > { %v2204_v59 = vadd.f32 %v2203_v35, %v2115_v28  ;;  %v2292_v42 = vpop.f32.mrf.mxu3 }
 0x1f0   : > { %v2116_v40 = vpop.f32.mrf.mxu1 }
 0x1f1   : > { %v2293_v38 = vadd.f32 %v2292_v42, %v2204_v59  ;;  %v2117_v63 = vadd.f32 %v2116_v40, %v4238_v8 }
 0x1f2   : > { %v2383_v49 = vpop.f32.mrf.mxu0 }
 0x1f3   : > { %v2382_v52 = vadd.f32 %v2381_v36, %v2293_v38 }
 0x1f5   : > { %2461 = vst [vmem:[%s4478_s27] sm:$0xff] %v2382_v52  ;;  %v2530_v8 = vmul.f32 %v2382_v52, %v2382_v52 }
 0x1f6   : > { %v2205_v54 = vpop.f32.mrf.mxu2 }
 0x1f7   : > { %v2206_v9 = vadd.f32 %v2205_v54, %v2117_v63  ;;  %v2294_v11 = vpop.f32.mrf.mxu3 }
 0x1f8   : > { %v2119_v15 = vpop.f32.mrf.mxu1 }
 0x1f9   : > { %v2295_v21 = vadd.f32 %v2294_v11, %v2206_v9  ;;  %v2120_v26 = vadd.f32 %v2119_v15, %v4243_v22 }
 0x1fa   : > { %v2386_v58 = vpop.f32.mrf.mxu0 }
 0x1fb   : > { %v2384_v24 = vadd.f32 %v2383_v49, %v2295_v21  ;;  %2158 = vmatmul.bf16.gmra.mxu1 %v3050_v16  ;;  %2247 = vmatmul.bf16.gmra.mxu2 %v3054_v14  ;;  %v3661_v49 = vld [vmem:[%s3884_s5 + $0x2e4] sm:$0xf]  ;;  %v3090_v14 = vor.u32 %v3666_v29, %v3089_v62  ;;  %v3671_v62 = vld [vmem:[%s3884_s5 + $0x334] sm:$0xf]  ;;  %v3127_v29 = vld [vmem:[%s3884_s5 + $0x354] sm:$0xf0] }
 0x1fc   : > { %2336 = vmatmul.bf16.gmra.mxu3 %v3058_v45  ;;  %v3086_v16 = vor.u32 %v3661_v49, %v3083_v37  ;;  %v3125_v49 = vld [vmem:[%s3884_s5 + $0x330] sm:$0xf]  ;;  %v3675_v37 = vld [vmem:[%s3884_s5 + $0x350] sm:$0xf0] }
 0x1fd   : > { %2425 = vmatmul.bf16.gmra.mxu0 %v3062_v20  ;;  %2462 = vst [vmem:[%s4478_s27 + $0x8] sm:$0xff] %v2384_v24  ;;  %v2493_v19 = vadd.f32 %v2384_v24, %v2382_v52  ;;  %v2531_v17 = vmul.f32 %v2384_v24, %v2384_v24  ;;  %v3662_v52 = vld [vmem:[%s3884_s5 + $0x2ec] sm:$0xf]  ;;  %v3098_v20 = vor.u32 %v3667_v44, %v3097_v2 }
 0x1fe   : > { %v2208_v27 = vpop.f32.mrf.mxu2  ;;  %v3094_v45 = vor.u32 %v3662_v52, %v3091_v55 }
 0x1ff   : > { %v2562_v36 = vadd.f32 %v2531_v17, %v2530_v8  ;;  %v2209_v28 = vadd.f32 %v2208_v27, %v2120_v26  ;;  %v2297_v35 = vpop.f32.mrf.mxu3 }
 0x200   : > { %v2121_v59 = vpop.f32.mrf.mxu1 }
 0x201   : > { %v2298_v42 = vadd.f32 %v2297_v35, %v2209_v28  ;;  %v2122_v22 = vadd.f32 %v2121_v59, %v4252_v56 }
 0x202   : > { %v2388_v40 = vpop.f32.mrf.mxu0 }
 0x203   : > { %v2387_v38 = vadd.f32 %v2386_v58, %v2298_v42 }
 0x205   : > { %2463 = vst [vmem:[%s4478_s27 + $0x10] sm:$0xff] %v2387_v38  ;;  %v2494_v10 = vadd.f32 %v2493_v19, %v2387_v38  ;;  %v2532_v63 = vmul.f32 %v2387_v38, %v2387_v38  ;;  %v3119_v38 = vld [vmem:[%s3884_s5 + $0x34c] sm:$0xf0] }
 0x206   : > { %v2210_v3 = vpop.f32.mrf.mxu2 }
 0x207   : > { %v2563_v54 = vadd.f32 %v2562_v36, %v2532_v63  ;;  %v2211_v9 = vadd.f32 %v2210_v3, %v2122_v22  ;;  %v2299_v11 = vpop.f32.mrf.mxu3  ;;  %v3676_v63 = vld [vmem:[%s3884_s5 + $0x358] sm:$0xf0] }
 0x208   : > { %v2124_v15 = vpop.f32.mrf.mxu1 }
 0x209   : > { %v2300_v21 = vadd.f32 %v2299_v11, %v2211_v9  ;;  %v2125_v19 = vadd.f32 %v2124_v15, %v4269_v33  ;;  %v3126_v9 = vor.u32 %v3675_v37, %v3125_v49 }
 0x20a   : > { %v2391_v58 = vpop.f32.mrf.mxu0 }
 0x20b   : > { %v2389_v24 = vadd.f32 %v2388_v40, %v2300_v21  ;;  %2163 = vmatmul.bf16.gmra.mxu1 %v3086_v16  ;;  %2252 = vmatmul.bf16.gmra.mxu2 %v3090_v14  ;;  %v3670_v40 = vld [vmem:[%s3884_s5 + $0x32c] sm:$0xf]  ;;  %v3130_v16 = vor.u32 %v3671_v62, %v3127_v29  ;;  %v3169_v62 = vld [vmem:[%s3884_s5 + $0x380] sm:$0xf]  ;;  %v3685_v29 = vld [vmem:[%s3884_s5 + $0x3a0] sm:$0xf0] }
 0x20c   : > { %2341 = vmatmul.bf16.gmra.mxu3 %v3094_v45 }
 0x20d   : > { %2430 = vmatmul.bf16.gmra.mxu0 %v3098_v20  ;;  %2464 = vst [vmem:[%s4478_s27 + $0x18] sm:$0xff] %v2389_v24  ;;  %v2495_v56 = vadd.f32 %v2494_v10, %v2389_v24  ;;  %v2533_v8 = vmul.f32 %v2389_v24, %v2389_v24  ;;  %v3133_v10 = vld [vmem:[%s3884_s5 + $0x338] sm:$0xf] }
 0x20e   : > { %v2213_v17 = vpop.f32.mrf.mxu2  ;;  %v3134_v14 = vor.u32 %v3676_v63, %v3133_v10 }
 0x20f   : > { %v2564_v26 = vadd.f32 %v2563_v54, %v2533_v8  ;;  %v2214_v27 = vadd.f32 %v2213_v17, %v2125_v19  ;;  %v2302_v36 = vpop.f32.mrf.mxu3  ;;  %v3122_v54 = vor.u32 %v3670_v40, %v3119_v38  ;;  %v3680_v40 = vld [vmem:[%s3884_s5 + $0x37c] sm:$0xf]  ;;  %v3163_v38 = vld [vmem:[%s3884_s5 + $0x39c] sm:$0xf0] }
 0x210   : > { %v2126_v28 = vpop.f32.mrf.mxu1 }
 0x211   : > { %v2303_v35 = vadd.f32 %v2302_v36, %v2214_v27  ;;  %v2127_v33 = vadd.f32 %v2126_v28, %v4278_v61  ;;  %v3679_v28 = vld [vmem:[%s3884_s5 + $0x374] sm:$0xf] }
 0x212   : > { %v2393_v59 = vpop.f32.mrf.mxu0 }
 0x213   : > { %v2392_v42 = vadd.f32 %v2391_v58, %v2303_v35  ;;  %v3155_v35 = vld [vmem:[%s3884_s5 + $0x394] sm:$0xf0] }
 0x214   : > { %v3158_v63 = vor.u32 %v3679_v28, %v3155_v35 }
 0x215   : > { %2465 = vst [vmem:[%s4478_s27 + $0x20] sm:$0xff] %v2392_v42  ;;  %v2496_v52 = vadd.f32 %v2495_v56, %v2392_v42  ;;  %v2534_v55 = vmul.f32 %v2392_v42, %v2392_v42  ;;  %v3684_v42 = vld [vmem:[%s3884_s5 + $0x398] sm:$0xf0] }
 0x216   : > { %v2215_v22 = vpop.f32.mrf.mxu2 }
 0x217   : > { %v2565_v2 = vadd.f32 %v2564_v26, %v2534_v55  ;;  %v2216_v44 = vadd.f32 %v2215_v22, %v2127_v33  ;;  %v2304_v3 = vpop.f32.mrf.mxu3 }
 0x218   : > { %v2129_v11 = vpop.f32.mrf.mxu1 }
 0x219   : > { %v2305_v15 = vadd.f32 %v2304_v3, %v2216_v44  ;;  %v2130_v58 = vadd.f32 %v2129_v11, %v4283_v5  ;;  %v3166_v44 = vor.u32 %v3680_v40, %v3163_v38  ;;  %v3170_v3 = vor.u32 %v3685_v29, %v3169_v62 }
 0x21a   : > { %v2396_v45 = vpop.f32.mrf.mxu0 }
 0x21b   : > { %v2394_v20 = vadd.f32 %v2393_v59, %v2305_v15  ;;  %2168 = vmatmul.bf16.gmra.mxu1 %v3122_v54  ;;  %2257 = vmatmul.bf16.gmra.mxu2 %v3126_v9  ;;  %v3161_v59 = vld [vmem:[%s3884_s5 + $0x378] sm:$0xf] }
 0x21c   : > { %2346 = vmatmul.bf16.gmra.mxu3 %v3130_v16  ;;  %v3162_v22 = vor.u32 %v3684_v42, %v3161_v59  ;;  %v3205_v59 = vld [vmem:[%s3884_s5 + $0x3c8] sm:$0xf]  ;;  %v3694_v42 = vld [vmem:[%s3884_s5 + $0x3e8] sm:$0xf0] }
 0x21d   : > { %2435 = vmatmul.bf16.gmra.mxu0 %v3134_v14  ;;  %2466 = vst [vmem:[%s4478_s27 + $0x28] sm:$0xff] %v2394_v20  ;;  %v2497_v61 = vadd.f32 %v2496_v52, %v2394_v20  ;;  %v2535_v21 = vmul.f32 %v2394_v20, %v2394_v20 }
 0x21e   : > { %v2218_v24 = vpop.f32.mrf.mxu2 }
 0x21f   : > { %v2566_v56 = vadd.f32 %v2565_v2, %v2535_v21  ;;  %v2219_v8 = vadd.f32 %v2218_v24, %v2130_v58  ;;  %v2307_v19 = vpop.f32.mrf.mxu3 }
 0x220   : > { %v2131_v17 = vpop.f32.mrf.mxu1 }
 0x221   : > { %v2308_v26 = vadd.f32 %v2307_v19, %v2219_v8  ;;  %v2132_v5 = vadd.f32 %v2131_v17, %v4291_v34  ;;  %v3688_v8 = vld [vmem:[%s3884_s5 + $0x3bc] sm:$0xf]  ;;  %v3191_v19 = vld [vmem:[%s3884_s5 + $0x3dc] sm:$0xf0] }
 0x222   : > { %v2398_v27 = vpop.f32.mrf.mxu0  ;;  %v3197_v17 = vld [vmem:[%s3884_s5 + $0x3c0] sm:$0xf] }
 0x223   : > { %v2397_v36 = vadd.f32 %v2396_v45, %v2308_v26  ;;  %v3693_v26 = vld [vmem:[%s3884_s5 + $0x3e0] sm:$0xf0] }
 0x224   : > { %v3198_v62 = vor.u32 %v3693_v26, %v3197_v17 }
 0x225   : > { %2467 = vst [vmem:[%s4478_s27 + $0x30] sm:$0xff] %v2397_v36  ;;  %v2498_v49 = vadd.f32 %v2497_v61, %v2397_v36  ;;  %v2536_v37 = vmul.f32 %v2397_v36, %v2397_v36  ;;  %v3199_v36 = vld [vmem:[%s3884_s5 + $0x3e4] sm:$0xf0] }
 0x226   : > { %v2220_v52 = vpop.f32.mrf.mxu2 }
 0x227   : > { %v2567_v55 = vadd.f32 %v2566_v56, %v2536_v37  ;;  %v2221_v33 = vadd.f32 %v2220_v52, %v2132_v5  ;;  %v2309_v10 = vpop.f32.mrf.mxu3  ;;  %v3194_v5 = vor.u32 %v3688_v8, %v3191_v19  ;;  %v3241_v8 = vld [vmem:[%s3884_s5 + $0x410] sm:$0xf]  ;;  %v3703_v19 = vld [vmem:[%s3884_s5 + $0x430] sm:$0xf0] }
 0x228   : > { %v2134_v2 = vpop.f32.mrf.mxu1 }
 0x229   : > { %v2310_v54 = vadd.f32 %v2309_v10, %v2221_v33  ;;  %v2135_v14 = vadd.f32 %v2134_v2, %v4308_v43 }
 0x22a   : > { %v2401_v9 = vpop.f32.mrf.mxu0 }
 0x22b   : > { %v2399_v11 = vadd.f32 %v2398_v27, %v2310_v54  ;;  %2173 = vmatmul.bf16.gmra.mxu1 %v3158_v63  ;;  %2262 = vmatmul.bf16.gmra.mxu2 %v3162_v22  ;;  %v3689_v27 = vld [vmem:[%s3884_s5 + $0x3c4] sm:$0xf] }
 0x22c   : > { %2351 = vmatmul.bf16.gmra.mxu3 %v3166_v44  ;;  %v3202_v52 = vor.u32 %v3689_v27, %v3199_v36 }
 0x22d   : > { %2440 = vmatmul.bf16.gmra.mxu0 %v3170_v3  ;;  %2468 = vst [vmem:[%s4478_s27 + $0x38] sm:$0xff] %v2399_v11  ;;  %v2499_v34 = vadd.f32 %v2498_v49, %v2399_v11  ;;  %v2537_v16 = vmul.f32 %v2399_v11, %v2399_v11 }
 0x22e   : > { %v2223_v15 = vpop.f32.mrf.mxu2 }
 0x22f   : > { %v2568_v45 = vadd.f32 %v2567_v55, %v2537_v16  ;;  %v2224_v20 = vadd.f32 %v2223_v15, %v2135_v14  ;;  %v2312_v61 = vpop.f32.mrf.mxu3  ;;  %v3206_v55 = vor.u32 %v3694_v42, %v3205_v59  ;;  %v3697_v15 = vld [vmem:[%s3884_s5 + $0x404] sm:$0xf]  ;;  %v3242_v42 = vor.u32 %v3703_v19, %v3241_v8 }
 0x230   : > { %v2136_v21 = vpop.f32.mrf.mxu1 }
 0x231   : > { %v2313_v58 = vadd.f32 %v2312_v61, %v2224_v20  ;;  %v2137_v43 = vadd.f32 %v2136_v21, %v4317_v39  ;;  %v3233_v20 = vld [vmem:[%s3884_s5 + $0x408] sm:$0xf]  ;;  %v3702_v61 = vld [vmem:[%s3884_s5 + $0x428] sm:$0xf0] }
 0x232   : > { %v2403_v24 = vpop.f32.mrf.mxu0  ;;  %v3698_v21 = vld [vmem:[%s3884_s5 + $0x40c] sm:$0xf] }
 0x233   : > { %v2402_v56 = vadd.f32 %v2401_v9, %v2313_v58  ;;  %v3235_v58 = vld [vmem:[%s3884_s5 + $0x42c] sm:$0xf0] }
 0x234   : > { %v3238_v59 = vor.u32 %v3698_v21, %v3235_v58 }
 0x235   : > { %2469 = vst [vmem:[%s4478_s27 + $0x40] sm:$0xff] %v2402_v56  ;;  %v2500_v28 = vadd.f32 %v2499_v34, %v2402_v56  ;;  %v2538_v35 = vmul.f32 %v2402_v56, %v2402_v56 }
 0x236   : > { %v2225_v40 = vpop.f32.mrf.mxu2 }
 0x237   : > { %v2569_v38 = vadd.f32 %v2568_v45, %v2538_v35  ;;  %v2226_v49 = vadd.f32 %v2225_v40, %v2137_v43  ;;  %v2314_v37 = vpop.f32.mrf.mxu3  ;;  %v3227_v45 = vld [vmem:[%s3884_s5 + $0x424] sm:$0xf0]  ;;  %v3234_v35 = vor.u32 %v3702_v61, %v3233_v20 }
 0x238   : > { %v2139_v29 = vpop.f32.mrf.mxu1 }
 0x239   : > { %v2315_v33 = vadd.f32 %v2314_v37, %v2226_v49  ;;  %v2140_v2 = vadd.f32 %v2139_v29, %v4322_v53 }
 0x23a   : > { %v2406_v10 = vpop.f32.mrf.mxu0 }
 0x23b   : > { %v2404_v63 = vadd.f32 %v2403_v24, %v2315_v33  ;;  %2178 = vmatmul.bf16.gmra.mxu1 %v3194_v5  ;;  %2267 = vmatmul.bf16.gmra.mxu2 %v3198_v62 }
 0x23c   : > { %2356 = vmatmul.bf16.gmra.mxu3 %v3202_v52 }
 0x23d   : > { %2445 = vmatmul.bf16.gmra.mxu0 %v3206_v55  ;;  %2470 = vst [vmem:[%s4478_s27 + $0x48] sm:$0xff] %v2404_v63  ;;  %v2501_v39 = vadd.f32 %v2500_v28, %v2404_v63  ;;  %v2539_v22 = vmul.f32 %v2404_v63, %v2404_v63  ;;  %v3230_v28 = vor.u32 %v3697_v15, %v3227_v45 }
 0x23e   : > { %v2228_v44 = vpop.f32.mrf.mxu2 }
 0x23f   : > { %v2570_v3 = vadd.f32 %v2569_v38, %v2539_v22  ;;  %v2229_v54 = vadd.f32 %v2228_v44, %v2140_v2  ;;  %v2317_v9 = vpop.f32.mrf.mxu3  ;;  %v3706_v22 = vld [vmem:[%s3884_s5 + $0x44c] sm:$0xf]  ;;  %v3263_v2 = vld [vmem:[%s3884_s5 + $0x46c] sm:$0xf0] }
 0x240   : > { %v2141_v11 = vpop.f32.mrf.mxu1  ;;  %v3269_v44 = vld [vmem:[%s3884_s5 + $0x450] sm:$0xf]  ;;  %v3266_v21 = vor.u32 %v3706_v22, %v3263_v2 }
 0x241   : > { %v2318_v34 = vadd.f32 %v2317_v9, %v2229_v54  ;;  %v2142_v53 = vadd.f32 %v2141_v11, %v4331_v60  ;;  %v3707_v54 = vld [vmem:[%s3884_s5 + $0x454] sm:$0xf]  ;;  %v3271_v9 = vld [vmem:[%s3884_s5 + $0x474] sm:$0xf0] }
 0x242   : > { %v2408_v16 = vpop.f32.mrf.mxu0 }
 0x243   : > { %v2407_v14 = vadd.f32 %v2406_v10, %v2318_v34 }
 0x245   : > { %2471 = vst [vmem:[%s4478_s27 + $0x50] sm:$0xff] %v2407_v14  ;;  %v2502_v24 = vadd.f32 %v2501_v39, %v2407_v14  ;;  %v2540_v56 = vmul.f32 %v2407_v14, %v2407_v14  ;;  %v3712_v14 = vld [vmem:[%s3884_s5 + $0x478] sm:$0xf0] }
 0x246   : > { %v2230_v17 = vpop.f32.mrf.mxu2 }
 0x247   : > { %v2571_v26 = vadd.f32 %v2570_v3, %v2540_v56  ;;  %v2231_v27 = vadd.f32 %v2230_v17, %v2142_v53  ;;  %v2319_v36 = vpop.f32.mrf.mxu3  ;;  %v3711_v3 = vld [vmem:[%s3884_s5 + $0x470] sm:$0xf0]  ;;  %v3274_v56 = vor.u32 %v3707_v54, %v3271_v9 }
 0x248   : > { %v2144_v43 = vpop.f32.mrf.mxu1  ;;  %v3270_v58 = vor.u32 %v3711_v3, %v3269_v44 }
 0x249   : > { %v2320_v40 = vadd.f32 %v2319_v36, %v2231_v27  ;;  %v2145_v5 = vadd.f32 %v2144_v43, %v4336_v41 }
 0x24a   : > { %v2411_v38 = vpop.f32.mrf.mxu0 }
 0x24b   : > { %v2409_v49 = vadd.f32 %v2408_v16, %v2320_v40  ;;  %2183 = vmatmul.bf16.gmra.mxu1 %v3230_v28  ;;  %2272 = vmatmul.bf16.gmra.mxu2 %v3234_v35  ;;  %v3277_v16 = vld [vmem:[%s3884_s5 + $0x458] sm:$0xf] }
 0x24c   : > { %2361 = vmatmul.bf16.gmra.mxu3 %v3238_v59  ;;  %v3278_v53 = vor.u32 %v3712_v14, %v3277_v16 }
 0x24d   : > { %2450 = vmatmul.bf16.gmra.mxu0 %v3242_v42  ;;  %2472 = vst [vmem:[%s4478_s27 + $0x58] sm:$0xff] %v2409_v49  ;;  %v2503_v60 = vadd.f32 %v2502_v24, %v2409_v49  ;;  %v2541_v37 = vmul.f32 %v2409_v49, %v2409_v49 }
 0x24e   : > { %v2233_v62 = vpop.f32.mrf.mxu2 }
 0x24f   : > { %v2572_v29 = vadd.f32 %v2571_v26, %v2541_v37  ;;  %v2234_v52 = vadd.f32 %v2233_v62, %v2145_v5  ;;  %v2322_v55 = vpop.f32.mrf.mxu3 }
 0x250   : > { %v2146_v33 = vpop.f32.mrf.mxu1 }
 0x251   : > { %v2323_v10 = vadd.f32 %v2322_v55, %v2234_v52  ;;  %v2147_v41 = vadd.f32 %v2146_v33, %v4345_v18 }
 0x252   : > { %v2413_v63 = vpop.f32.mrf.mxu0 }
 0x253   : > { %v2412_v39 = vadd.f32 %v2411_v38, %v2323_v10 }
 0x255   : > { %2473 = vst [vmem:[%s4478_s27 + $0x60] sm:$0xff] %v2412_v39  ;;  %v2504_v11 = vadd.f32 %v2503_v60, %v2412_v39  ;;  %v2542_v34 = vmul.f32 %v2412_v39, %v2412_v39 }
 0x256   : > { %v2235_v15 = vpop.f32.mrf.mxu2 }
 0x257   : > { %v2573_v45 = vadd.f32 %v2572_v29, %v2542_v34  ;;  %v2236_v20 = vadd.f32 %v2235_v15, %v2147_v41  ;;  %v2324_v61 = vpop.f32.mrf.mxu3 }
 0x258   : > { %v2149_v24 = vpop.f32.mrf.mxu1 }
 0x259   : > { %v2325_v8 = vadd.f32 %v2324_v61, %v2236_v20  ;;  %v2150_v27 = vadd.f32 %v2149_v24, %v4350_v25 }
 0x25a   : > { %v2416_v19 = vpop.f32.mrf.mxu0 }
 0x25b   : > { %v2414_v17 = vadd.f32 %v2413_v63, %v2325_v8  ;;  %2188 = vmatmul.bf16.gmra.mxu1 %v3266_v21  ;;  %2277 = vmatmul.bf16.gmra.mxu2 %v3270_v58 }
 0x25c   : > { %2366 = vmatmul.bf16.gmra.mxu3 %v3274_v56 }
 0x25d   : > { %2455 = vmatmul.bf16.gmra.mxu0 %v3278_v53  ;;  %2474 = vst [vmem:[%s4478_s27 + $0x68] sm:$0xff] %v2414_v17  ;;  %v2505_v18 = vadd.f32 %v2504_v11, %v2414_v17  ;;  %v2543_v26 = vmul.f32 %v2414_v17, %v2414_v17 }
 0x25e   : > { %v2238_v36 = vpop.f32.mrf.mxu2 }
 0x25f   : > { %v2574_v28 = vadd.f32 %v2573_v45, %v2543_v26  ;;  %v2239_v35 = vadd.f32 %v2238_v36, %v2150_v27  ;;  %v2327_v43 = vpop.f32.mrf.mxu3 }
 0x260   : > { %v2151_v59 = vpop.f32.mrf.mxu1 }
 0x261   : > { %v2328_v42 = vadd.f32 %v2327_v43, %v2239_v35  ;;  %v2152_v37 = vadd.f32 %v2151_v59, %v4359_v46 }
 0x262   : > { %v2418_v40 = vpop.f32.mrf.mxu0 }
 0x263   : > { %v2417_v38 = vadd.f32 %v2416_v19, %v2328_v42 }
 0x265   : > { %2475 = vst [vmem:[%s4478_s27 + $0x70] sm:$0xff] %v2417_v38  ;;  %v2506_v49 = vadd.f32 %v2505_v18, %v2417_v38  ;;  %v2544_v60 = vmul.f32 %v2417_v38, %v2417_v38 }
 0x266   : > { %v2240_v5 = vpop.f32.mrf.mxu2 }
 0x267   : > { %v2575_v62 = vadd.f32 %v2574_v28, %v2544_v60  ;;  %v2241_v29 = vadd.f32 %v2240_v5, %v2152_v37  ;;  %v2329_v52 = vpop.f32.mrf.mxu3 }
 0x268   : > { %v2154_v55 = vpop.f32.mrf.mxu1 }
 0x269   : > { %v2330_v25 = vadd.f32 %v2329_v52, %v2241_v29  ;;  %v2155_v22 = vadd.f32 %v2154_v55, %v4364_v57 }
 0x26a   : > { %v2421_v33 = vpop.f32.mrf.mxu0 }
 0x26b   : > { %v2419_v10 = vadd.f32 %v2418_v40, %v2330_v25 }
 0x26d   : > { %2476 = vst [vmem:[%s4478_s27 + $0x78] sm:$0xff] %v2419_v10  ;;  %v2507_v63 = vadd.f32 %v2506_v49, %v2419_v10  ;;  %v2545_v39 = vmul.f32 %v2419_v10, %v2419_v10 }
 0x26e   : > { %v2243_v2 = vpop.f32.mrf.mxu2 }
 0x26f   : > { %v2576_v44 = vadd.f32 %v2575_v62, %v2545_v39  ;;  %v2244_v3 = vadd.f32 %v2243_v2, %v2155_v22  ;;  %v2332_v54 = vpop.f32.mrf.mxu3 }
 0x270   : > { %v2156_v9 = vpop.f32.mrf.mxu1 }
 0x271   : > { %v2333_v46 = vadd.f32 %v2332_v54, %v2244_v3  ;;  %v2157_v14 = vadd.f32 %v2156_v9, %v4373_v50 }
 0x272   : > { %v2423_v11 = vpop.f32.mrf.mxu0 }
 0x273   : > { %v2422_v34 = vadd.f32 %v2421_v33, %v2333_v46 }
 0x275   : > { %2477 = vst [vmem:[%s4478_s27 + $0x80] sm:$0xff] %v2422_v34  ;;  %v2508_v41 = vadd.f32 %v2507_v63, %v2422_v34  ;;  %v2546_v16 = vmul.f32 %v2422_v34, %v2422_v34 }
 0x276   : > { %v2245_v15 = vpop.f32.mrf.mxu2 }
 0x277   : > { %v2577_v45 = vadd.f32 %v2576_v44, %v2546_v16  ;;  %v2246_v20 = vadd.f32 %v2245_v15, %v2157_v14  ;;  %v2334_v61 = vpop.f32.mrf.mxu3 }
 0x278   : > { %v2159_v21 = vpop.f32.mrf.mxu1 }
 0x279   : > { %v2335_v57 = vadd.f32 %v2334_v61, %v2246_v20  ;;  %v2160_v8 = vadd.f32 %v2159_v21, %v4378_v4 }
 0x27a   : > { %v2426_v58 = vpop.f32.mrf.mxu0 }
 0x27b   : > { %v2424_v24 = vadd.f32 %v2423_v11, %v2335_v57 }
 0x27d   : > { %2478 = vst [vmem:[%s4478_s27 + $0x88] sm:$0xff] %v2424_v24  ;;  %v2509_v56 = vadd.f32 %v2508_v41, %v2424_v24  ;;  %v2547_v53 = vmul.f32 %v2424_v24, %v2424_v24 }
 0x27e   : > { %v2248_v19 = vpop.f32.mrf.mxu2 }
 0x27f   : > { %v2578_v17 = vadd.f32 %v2577_v45, %v2547_v53  ;;  %v2249_v18 = vadd.f32 %v2248_v19, %v2160_v8  ;;  %v2337_v26 = vpop.f32.mrf.mxu3 }
 0x280   : > { %v2161_v27 = vpop.f32.mrf.mxu1 }
 0x281   : > { %v2338_v50 = vadd.f32 %v2337_v26, %v2249_v18  ;;  %v2162_v59 = vadd.f32 %v2161_v27, %v4387_v6 }
 0x282   : > { %v2428_v36 = vpop.f32.mrf.mxu0 }
 0x283   : > { %v2427_v28 = vadd.f32 %v2426_v58, %v2338_v50 }
 0x285   : > { %2479 = vst [vmem:[%s4478_s27 + $0x90] sm:$0xff] %v2427_v28  ;;  %v2510_v35 = vadd.f32 %v2509_v56, %v2427_v28  ;;  %v2548_v43 = vmul.f32 %v2427_v28, %v2427_v28 }
 0x286   : > { %v2250_v42 = vpop.f32.mrf.mxu2 }
 0x287   : > { %v2579_v40 = vadd.f32 %v2578_v17, %v2548_v43  ;;  %v2251_v38 = vadd.f32 %v2250_v42, %v2162_v59  ;;  %v2339_v49 = vpop.f32.mrf.mxu3 }
 0x288   : > { %v2164_v60 = vpop.f32.mrf.mxu1 }
 0x289   : > { %v2340_v4 = vadd.f32 %v2339_v49, %v2251_v38  ;;  %v2165_v52 = vadd.f32 %v2164_v60, %v4392_v30 }
 0x28a   : > { %v2431_v37 = vpop.f32.mrf.mxu0 }
 0x28b   : > { %v2429_v5 = vadd.f32 %v2428_v36, %v2340_v4 }
 0x28d   : > { %2480 = vst [vmem:[%s4478_s27 + $0x98] sm:$0xff] %v2429_v5  ;;  %v2511_v62 = vadd.f32 %v2510_v35, %v2429_v5  ;;  %v2549_v29 = vmul.f32 %v2429_v5, %v2429_v5 }
 0x28e   : > { %v2253_v55 = vpop.f32.mrf.mxu2 }
 0x28f   : > { %v2580_v25 = vadd.f32 %v2579_v40, %v2549_v29  ;;  %v2254_v33 = vadd.f32 %v2253_v55, %v2165_v52  ;;  %v2342_v10 = vpop.f32.mrf.mxu3 }
 0x290   : > { %v2166_v63 = vpop.f32.mrf.mxu1 }
 0x291   : > { %v2343_v6 = vadd.f32 %v2342_v10, %v2254_v33  ;;  %v2167_v3 = vadd.f32 %v2166_v63, %v4401_v31 }
 0x292   : > { %v2433_v39 = vpop.f32.mrf.mxu0 }
 0x293   : > { %v2432_v22 = vadd.f32 %v2431_v37, %v2343_v6 }
 0x295   : > { %2481 = vst [vmem:[%s4478_s27 + $0xa0] sm:$0xff] %v2432_v22  ;;  %v2512_v2 = vadd.f32 %v2511_v62, %v2432_v22  ;;  %v2550_v44 = vmul.f32 %v2432_v22, %v2432_v22 }
 0x296   : > { %v2255_v54 = vpop.f32.mrf.mxu2 }
 0x297   : > { %v2581_v9 = vadd.f32 %v2580_v25, %v2550_v44  ;;  %v2256_v46 = vadd.f32 %v2255_v54, %v2167_v3  ;;  %v2344_v11 = vpop.f32.mrf.mxu3 }
 0x298   : > { %v2169_v34 = vpop.f32.mrf.mxu1 }
 0x299   : > { %v2345_v30 = vadd.f32 %v2344_v11, %v2256_v46  ;;  %v2170_v45 = vadd.f32 %v2169_v34, %v4406_v48 }
 0x29a   : > { %v2436_v41 = vpop.f32.mrf.mxu0 }
 0x29b   : > { %v2434_v16 = vadd.f32 %v2433_v39, %v2345_v30 }
 0x29d   : > { %2482 = vst [vmem:[%s4478_s27 + $0xa8] sm:$0xff] %v2434_v16  ;;  %v2513_v14 = vadd.f32 %v2512_v2, %v2434_v16  ;;  %v2551_v15 = vmul.f32 %v2434_v16, %v2434_v16 }
 0x29e   : > { %v2258_v20 = vpop.f32.mrf.mxu2 }
 0x29f   : > { %v2582_v61 = vadd.f32 %v2581_v9, %v2551_v15  ;;  %v2259_v21 = vadd.f32 %v2258_v20, %v2170_v45  ;;  %v2347_v57 = vpop.f32.mrf.mxu3 }
 0x2a0   : > { %v2171_v58 = vpop.f32.mrf.mxu1 }
 0x2a1   : > { %v2348_v31 = vadd.f32 %v2347_v57, %v2259_v21  ;;  %v2172_v19 = vadd.f32 %v2171_v58, %v4415_v0 }
 0x2a2   : > { %v2438_v24 = vpop.f32.mrf.mxu0 }
 0x2a3   : > { %v2437_v56 = vadd.f32 %v2436_v41, %v2348_v31 }
 0x2a5   : > { %2483 = vst [vmem:[%s4478_s27 + $0xb0] sm:$0xff] %v2437_v56  ;;  %v2514_v53 = vadd.f32 %v2513_v14, %v2437_v56  ;;  %v2552_v8 = vmul.f32 %v2437_v56, %v2437_v56 }
 0x2a6   : > { %v2260_v17 = vpop.f32.mrf.mxu2 }
 0x2a7   : > { %v2583_v18 = vadd.f32 %v2582_v61, %v2552_v8  ;;  %v2261_v26 = vadd.f32 %v2260_v17, %v2172_v19  ;;  %v2349_v27 = vpop.f32.mrf.mxu3 }
 0x2a8   : > { %v2174_v50 = vpop.f32.mrf.mxu1 }
 0x2a9   : > { %v2350_v48 = vadd.f32 %v2349_v27, %v2261_v26  ;;  %v2175_v59 = vadd.f32 %v2174_v50, %v4420_v47 }
 0x2aa   : > { %v2441_v36 = vpop.f32.mrf.mxu0 }
 0x2ab   : > { %v2439_v28 = vadd.f32 %v2438_v24, %v2350_v48 }
 0x2ad   : > { %2484 = vst [vmem:[%s4478_s27 + $0xb8] sm:$0xff] %v2439_v28  ;;  %v2515_v35 = vadd.f32 %v2514_v53, %v2439_v28  ;;  %v2553_v43 = vmul.f32 %v2439_v28, %v2439_v28 }
 0x2ae   : > { %v2263_v42 = vpop.f32.mrf.mxu2 }
 0x2af   : > { %v2584_v40 = vadd.f32 %v2583_v18, %v2553_v43  ;;  %v2264_v38 = vadd.f32 %v2263_v42, %v2175_v59  ;;  %v2352_v49 = vpop.f32.mrf.mxu3 }
 0x2b0   : > { %v2176_v60 = vpop.f32.mrf.mxu1 }
 0x2b1   : > { %v2353_v0 = vadd.f32 %v2352_v49, %v2264_v38  ;;  %v2177_v29 = vadd.f32 %v2176_v60, %v4429_v51 }
 0x2b2   : > { %v2443_v4 = vpop.f32.mrf.mxu0 }
 0x2b3   : > { %v2442_v37 = vadd.f32 %v2441_v36, %v2353_v0 }
 0x2b5   : > { %2485 = vst [vmem:[%s4478_s27 + $0xc0] sm:$0xff] %v2442_v37  ;;  %v2516_v5 = vadd.f32 %v2515_v35, %v2442_v37  ;;  %v2554_v62 = vmul.f32 %v2442_v37, %v2442_v37 }
 0x2b6   : > { %v2265_v52 = vpop.f32.mrf.mxu2 }
 0x2b7   : > { %v2585_v55 = vadd.f32 %v2584_v40, %v2554_v62  ;;  %v2266_v25 = vadd.f32 %v2265_v52, %v2177_v29  ;;  %v2354_v33 = vpop.f32.mrf.mxu3 }
 0x2b8   : > { %v2179_v10 = vpop.f32.mrf.mxu1 }
 0x2b9   : > { %v2355_v47 = vadd.f32 %v2354_v33, %v2266_v25  ;;  %v2180_v2 = vadd.f32 %v2179_v10, %v4434_v23 }
 0x2ba   : > { %v2446_v63 = vpop.f32.mrf.mxu0 }
 0x2bb   : > { %v2444_v6 = vadd.f32 %v2443_v4, %v2355_v47 }
 0x2bd   : > { %2486 = vst [vmem:[%s4478_s27 + $0xc8] sm:$0xff] %v2444_v6  ;;  %v2517_v39 = vadd.f32 %v2516_v5, %v2444_v6  ;;  %v2555_v22 = vmul.f32 %v2444_v6, %v2444_v6 }
 0x2be   : > { %v2268_v44 = vpop.f32.mrf.mxu2 }
 0x2bf   : > { %v2586_v3 = vadd.f32 %v2585_v55, %v2555_v22  ;;  %v2269_v54 = vadd.f32 %v2268_v44, %v2180_v2  ;;  %v2357_v9 = vpop.f32.mrf.mxu3 }
 0x2c0   : > { %v2181_v46 = vpop.f32.mrf.mxu1 }
 0x2c1   : > { %v2358_v51 = vadd.f32 %v2357_v9, %v2269_v54  ;;  %v2182_v16 = vadd.f32 %v2181_v46, %v4443_v7  ;;  %v2599_v46 = vlaneseq }
 0x2c2   : > { %v2448_v11 = vpop.f32.mrf.mxu0 }
 0x2c3   : > { %v2447_v34 = vadd.f32 %v2446_v63, %v2358_v51 }
 0x2c5   : > { %2487 = vst [vmem:[%s4478_s27 + $0xd0] sm:$0xff] %v2447_v34  ;;  %v2518_v30 = vadd.f32 %v2517_v39, %v2447_v34  ;;  %v2556_v41 = vmul.f32 %v2447_v34, %v2447_v34 }
 0x2c6   : > { %v2270_v14 = vpop.f32.mrf.mxu2 }
 0x2c7   : > { %v2587_v15 = vadd.f32 %v2586_v3, %v2556_v41  ;;  %v2271_v45 = vadd.f32 %v2270_v14, %v2182_v16  ;;  %v2359_v20 = vpop.f32.mrf.mxu3 }
 0x2c8   : > { %v2184_v23 = vpop.f32.mrf.mxu1 }
 0x2c9   : > { %v2360_v61 = vadd.f32 %v2359_v20, %v2271_v45  ;;  %v2185_v24 = vadd.f32 %v2184_v23, %v4448_v12 }
 0x2ca   : > { %v2451_v57 = vpop.f32.mrf.mxu0 }
 0x2cb   : > { %v2449_v21 = vadd.f32 %v2448_v11, %v2360_v61 }
 0x2cd   : > { %2488 = vst [vmem:[%s4478_s27 + $0xd8] sm:$0xff] %v2449_v21  ;;  %v2519_v58 = vadd.f32 %v2518_v30, %v2449_v21  ;;  %v2557_v31 = vmul.f32 %v2449_v21, %v2449_v21  ;;  %v2600_v30 = vshrl.u32 %v2599_v46, 7 }
 0x2ce   : > { %v2273_v56 = vpop.f32.mrf.mxu2 }
 0x2cf   : > { %v2588_v53 = vadd.f32 %v2587_v15, %v2557_v31  ;;  %v2274_v8 = vadd.f32 %v2273_v56, %v2185_v24  ;;  %v2362_v19 = vpop.f32.mrf.mxu3  ;;  %vm2602_vm0 = vcmp.eq.s32.totalorder %v2600_v30, 1  ;;  %vm2601_vm1 = vcmp.eq.s32.totalorder %v2600_v30, 0 }
 0x2d0   : > { %v2186_v7 = vpop.f32.mrf.mxu1 }
 0x2d1   : > { %v2363_v17 = vadd.f32 %v2362_v19, %v2274_v8  ;;  %v2187_v50 = vadd.f32 %v2186_v7, %v4457_v32 }
 0x2d2   : > { %v2453_v48 = vpop.f32.mrf.mxu0 }
 0x2d3   : > { %v2452_v18 = vadd.f32 %v2451_v57, %v2363_v17 }
 0x2d5   : > { %2489 = vst [vmem:[%s4478_s27 + $0xe0] sm:$0xff] %v2452_v18  ;;  %v2520_v26 = vadd.f32 %v2519_v58, %v2452_v18  ;;  %v2558_v27 = vmul.f32 %v2452_v18, %v2452_v18 }
 0x2d6   : > { %v2275_v36 = vpop.f32.mrf.mxu2 }
 0x2d7   : > { %v2589_v28 = vadd.f32 %v2588_v53, %v2558_v27  ;;  %v2276_v35 = vadd.f32 %v2275_v36, %v2187_v50  ;;  %v2364_v43 = vpop.f32.mrf.mxu3 }
 0x2d8   : > { %v2189_v12 = vpop.f32.mrf.mxu1 }
 0x2d9   : > { %v2365_v59 = vadd.f32 %v2364_v43, %v2276_v35  ;;  %v2190_v49 = vadd.f32 %v2189_v12, %v4462_v13 }
 0x2da   : > { %v2456_v32 = vpop.f32.mrf.mxu0 }
 0x2db   : > { %v2454_v42 = vadd.f32 %v2453_v48, %v2365_v59 }
 0x2dd   : > { %2490 = vst [vmem:[%s4478_s27 + $0xe8] sm:$0xff] %v2454_v42  ;;  %v2521_v40 = vadd.f32 %v2520_v26, %v2454_v42  ;;  %v2559_v38 = vmul.f32 %v2454_v42, %v2454_v42 }
 0x2de   : > { %v2278_v60 = vpop.f32.mrf.mxu2 }
 0x2df   : > { %v2590_v0 = vadd.f32 %v2589_v28, %v2559_v38  ;;  %v2279_v4 = vadd.f32 %v2278_v60, %v2190_v49  ;;  %v2367_v37 = vpop.f32.mrf.mxu3 }
 0x2e0   : > { %v2191_v62 = vpop.f32.mrf.mxu1 }
 0x2e1   : > { %v2368_v5 = vadd.f32 %v2367_v37, %v2279_v4  ;;  %v2192_v25 = vadd.f32 %v2191_v62, %v4471_v1 }
 0x2e2   : > { %v2458_v6 = vpop.f32.mrf.mxu0 }
 0x2e3   : > { %v2457_v29 = vadd.f32 %v2456_v32, %v2368_v5 }
 0x2e5   : > { %2491 = vst [vmem:[%s4478_s27 + $0xf0] sm:$0xff] %v2457_v29  ;;  %v2522_v52 = vadd.f32 %v2521_v40, %v2457_v29  ;;  %v2560_v55 = vmul.f32 %v2457_v29, %v2457_v29 }
 0x2e6   : > { %v2280_v33 = vpop.f32.mrf.mxu2 }
 0x2e7   : > { %v2591_v10 = vadd.f32 %v2590_v0, %v2560_v55  ;;  %v2281_v47 = vadd.f32 %v2280_v33, %v2192_v25  ;;  %v2369_v13 = vpop.f32.mrf.mxu3 }
 0x2e9   : > { %v2370_v63 = vadd.f32 %v2369_v13, %v2281_v47 }
 0x2eb   : > { %v2459_v39 = vadd.f32 %v2458_v6, %v2370_v63 }
 0x2ed   : > { %2492 = vst [vmem:[%s4478_s27 + $0xf8] sm:$0xff] %v2459_v39  ;;  %v2523_v22 = vadd.f32 %v2522_v52, %v2459_v39  ;;  %v2561_v2 = vmul.f32 %v2459_v39, %v2459_v39 }
 0x2ef   : > { %v2524_v44 = vrot.slane %v2523_v22, 4  ;;  %v2592_v3 = vadd.f32 %v2591_v10, %v2561_v2 }
 0x2f1   : > { %v2525_v54 = vadd.f32 %v2524_v44, %v2523_v22  ;;  %v2593_v9 = vrot.slane %v2592_v3, 4 }
 0x2f3   : > { %v2526_v51 = vrot.slane %v2525_v54, 2  ;;  %v2594_v11 = vadd.f32 %v2593_v9, %v2592_v3 }
 0x2f5   : > { %v2527_v1 = vadd.f32 %v2526_v51, %v2525_v54  ;;  %v2595_v34 = vrot.slane %v2594_v11, 2 }
 0x2f7   : > { %v2596_v41 = vadd.f32 %v2595_v34, %v2594_v11  ;;  %v2528_v16 = vrot.slane %v2527_v1, 1 }
 0x2f9   : > { %v2597_v14 = vrot.slane %v2596_v41, 1  ;;  %v2529_v45 = vadd.f32 %v2528_v16, %v2527_v1 }
 0x2fb   : > { %v2598_v15 = vadd.f32 %v2597_v14, %v2596_v41 }
 0x2fd   : > { %v2603_v20 = vsel %vm2602_vm0, %v2598_v15, 0.0 }
 0x2fe   : > { %v2604_v23 = vsel %vm2601_vm1, %v2529_v45, %v2603_v20 }
 0x2ff   : > { %2605 = vst [vmem:[%s187_s29] sm:$0xff] %v2604_v23 }
 0x300 PF: > { %s14_s12 = sadd.s32 1, %s3824_s12  }
 0x301   : > { %p11_p5 = scmp.ge.s32.totalorder %s14_s12, 4  }
 0x303   :  { %13 = sbr.rel (!%p11_p5) target bundleno = 1 (0x1), region = 70 }

</bundles_post_ra>
